<compile_context>
chip_gen: v5e
topology: v5e:2x2
jax: 0.10.0
libtpu: 0.0.40
codegen_flags: <defaults>
</compile_context>

<pallas_src>
import functools

import jax
import jax.numpy as jnp
from jax.experimental import pallas as pl
from jax.experimental.pallas import tpu as pltpu


def _rup(x, m):
    return (x + m - 1) // m * m


# ----------------------------- Pallas kernel body ------------------------------

def _make_shift_gemm_kernel(n_row_taps, row_stride, m_tile, lane):
    """Shift-and-stack im2col + one GEMM per grid step.

    x_ref : (rows_in, lane)           bf16  resident activations; row = (n*H + h)*Wp + w,
                                            lane = width taps already folded in.
    w_ref : (n_row_taps*lane, Fpad)   bf16  row-tap-major fused weights (per-step block)
    b_ref : (1, Fpad)                 f32   fused bias
    o_ref : (m_tile, Fpad)                  output tile (garbage at row/batch-wrapping
                                            window positions; never consumed downstream)
    a_scr : (m_tile, n_row_taps*lane) bf16  VMEM staging buffer
    """
    def kernel(x_ref, w_ref, b_ref, o_ref, a_scr):
        base = pl.multiple_of(pl.program_id(0) * m_tile, 8)
        for i in range(n_row_taps):
            a_scr[:, i * lane:(i + 1) * lane] = (
                x_ref[pl.ds(base + i * row_stride, m_tile), :])
        acc = jnp.dot(a_scr[...], w_ref[...], preferred_element_type=jnp.float32)
        o_ref[...] = (acc + b_ref[...]).astype(o_ref.dtype)
    return kernel


# ----------------------------- pallas_call wrappers ----------------------------

def _fused_conv(x_flat, w_flat, bias, m_out, n_row_taps, row_stride, tile_m,
                out_dtype):
    """Fused head conv, tiled over the flattened-row (M) dimension."""
    assert m_out % tile_m == 0 and tile_m % 8 == 0
    rows_in, lane = x_flat.shape
    fpad = w_flat.shape[1]
    kernel = _make_shift_gemm_kernel(n_row_taps, row_stride, tile_m, lane)
    flops = 2 * m_out * (n_row_taps * lane) * fpad
    bytes_accessed = (x_flat.size * x_flat.dtype.itemsize
                      + w_flat.size * w_flat.dtype.itemsize
                      + bias.size * 4
                      + m_out * fpad * jnp.dtype(out_dtype).itemsize)
    return pl.pallas_call(
        kernel,
        out_shape=jax.ShapeDtypeStruct((m_out, fpad), out_dtype),
        grid_spec=pltpu.PrefetchScalarGridSpec(
            num_scalar_prefetch=0,
            grid=(m_out // tile_m,),
            in_specs=[
                pl.BlockSpec((rows_in, lane), lambda t: (0, 0)),            # resident
                pl.BlockSpec((n_row_taps * lane, fpad), lambda t: (0, 0)),  # weights
                pl.BlockSpec((1, fpad), lambda t: (0, 0)),                  # bias
            ],
            out_specs=pl.BlockSpec((tile_m, fpad), lambda t: (t, 0)),
            scratch_shapes=[pltpu.VMEM((tile_m, n_row_taps * lane), jnp.bfloat16)]),
        compiler_params=pltpu.CompilerParams(dimension_semantics=("parallel",)),
        cost_estimate=pl.CostEstimate(flops=flops, transcendentals=0,
                                      bytes_accessed=bytes_accessed),
    )(x_flat, w_flat, bias)


def _xcorr_adjust(feat, wx, bias, n_batch, mb, hk, row_stride, out_dtype):
    """Per-batch grouped xcorr with loc_adjust pre-folded into wx; grid over batch."""
    rows_f, lane = feat.shape
    _, tapk, outp = wx.shape
    assert tapk == hk * lane and mb % 8 == 0
    kernel = _make_shift_gemm_kernel(hk, row_stride, mb, lane)
    flops = 2 * n_batch * mb * tapk * outp
    bytes_accessed = (feat.size * 2 + wx.size * 2 + bias.size * 4
                      + n_batch * mb * outp * jnp.dtype(out_dtype).itemsize)
    return pl.pallas_call(
        kernel,
        out_shape=jax.ShapeDtypeStruct((n_batch * mb, outp), out_dtype),
        grid_spec=pltpu.PrefetchScalarGridSpec(
            num_scalar_prefetch=0,
            grid=(n_batch,),
            in_specs=[
                pl.BlockSpec((rows_f, lane), lambda n: (0, 0)),          # resident feat
                pl.BlockSpec((None, tapk, outp), lambda n: (n, 0, 0)),   # per-batch wx
                pl.BlockSpec((1, outp), lambda n: (0, 0)),               # fused bias
            ],
            out_specs=pl.BlockSpec((mb, outp), lambda n: (n, 0)),
            scratch_shapes=[pltpu.VMEM((mb, hk * lane), jnp.bfloat16)]),
        compiler_params=pltpu.CompilerParams(dimension_semantics=("parallel",)),
        cost_estimate=pl.CostEstimate(flops=flops, transcendentals=0,
                                      bytes_accessed=bytes_accessed),
    )(feat, wx, bias)


# ------------------------------ RPN_Up forward --------------------------------

def rpn_up_forward(params, z_f, x_f, anchor_nums, out_channels):
    """z_f, x_f in NCHW (PyTorch layout). Returns (pred_cls, pred_reg) in NCHW."""
    N, Cin, Hz, Wz = z_f.shape
    _, _, Hx, Wx = x_f.shape
    cls_ch = anchor_nums
    reg_ch = 4 * anchor_nums
    nreal = cls_ch + reg_ch
    C = out_channels
    KH = KW = 3

    # lane-padded widths (multiples of 128 -> dense vld/vst)
    LANE_C = _rup(KW * Cin, 128)          # conv lanes per row tap   (48  -> 128)
    FT = _rup(C * nreal, 128)             # fused template-conv Cout (400 -> 512)
    CF = _rup(2 * C, 128)                 # fused search-conv Cout   (32  -> 128)
    OUTP = _rup(nreal, 128)               # fused head output slab   (25  -> 128)

    Hk, Wk = Hz - KH + 1, Wz - KW + 1     # xcorr kernel spatial size
    Hf, Wf = Hx - KH + 1, Wx - KW + 1     # search feature valid spatial size
    Ho, Wo = Hf - Hk + 1, Wf - Wk + 1     # head output spatial size

    Wzp = _rup(Wz, 8)                     # sublane-aligned row-tap offsets (v5e)
    Wxp = _rup(Wx, 8)
    LANE_X = _rup(Wk * 2 * C, 128)        # xcorr lanes per row tap (128 at demo size)

    # --- host-side KW lane fold of the inputs ------------------------------------
    def fold_kw(a, Wp):                    # NCHW -> (rows, LANE_C), KW taps in the lane
        Nn, Cc, Hh, Ww = a.shape
        a = jnp.transpose(a, (0, 2, 3, 1))                               # NHWC
        a = jnp.pad(a, ((0, 0), (0, 0), (0, Wp + KW - 1 - Ww), (0, 0)))
        a = jnp.concatenate([a[:, :, j:j + Wp, :] for j in range(KW)], axis=-1)
        a = jnp.pad(a, ((0, 0), (0, 0), (0, 0), (0, LANE_C - KW * Cc)))
        m = Nn * Hh * Wp
        rows = _rup(m + (KH - 1) * Wp, 8)
        a = a.reshape(m, LANE_C)
        a = jnp.pad(a, ((0, rows - m), (0, 0)))                          # zero spill
        return a.astype(jnp.bfloat16), m

    z_flat, Mz = fold_kw(z_f, Wzp)
    x_flat, Mx = fold_kw(x_f, Wxp)

    # --- fused head-conv weights (cls ++ reg along Cout), KW folded into K -------
    def fuse_conv_weights(w_list, b_list, fpad):
        w = jnp.concatenate(w_list, axis=0)                              # (F,Cin,KH,KW)
        f_real = w.shape[0]
        w = jnp.transpose(w, (2, 3, 1, 0)).reshape(KH, KW * Cin, f_real)
        w = jnp.pad(w, ((0, 0), (0, LANE_C - KW * Cin), (0, fpad - f_real)))
        w = w.reshape(KH * LANE_C, fpad).astype(jnp.bfloat16)
        b = jnp.pad(jnp.concatenate(b_list, axis=0), (0, fpad - f_real))
        return w, b.reshape(1, fpad).astype(jnp.float32)

    wt, bt = fuse_conv_weights(
        [params["template_cls_w"], params["template_reg_w"]],
        [params["template_cls_b"], params["template_reg_b"]], FT)
    ws, bs = fuse_conv_weights(
        [params["search_cls_w"], params["search_reg_w"]],
        [params["search_cls_b"], params["search_reg_b"]], CF)

    # --- pallas_call #1/#2: fused template & search head convs -------------------
    kern_z = _fused_conv(z_flat, wt, bt, Mz, KH, Wzp, tile_m=Mz,
                         out_dtype=jnp.float32)                          # (Mz, FT) f32
    tile_x = 256 if (Mx > 256 and Mx % 256 == 0) else Mx
    feat_x = _fused_conv(x_flat, ws, bs, Mx, KH, Wxp, tile_m=tile_x,
                         out_dtype=jnp.bfloat16)                         # (Mx, CF) bf16

    # --- per-batch xcorr weights in f32, loc_adjust pre-folded, one bf16 cast ----
    kz = kern_z.reshape(N, Hz, Wzp, FT)[:, :Hk, :Wk, :C * nreal]
    kc = jnp.transpose(kz[..., :C * cls_ch].reshape(N, Hk, Wk, cls_ch, C),
                       (0, 1, 2, 4, 3))                                  # (N,Hk,Wk,C,cls)
    kr = jnp.transpose(kz[..., C * cls_ch:].reshape(N, Hk, Wk, reg_ch, C),
                       (0, 1, 2, 4, 3))                                  # (N,Hk,Wk,C,reg)
    blk = jnp.concatenate(
        [jnp.concatenate([kc, jnp.zeros_like(kr)], axis=-1),
         jnp.concatenate([jnp.zeros_like(kc), kr], axis=-1)],
        axis=-2)                                                         # (N,Hk,Wk,2C,nreal)
    blk = blk.reshape(N, Hk, Wk * 2 * C, nreal)
    w_adj = params["loc_adjust_w"][:, :, 0, 0].astype(jnp.float32)       # (reg_out,reg_in)
    blk = jnp.concatenate(
        [blk[..., :cls_ch], blk[..., cls_ch:] @ jnp.transpose(w_adj)], axis=-1)
    wx = jnp.pad(blk, ((0, 0), (0, 0), (0, LANE_X - Wk * 2 * C), (0, OUTP - nreal)))
    wx = wx.reshape(N, Hk * LANE_X, OUTP).astype(jnp.bfloat16)

    b_big = jnp.zeros((1, OUTP), jnp.float32)
    b_big = b_big.at[0, cls_ch:nreal].set(params["loc_adjust_b"].astype(jnp.float32))

    # --- re-pack search features: fold the Wk xcorr taps into the lane dim -------
    feat = feat_x.reshape(N, Hx, Wxp, CF)[..., :2 * C]
    feat = jnp.pad(feat, ((0, 0), (0, 0), (0, Wk - 1), (0, 0)))
    feat = jnp.concatenate([feat[:, :, j:j + Wxp, :] for j in range(Wk)], axis=-1)
    feat = jnp.pad(feat, ((0, 0), (0, 0), (0, 0), (0, LANE_X - Wk * 2 * C)))
    Mb = Hx * Wxp
    rows_f = _rup(N * Mb + (Hk - 1) * Wxp, 8)
    feat = feat.reshape(N * Mb, LANE_X)
    feat = jnp.pad(feat, ((0, rows_f - N * Mb), (0, 0))).astype(jnp.bfloat16)

    # --- pallas_call #3: per-batch grouped xcorr (+ folded loc_adjust) -----------
    out = _xcorr_adjust(feat, wx, b_big, N, Mb, Hk, Wxp, out_dtype=jnp.bfloat16)

    out = out.reshape(N, Hx, Wxp, OUTP)[:, :Ho, :Wo, :].astype(jnp.float32)
    pred_cls = jnp.transpose(out[..., :cls_ch], (0, 3, 1, 2))
    pred_reg = jnp.transpose(out[..., cls_ch:nreal], (0, 3, 1, 2))
    return pred_cls, pred_reg


# --------------------------- reference (pure JAX) ------------------------------

def _ref_conv(x_nchw, w_oihw, b):
    y = jax.lax.conv_general_dilated(x_nchw, w_oihw, (1, 1), "VALID",
                                     dimension_numbers=("NCHW", "OIHW", "NCHW"))
    return y + b[None, :, None, None]


def ref_forward(params, z_f, x_f, anchor_nums, out_channels):
    cls_channel = anchor_nums
    reg_channel = 4 * anchor_nums
    cls_kernel = _ref_conv(z_f, params["template_cls_w"], params["template_cls_b"])
    reg_kernel = _ref_conv(z_f, params["template_reg_w"], params["template_reg_b"])
    cls_feature = _ref_conv(x_f, params["search_cls_w"], params["search_cls_b"])
    reg_feature = _ref_conv(x_f, params["search_reg_w"], params["search_reg_b"])
    N = x_f.shape[0]

    def xcorr_group(feat, kern, out_ch):
        outs = []
        for n in range(N):
            w = kern[n].reshape(out_ch, out_channels, kern.shape[2], kern.shape[3])
            o = jax.lax.conv_general_dilated(feat[n:n + 1], w, (1, 1), "VALID",
                                             dimension_numbers=("NCHW", "OIHW", "NCHW"))
            outs.append(o)
        return jnp.concatenate(outs, axis=0)

    pred_cls = xcorr_group(cls_feature, cls_kernel, cls_channel)
    reg_corr = xcorr_group(reg_feature, reg_kernel, reg_channel)
    pred_reg = _ref_conv(reg_corr, params["loc_adjust_w"], params["loc_adjust_b"])
    return pred_cls, pred_reg


# ----------------------------------- main --------------------------------------

if __name__ == "__main__":
    anchor_nums = 5
    in_channels = 16
    out_channels = 16
    cls_channel = anchor_nums
    reg_channel = 4 * anchor_nums
    N = 2

    key = jax.random.PRNGKey(0)
    keys = jax.random.split(key, 12)

    def init_conv(kw, kb, cout, cin, kh, kwid):
        w = 0.05 * jax.random.normal(kw, (cout, cin, kh, kwid), jnp.float32)
        b = 0.05 * jax.random.normal(kb, (cout,), jnp.float32)
        return w, b

    params = {}
    params["template_cls_w"], params["template_cls_b"] = init_conv(
        keys[0], keys[1], out_channels * cls_channel, in_channels, 3, 3)
    params["template_reg_w"], params["template_reg_b"] = init_conv(
        keys[2], keys[3], out_channels * reg_channel, in_channels, 3, 3)
    params["search_cls_w"], params["search_cls_b"] = init_conv(
        keys[4], keys[5], out_channels, in_channels, 3, 3)
    params["search_reg_w"], params["search_reg_b"] = init_conv(
        keys[6], keys[7], out_channels, in_channels, 3, 3)
    params["loc_adjust_w"], params["loc_adjust_b"] = init_conv(
        keys[8], keys[9], reg_channel, reg_channel, 1, 1)

    z_f = jax.random.normal(keys[10], (N, in_channels, 6, 6), jnp.float32)
    x_f = jax.random.normal(keys[11], (N, in_channels, 16, 16), jnp.float32)

    fwd = jax.jit(functools.partial(rpn_up_forward,
                                    anchor_nums=anchor_nums,
                                    out_channels=out_channels))
    pred_cls, pred_reg = fwd(params, z_f, x_f)
    jax.block_until_ready((pred_cls, pred_reg))

    assert pred_cls.shape == (N, cls_channel, 11, 11), pred_cls.shape
    assert pred_reg.shape == (N, reg_channel, 11, 11), pred_reg.shape

    ref_cls, ref_reg = ref_forward(params, z_f, x_f, anchor_nums, out_channels)

    # bf16-operand / f32-accumulate GEMMs + bf16 output store: max-magnitude-scaled bound.
    def check(a, b, tol=4e-2):
        err = float(jnp.max(jnp.abs(a - b)))
        scale = max(float(jnp.max(jnp.abs(b))), 1.0)
        assert err <= tol * scale, (err, scale)

    check(pred_cls, ref_cls)
    check(pred_reg, ref_reg)

    print("KERNEL_OK")
</pallas_src>

<mosaic_0001>
module attributes {stable_mosaic.version = 11 : i64} {
  func.func @kernel(%arg0: i32, %arg1: memref<544x128xbf16, #tpu.memory_space<vmem>>, %arg2: memref<384x128xbf16, #tpu.memory_space<vmem>>, %arg3: memref<1x128xf32, #tpu.memory_space<vmem>>, %arg4: memref<256x128xbf16, #tpu.memory_space<vmem>>, %arg5: memref<256x384xbf16, #tpu.memory_space<vmem>>) attributes {dimension_semantics = [#tpu.dimension_semantics<parallel>], iteration_bounds = array<i64: 2>, scalar_prefetch = 0 : i64, scratch_operands = 1 : i64, tpu.core_type = #tpu.core_type<tc>, window_params = [{pipeline_mode = #tpu.pipeline_mode<synchronous>, transform_indices = @transform_0, window_bounds = array<i64: 544, 128>}, {pipeline_mode = #tpu.pipeline_mode<synchronous>, transform_indices = @transform_1, window_bounds = array<i64: 384, 128>}, {pipeline_mode = #tpu.pipeline_mode<synchronous>, transform_indices = @transform_2, window_bounds = array<i64: 1, 128>}, {transform_indices = @transform_3, window_bounds = array<i64: 256, 128>}]} {
    %c256_i32 = arith.constant 256 : i32
    %0 = arith.muli %arg0, %c256_i32 : i32
    %1 = tpu.assume_multiple %0, 8 : i32
    %c0_i32 = arith.constant 0 : i32
    %2 = arith.addi %1, %c0_i32 : i32
    %3 = arith.index_cast %2 : i32 to index
    %c0 = arith.constant 0 : index
    %4 = vector.load %arg1[%3, %c0] : memref<544x128xbf16, #tpu.memory_space<vmem>>, vector<256x128xbf16>
    %c0_0 = arith.constant 0 : index
    %c0_1 = arith.constant 0 : index
    %5 = vector.load %arg5[%c0_0, %c0_1] : memref<256x384xbf16, #tpu.memory_space<vmem>>, vector<256x128xbf16>
    tpu.vector_store %arg5[%c0_0, %c0_1], %4 {strides = array<i32>} : memref<256x384xbf16, #tpu.memory_space<vmem>>, vector<256x128xbf16>,
    %c16_i32 = arith.constant 16 : i32
    %6 = arith.addi %1, %c16_i32 : i32
    %7 = arith.index_cast %6 : i32 to index
    %c0_2 = arith.constant 0 : index
    %8 = vector.load %arg1[%7, %c0_2] : memref<544x128xbf16, #tpu.memory_space<vmem>>, vector<256x128xbf16>
    %c0_3 = arith.constant 0 : index
    %c128 = arith.constant 128 : index
    %9 = vector.load %arg5[%c0_3, %c128] : memref<256x384xbf16, #tpu.memory_space<vmem>>, vector<256x128xbf16>
    tpu.vector_store %arg5[%c0_3, %c128], %8 {strides = array<i32>} : memref<256x384xbf16, #tpu.memory_space<vmem>>, vector<256x128xbf16>,
    %c32_i32 = arith.constant 32 : i32
    %10 = arith.addi %1, %c32_i32 : i32
    %11 = arith.index_cast %10 : i32 to index
    %c0_4 = arith.constant 0 : index
    %12 = vector.load %arg1[%11, %c0_4] : memref<544x128xbf16, #tpu.memory_space<vmem>>, vector<256x128xbf16>
    %c0_5 = arith.constant 0 : index
    %c256 = arith.constant 256 : index
    %13 = vector.load %arg5[%c0_5, %c256] : memref<256x384xbf16, #tpu.memory_space<vmem>>, vector<256x128xbf16>
    tpu.vector_store %arg5[%c0_5, %c256], %12 {strides = array<i32>} : memref<256x384xbf16, #tpu.memory_space<vmem>>, vector<256x128xbf16>,
    %c0_6 = arith.constant 0 : index
    %c0_7 = arith.constant 0 : index
    %14 = vector.load %arg5[%c0_6, %c0_7] : memref<256x384xbf16, #tpu.memory_space<vmem>>, vector<256x384xbf16>
    %c0_8 = arith.constant 0 : index
    %c0_9 = arith.constant 0 : index
    %15 = vector.load %arg2[%c0_8, %c0_9] : memref<384x128xbf16, #tpu.memory_space<vmem>>, vector<384x128xbf16>
    %cst = arith.constant dense<0.000000e+00> : vector<256x128xf32>
    %16 = tpu.matmul %14, %15, %cst {dimension_numbers = #tpu.dot_dimension_numbers<[1], [0], [0], [1], [0, 0, 1, 1], [], []>} : vector<256x384xbf16>, vector<384x128xbf16>, vector<256x128xf32> -> vector<256x128xf32>
    %c0_10 = arith.constant 0 : index
    %c0_11 = arith.constant 0 : index
    %17 = vector.load %arg3[%c0_10, %c0_11] : memref<1x128xf32, #tpu.memory_space<vmem>>, vector<1x128xf32>
    %18 = vector.broadcast %17 : vector<1x128xf32> to vector<256x128xf32>
    %19 = arith.addf %16, %18 : vector<256x128xf32>
    %20 = arith.truncf %19 : vector<256x128xf32> to vector<256x128xbf16>
    %c0_12 = arith.constant 0 : index
    %c0_13 = arith.constant 0 : index
    %21 = vector.load %arg4[%c0_12, %c0_13] : memref<256x128xbf16, #tpu.memory_space<vmem>>, vector<256x128xbf16>
    tpu.vector_store %arg4[%c0_12, %c0_13], %20 {strides = array<i32>} : memref<256x128xbf16, #tpu.memory_space<vmem>>, vector<256x128xbf16>,
    return
  }
  func.func @transform_0(%arg0: i32) -> (i32, i32) {
    %c0_i32 = arith.constant 0 : i32
    %c0_i32_0 = arith.constant 0 : i32
    %c0_i32_1 = arith.constant 0 : i32
    return %c0_i32, %c0_i32_0 : i32, i32
  }
  func.func @transform_1(%arg0: i32) -> (i32, i32) {
    %c0_i32 = arith.constant 0 : i32
    %c0_i32_0 = arith.constant 0 : i32
    %c0_i32_1 = arith.constant 0 : i32
    return %c0_i32, %c0_i32_0 : i32, i32
  }
  func.func @transform_2(%arg0: i32) -> (i32, i32) {
    %c0_i32 = arith.constant 0 : i32
    %c0_i32_0 = arith.constant 0 : i32
    %c0_i32_1 = arith.constant 0 : i32
    return %c0_i32, %c0_i32_0 : i32, i32
  }
  func.func @transform_3(%arg0: i32) -> (i32, i32) {
    %c0_i32 = arith.constant 0 : i32
    %c0_i32_0 = arith.constant 0 : i32
    return %arg0, %c0_i32 : i32, i32
  }
}

module attributes {stable_mosaic.version = 11 : i64} {
  func.func @kernel(%arg0: i32, %arg1: memref<112x128xbf16, #tpu.memory_space<vmem>>, %arg2: memref<384x512xbf16, #tpu.memory_space<vmem>>, %arg3: memref<1x512xf32, #tpu.memory_space<vmem>>, %arg4: memref<96x512xf32, #tpu.memory_space<vmem>>, %arg5: memref<96x384xbf16, #tpu.memory_space<vmem>>) attributes {dimension_semantics = [#tpu.dimension_semantics<parallel>], iteration_bounds = array<i64: 1>, scalar_prefetch = 0 : i64, scratch_operands = 1 : i64, tpu.core_type = #tpu.core_type<tc>, window_params = [{pipeline_mode = #tpu.pipeline_mode<synchronous>, transform_indices = @transform_0, window_bounds = array<i64: 112, 128>}, {pipeline_mode = #tpu.pipeline_mode<synchronous>, transform_indices = @transform_1, window_bounds = array<i64: 384, 512>}, {pipeline_mode = #tpu.pipeline_mode<synchronous>, transform_indices = @transform_2, window_bounds = array<i64: 1, 512>}, {transform_indices = @transform_3, window_bounds = array<i64: 96, 512>}]} {
    %c96_i32 = arith.constant 96 : i32
    %0 = arith.muli %arg0, %c96_i32 : i32
    %1 = tpu.assume_multiple %0, 8 : i32
    %c0_i32 = arith.constant 0 : i32
    %2 = arith.addi %1, %c0_i32 : i32
    %3 = arith.index_cast %2 : i32 to index
    %c0 = arith.constant 0 : index
    %4 = vector.load %arg1[%3, %c0] : memref<112x128xbf16, #tpu.memory_space<vmem>>, vector<96x128xbf16>
    %c0_0 = arith.constant 0 : index
    %c0_1 = arith.constant 0 : index
    %5 = vector.load %arg5[%c0_0, %c0_1] : memref<96x384xbf16, #tpu.memory_space<vmem>>, vector<96x128xbf16>
    tpu.vector_store %arg5[%c0_0, %c0_1], %4 {strides = array<i32>} : memref<96x384xbf16, #tpu.memory_space<vmem>>, vector<96x128xbf16>,
    %c8_i32 = arith.constant 8 : i32
    %6 = arith.addi %1, %c8_i32 : i32
    %7 = arith.index_cast %6 : i32 to index
    %c0_2 = arith.constant 0 : index
    %8 = vector.load %arg1[%7, %c0_2] : memref<112x128xbf16, #tpu.memory_space<vmem>>, vector<96x128xbf16>
    %c0_3 = arith.constant 0 : index
    %c128 = arith.constant 128 : index
    %9 = vector.load %arg5[%c0_3, %c128] : memref<96x384xbf16, #tpu.memory_space<vmem>>, vector<96x128xbf16>
    tpu.vector_store %arg5[%c0_3, %c128], %8 {strides = array<i32>} : memref<96x384xbf16, #tpu.memory_space<vmem>>, vector<96x128xbf16>,
    %c16_i32 = arith.constant 16 : i32
    %10 = arith.addi %1, %c16_i32 : i32
    %11 = arith.index_cast %10 : i32 to index
    %c0_4 = arith.constant 0 : index
    %12 = vector.load %arg1[%11, %c0_4] : memref<112x128xbf16, #tpu.memory_space<vmem>>, vector<96x128xbf16>
    %c0_5 = arith.constant 0 : index
    %c256 = arith.constant 256 : index
    %13 = vector.load %arg5[%c0_5, %c256] : memref<96x384xbf16, #tpu.memory_space<vmem>>, vector<96x128xbf16>
    tpu.vector_store %arg5[%c0_5, %c256], %12 {strides = array<i32>} : memref<96x384xbf16, #tpu.memory_space<vmem>>, vector<96x128xbf16>,
    %c0_6 = arith.constant 0 : index
    %c0_7 = arith.constant 0 : index
    %14 = vector.load %arg5[%c0_6, %c0_7] : memref<96x384xbf16, #tpu.memory_space<vmem>>, vector<96x384xbf16>
    %c0_8 = arith.constant 0 : index
    %c0_9 = arith.constant 0 : index
    %15 = vector.load %arg2[%c0_8, %c0_9] : memref<384x512xbf16, #tpu.memory_space<vmem>>, vector<384x512xbf16>
    %cst = arith.constant dense<0.000000e+00> : vector<96x512xf32>
    %16 = tpu.matmul %14, %15, %cst {dimension_numbers = #tpu.dot_dimension_numbers<[1], [0], [0], [1], [0, 0, 1, 1], [], []>} : vector<96x384xbf16>, vector<384x512xbf16>, vector<96x512xf32> -> vector<96x512xf32>
    %c0_10 = arith.constant 0 : index
    %c0_11 = arith.constant 0 : index
    %17 = vector.load %arg3[%c0_10, %c0_11] : memref<1x512xf32, #tpu.memory_space<vmem>>, vector<1x512xf32>
    %18 = vector.broadcast %17 : vector<1x512xf32> to vector<96x512xf32>
    %19 = arith.addf %16, %18 : vector<96x512xf32>
    %c0_12 = arith.constant 0 : index
    %c0_13 = arith.constant 0 : index
    %20 = vector.load %arg4[%c0_12, %c0_13] : memref<96x512xf32, #tpu.memory_space<vmem>>, vector<96x512xf32>
    tpu.vector_store %arg4[%c0_12, %c0_13], %19 {strides = array<i32>} : memref<96x512xf32, #tpu.memory_space<vmem>>, vector<96x512xf32>,
    return
  }
  func.func @transform_0(%arg0: i32) -> (i32, i32) {
    %c0_i32 = arith.constant 0 : i32
    %c0_i32_0 = arith.constant 0 : i32
    %c0_i32_1 = arith.constant 0 : i32
    return %c0_i32, %c0_i32_0 : i32, i32
  }
  func.func @transform_1(%arg0: i32) -> (i32, i32) {
    %c0_i32 = arith.constant 0 : i32
    %c0_i32_0 = arith.constant 0 : i32
    %c0_i32_1 = arith.constant 0 : i32
    return %c0_i32, %c0_i32_0 : i32, i32
  }
  func.func @transform_2(%arg0: i32) -> (i32, i32) {
    %c0_i32 = arith.constant 0 : i32
    %c0_i32_0 = arith.constant 0 : i32
    %c0_i32_1 = arith.constant 0 : i32
    return %c0_i32, %c0_i32_0 : i32, i32
  }
  func.func @transform_3(%arg0: i32) -> (i32, i32) {
    %c0_i32 = arith.constant 0 : i32
    %c0_i32_0 = arith.constant 0 : i32
    return %arg0, %c0_i32 : i32, i32
  }
}

module attributes {stable_mosaic.version = 11 : i64} {
  func.func @kernel(%arg0: i32, %arg1: memref<560x128xbf16, #tpu.memory_space<vmem>>, %arg2: memref<1x512x128xbf16, #tpu.memory_space<vmem>>, %arg3: memref<1x128xf32, #tpu.memory_space<vmem>>, %arg4: memref<256x128xbf16, #tpu.memory_space<vmem>>, %arg5: memref<256x512xbf16, #tpu.memory_space<vmem>>) attributes {dimension_semantics = [#tpu.dimension_semantics<parallel>], iteration_bounds = array<i64: 2>, scalar_prefetch = 0 : i64, scratch_operands = 1 : i64, tpu.core_type = #tpu.core_type<tc>, window_params = [{pipeline_mode = #tpu.pipeline_mode<synchronous>, transform_indices = @transform_0, window_bounds = array<i64: 560, 128>}, {transform_indices = @transform_1, window_bounds = array<i64: 1, 512, 128>}, {pipeline_mode = #tpu.pipeline_mode<synchronous>, transform_indices = @transform_2, window_bounds = array<i64: 1, 128>}, {transform_indices = @transform_3, window_bounds = array<i64: 256, 128>}]} {
    %c256_i32 = arith.constant 256 : i32
    %0 = arith.muli %arg0, %c256_i32 : i32
    %1 = tpu.assume_multiple %0, 8 : i32
    %c0_i32 = arith.constant 0 : i32
    %2 = arith.addi %1, %c0_i32 : i32
    %3 = arith.index_cast %2 : i32 to index
    %c0 = arith.constant 0 : index
    %4 = vector.load %arg1[%3, %c0] : memref<560x128xbf16, #tpu.memory_space<vmem>>, vector<256x128xbf16>
    %c0_0 = arith.constant 0 : index
    %c0_1 = arith.constant 0 : index
    %5 = vector.load %arg5[%c0_0, %c0_1] : memref<256x512xbf16, #tpu.memory_space<vmem>>, vector<256x128xbf16>
    tpu.vector_store %arg5[%c0_0, %c0_1], %4 {strides = array<i32>} : memref<256x512xbf16, #tpu.memory_space<vmem>>, vector<256x128xbf16>,
    %c16_i32 = arith.constant 16 : i32
    %6 = arith.addi %1, %c16_i32 : i32
    %7 = arith.index_cast %6 : i32 to index
    %c0_2 = arith.constant 0 : index
    %8 = vector.load %arg1[%7, %c0_2] : memref<560x128xbf16, #tpu.memory_space<vmem>>, vector<256x128xbf16>
    %c0_3 = arith.constant 0 : index
    %c128 = arith.constant 128 : index
    %9 = vector.load %arg5[%c0_3, %c128] : memref<256x512xbf16, #tpu.memory_space<vmem>>, vector<256x128xbf16>
    tpu.vector_store %arg5[%c0_3, %c128], %8 {strides = array<i32>} : memref<256x512xbf16, #tpu.memory_space<vmem>>, vector<256x128xbf16>,
    %c32_i32 = arith.constant 32 : i32
    %10 = arith.addi %1, %c32_i32 : i32
    %11 = arith.index_cast %10 : i32 to index
    %c0_4 = arith.constant 0 : index
    %12 = vector.load %arg1[%11, %c0_4] : memref<560x128xbf16, #tpu.memory_space<vmem>>, vector<256x128xbf16>
    %c0_5 = arith.constant 0 : index
    %c256 = arith.constant 256 : index
    %13 = vector.load %arg5[%c0_5, %c256] : memref<256x512xbf16, #tpu.memory_space<vmem>>, vector<256x128xbf16>
    tpu.vector_store %arg5[%c0_5, %c256], %12 {strides = array<i32>} : memref<256x512xbf16, #tpu.memory_space<vmem>>, vector<256x128xbf16>,
    %c48_i32 = arith.constant 48 : i32
    %14 = arith.addi %1, %c48_i32 : i32
    %15 = arith.index_cast %14 : i32 to index
    %c0_6 = arith.constant 0 : index
    %16 = vector.load %arg1[%15, %c0_6] : memref<560x128xbf16, #tpu.memory_space<vmem>>, vector<256x128xbf16>
    %c0_7 = arith.constant 0 : index
    %c384 = arith.constant 384 : index
    %17 = vector.load %arg5[%c0_7, %c384] : memref<256x512xbf16, #tpu.memory_space<vmem>>, vector<256x128xbf16>
    tpu.vector_store %arg5[%c0_7, %c384], %16 {strides = array<i32>} : memref<256x512xbf16, #tpu.memory_space<vmem>>, vector<256x128xbf16>,
    %c0_8 = arith.constant 0 : index
    %c0_9 = arith.constant 0 : index
    %18 = vector.load %arg5[%c0_8, %c0_9] : memref<256x512xbf16, #tpu.memory_space<vmem>>, vector<256x512xbf16>
    %c0_10 = arith.constant 0 : index
    %c0_11 = arith.constant 0 : index
    %c0_12 = arith.constant 0 : index
    %19 = vector.load %arg2[%c0_10, %c0_11, %c0_12] : memref<1x512x128xbf16, #tpu.memory_space<vmem>>, vector<1x512x128xbf16>
    %20 = vector.shape_cast %19 : vector<1x512x128xbf16> to vector<512x128xbf16>
    %cst = arith.constant dense<0.000000e+00> : vector<256x128xf32>
    %21 = tpu.matmul %18, %20, %cst {dimension_numbers = #tpu.dot_dimension_numbers<[1], [0], [0], [1], [0, 0, 1, 1], [], []>} : vector<256x512xbf16>, vector<512x128xbf16>, vector<256x128xf32> -> vector<256x128xf32>
    %c0_13 = arith.constant 0 : index
    %c0_14 = arith.constant 0 : index
    %22 = vector.load %arg3[%c0_13, %c0_14] : memref<1x128xf32, #tpu.memory_space<vmem>>, vector<1x128xf32>
    %23 = vector.broadcast %22 : vector<1x128xf32> to vector<256x128xf32>
    %24 = arith.addf %21, %23 : vector<256x128xf32>
    %25 = arith.truncf %24 : vector<256x128xf32> to vector<256x128xbf16>
    %c0_15 = arith.constant 0 : index
    %c0_16 = arith.constant 0 : index
    %26 = vector.load %arg4[%c0_15, %c0_16] : memref<256x128xbf16, #tpu.memory_space<vmem>>, vector<256x128xbf16>
    tpu.vector_store %arg4[%c0_15, %c0_16], %25 {strides = array<i32>} : memref<256x128xbf16, #tpu.memory_space<vmem>>, vector<256x128xbf16>,
    return
  }
  func.func @transform_0(%arg0: i32) -> (i32, i32) {
    %c0_i32 = arith.constant 0 : i32
    %c0_i32_0 = arith.constant 0 : i32
    %c0_i32_1 = arith.constant 0 : i32
    return %c0_i32, %c0_i32_0 : i32, i32
  }
  func.func @transform_1(%arg0: i32) -> (i32, i32, i32) {
    %c0_i32 = arith.constant 0 : i32
    %c0_i32_0 = arith.constant 0 : i32
    %c0_i32_1 = arith.constant 0 : i32
    return %arg0, %c0_i32, %c0_i32_0 : i32, i32, i32
  }
  func.func @transform_2(%arg0: i32) -> (i32, i32) {
    %c0_i32 = arith.constant 0 : i32
    %c0_i32_0 = arith.constant 0 : i32
    %c0_i32_1 = arith.constant 0 : i32
    return %c0_i32, %c0_i32_0 : i32, i32
  }
  func.func @transform_3(%arg0: i32) -> (i32, i32) {
    %c0_i32 = arith.constant 0 : i32
    %c0_i32_0 = arith.constant 0 : i32
    return %arg0, %c0_i32 : i32, i32
  }
}

</mosaic_0001>

<bundles_post_ra>
// kernel: rpn_up_forward.4
= control target key start
LH: loop header
LB: loop body
LE: loop exit
PB: predicated region body
PF: predicated region fallthrough
CT: control target
= control target key end

     0   :  { %s1784_s12 = smov 0   ;;  %s2155_s0 = inlined_call_operand.vmem [shape: bf16[544,128], index: 0, kind: input, shape index: {}]   ;;  %s2156_s1 = inlined_call_operand.vmem [shape: bf16[384,128], index: 1, kind: input, shape index: {}]   ;;  %s2157_s2 = inlined_call_operand.vmem [shape: f32[1,128], index: 2, kind: input, shape index: {}]   ;;  %s2158_s3 = inlined_call_operand.vmem [shape: bf16[512,128], index: 3, kind: output, shape index: {}]  }
   0x1 LB: > { %s1256_s13 = sadd.s32 4294967295, %s1762_s12   ;;  %p1259_p0 = scmp.ge.s32.totalorder %s1762_s12, 1  ;;  %s1762_s12 = sphi %s1784_s12, %s13_s12  }
   0x2   : > { %p127_p1 = scmp.lt.s32.totalorder %s1762_s12, 3 }
   0x4   : > { %p128_p2 = pnand %p1259_p0, %p127_p1 }
   0x5   : > { %s1262_s20 = sshll.u32 (!%p128_p2), %s1256_s13, 8  ;;  %s1260_s6 = sshll.u32 (!%p128_p2), %s1256_s13, 5 }
   0x6   : > { %131 = sbr.rel (%p128_p2) target bundleno = 366 (0x16e), region = 32  ;;  %s153_s21 = sshra.s32 (!%p128_p2), %s1262_s20, 3 }
   0x7   : > { %s221_s22 = sadd.s32 (!%p128_p2), 16, %s1262_s20  ;;  %s1263_s25 = sshll.u32 (!%p128_p2), %s153_s21, 2 }
   0x8   : > { %s222_s26 = sshra.s32 (!%p128_p2), %s221_s22, 3  ;;  %s290_s5 = sadd.s32 (!%p128_p2), 32, %s1262_s20 }
   0x9   : > { %s1264_s4 = sshll.u32 (!%p128_p2), %s222_s26, 2  ;;  %s1825_s8 = scalar_lea.vmem (!%p128_p2), %s2155_s0, %s1263_s25 }
   0xa   : > { %s291_s9 = sshra.s32 (!%p128_p2), %s290_s5, 3  ;;  %s1845_s21 = scalar_lea.vmem (!%p128_p2), %s2155_s0, %s1264_s4 }
   0xb   : > { %v1611_v0 = vld [vmem:[%s2156_s1 + $0x38] sm:$0xff]  ;;  %v1610_v3 = vld [vmem:[%s2156_s1 + $0x30] sm:$0xff]  ;;  %v1609_v6 = vld [vmem:[%s2156_s1 + $0x28] sm:$0xff]  ;;  %s1265_s14 = sshll.u32 %s291_s9, 2  ;;  %p147_p3 = scmp.lt.s32.totalorder %s1260_s6, 63 }
   0xc   : > { %v1798_v1 = vld [vmem:[%s2156_s1 + $0x78] sm:$0xff]  ;;  %875 = vmatpush.bf16.msra.mxu0 %v1611_v0  ;;  %1723 = vmatpush.bf16.msra.mxu3 %v1611_v0  ;;  %v1815_v4 = vld [vmem:[%s2156_s1 + $0x70] sm:$0xff]  ;;  %v1835_v7 = vld [vmem:[%s2156_s1 + $0x68] sm:$0xff]  ;;  %s1854_s24 = scalar_lea.vmem %s2155_s0, %s1265_s14 }
   0xd   : > { %v1803_v2 = vld [vmem:[%s2156_s1 + $0xb8] sm:$0xff]  ;;  %964 = vmatpush.bf16.msra.mxu1 %v1798_v1  ;;  %v1820_v5 = vld [vmem:[%s2156_s1 + $0xb0] sm:$0xff]  ;;  %v1840_v8 = vld [vmem:[%s2156_s1 + $0xa8] sm:$0xff]  ;;  %s2160_s6 = smov (!%p147_p3, %s1260_s6), 63 }
   0xe   : > { %1053 = vmatpush.bf16.msra.mxu2 %v1803_v2  ;;  %v157_v9 = vld [vmem:[%s1825_s8] sm:$0xf]  ;;  %v158_v10 = vld [vmem:[%s1825_s8 + $0x4] sm:$0xf]  ;;  %v1607_v19 = vld [vmem:[%s2156_s1 + $0x18] sm:$0xff]  ;;  %s1261_s13 = sshll.u32 %s2160_s6, 2 }
   0xf   : > { %v181_v11 = vld [vmem:[%s1825_s8 + $0x60] sm:$0xf]  ;;  %189 = vst [vmem:[#allocation2] sm:$0xf] %v157_v9  ;;  %v182_v12 = vld [vmem:[%s1825_s8 + $0x64] sm:$0xf]  ;;  %s2060_s10 = scalar_lea.vmem %s2158_s3, %s1261_s13 }
  0x10   : > { %876 = vmatpush.bf16.msra.mxu0 %v1610_v3  ;;  %1724 = vmatpush.bf16.msra.mxu3 %v1610_v3  ;;  %v1608_v13 = vld [vmem:[%s2156_s1 + $0x20] sm:$0xff]  ;;  %190 = vst [vmem:[#allocation2 + $0xc] sm:$0xf] %v158_v10  ;;  %v1881_v21 = vld [vmem:[%s2156_s1 + $0x58] sm:$0xff]  ;;  %v159_v23 = vld [vmem:[%s1825_s8 + $0x8] sm:$0xf] }
  0x11   : > { %965 = vmatpush.bf16.msra.mxu1 %v1815_v4  ;;  %v226_v14 = vld [vmem:[%s1845_s21] sm:$0xf]  ;;  %213 = vst [vmem:[#allocation2 + $0x120] sm:$0xf] %v181_v11  ;;  %v227_v17 = vld [vmem:[%s1845_s21 + $0x4] sm:$0xf] }
  0x12   : > { %1054 = vmatpush.bf16.msra.mxu2 %v1820_v5  ;;  %v1865_v15 = vld [vmem:[%s2156_s1 + $0x60] sm:$0xff]  ;;  %214 = vst [vmem:[#allocation2 + $0x12c] sm:$0xf] %v182_v12  ;;  %v1886_v22 = vld [vmem:[%s2156_s1 + $0x98] sm:$0xff]  ;;  %v160_v24 = vld [vmem:[%s1825_s8 + $0xc] sm:$0xf] }
  0x13   : > { %v1870_v16 = vld [vmem:[%s2156_s1 + $0xa0] sm:$0xff]  ;;  %258 = vst [vmem:[#allocation2 + $0x4] sm:$0xf] %v226_v14  ;;  %v183_v25 = vld [vmem:[%s1825_s8 + $0x68] sm:$0xf]  ;;  %v1606_v27 = vld [vmem:[%s2156_s1 + $0x10] sm:$0xff] }
  0x14   : > { %877 = vmatpush.bf16.msra.mxu0 %v1609_v6  ;;  %1725 = vmatpush.bf16.msra.mxu3 %v1609_v6  ;;  %v295_v18 = vld [vmem:[%s1854_s24] sm:$0xf]  ;;  %v296_v20 = vld [vmem:[%s1854_s24 + $0x4] sm:$0xf]  ;;  %259 = vst [vmem:[#allocation2 + $0x10] sm:$0xf] %v227_v17 }
  0x15   : > { %966 = vmatpush.bf16.msra.mxu1 %v1835_v7  ;;  %327 = vst [vmem:[#allocation2 + $0x8] sm:$0xf] %v295_v18  ;;  %v184_v26 = vld [vmem:[%s1825_s8 + $0x6c] sm:$0xf]  ;;  %v228_v28 = vld [vmem:[%s1845_s21 + $0x8] sm:$0xf] }
  0x16   : > { %1055 = vmatpush.bf16.msra.mxu2 %v1840_v8  ;;  %328 = vst [vmem:[#allocation2 + $0x14] sm:$0xf] %v296_v20  ;;  %v1903_v29 = vld [vmem:[%s2156_s1 + $0x50] sm:$0xff]  ;;  %v229_v31 = vld [vmem:[%s1845_s21 + $0xc] sm:$0xf]  ;;  %v1604_v39 = vld [vmem:[%s2156_s1] sm:$0xff] }
  0x17   : > { %191 = vst [vmem:[#allocation2 + $0x18] sm:$0xf] %v159_v23  ;;  %v1908_v30 = vld [vmem:[%s2156_s1 + $0x90] sm:$0xff]  ;;  %v297_v32 = vld [vmem:[%s1854_s24 + $0x8] sm:$0xf]  ;;  %v1937_v45 = vld [vmem:[%s2156_s1 + $0x40] sm:$0xff] }
  0x18   : > { %878 = vmatpush.bf16.msra.mxu0 %v1608_v13  ;;  %1726 = vmatpush.bf16.msra.mxu3 %v1608_v13  ;;  %192 = vst [vmem:[#allocation2 + $0x24] sm:$0xf] %v160_v24  ;;  %v298_v33 = vld [vmem:[%s1854_s24 + $0xc] sm:$0xf]  ;;  %v161_v35 = vld [vmem:[%s1825_s8 + $0x10] sm:$0xf] }
  0x19   : > { %967 = vmatpush.bf16.msra.mxu1 %v1865_v15  ;;  %215 = vst [vmem:[#allocation2 + $0x138] sm:$0xf] %v183_v25  ;;  %v1605_v34 = vld [vmem:[%s2156_s1 + $0x8] sm:$0xff]  ;;  %v162_v38 = vld [vmem:[%s1825_s8 + $0x14] sm:$0xf]  ;;  %v1942_v46 = vld [vmem:[%s2156_s1 + $0x80] sm:$0xff] }
  0x1a   : > { %1056 = vmatpush.bf16.msra.mxu2 %v1870_v16  ;;  %216 = vst [vmem:[#allocation2 + $0x144] sm:$0xf] %v184_v26  ;;  %v1922_v36 = vld [vmem:[%s2156_s1 + $0x48] sm:$0xff]  ;;  %v1268_v40 = vld [vmem:[#allocation2] sm:$0xf] }
  0x1b   : > { %260 = vst [vmem:[#allocation2 + $0x1c] sm:$0xf] %v228_v28  ;;  %v1927_v37 = vld [vmem:[%s2156_s1 + $0x88] sm:$0xff]  ;;  %v1412_v42 = vld [vmem:[#allocation2 + $0x120] sm:$0xf] }
  0x1c   : > { %879 = vmatpush.bf16.msra.mxu0 %v1607_v19  ;;  %1727 = vmatpush.bf16.msra.mxu3 %v1607_v19  ;;  %261 = vst [vmem:[#allocation2 + $0x28] sm:$0xf] %v229_v31  ;;  %v1557_v41 = vld [vmem:[#allocation2 + $0x8] sm:$0xf0]  ;;  %v185_v44 = vld [vmem:[%s1825_s8 + $0x70] sm:$0xf] }
  0x1d   : > { %968 = vmatpush.bf16.msra.mxu1 %v1881_v21  ;;  %329 = vst [vmem:[#allocation2 + $0x20] sm:$0xf] %v297_v32  ;;  %v1593_v43 = vld [vmem:[#allocation2 + $0x128] sm:$0xf0]  ;;  %v1556_v47 = vld [vmem:[#allocation2 + $0x4] sm:$0xf]  ;;  %v1269_v55 = vor.u32 %v1557_v41, %v1268_v40 }
  0x1e   : > { %1057 = vmatpush.bf16.msra.mxu2 %v1886_v22  ;;  %330 = vst [vmem:[#allocation2 + $0x2c] sm:$0xf] %v298_v33  ;;  %v1270_v48 = vld [vmem:[#allocation2 + $0xc] sm:$0xf0]  ;;  %v186_v49 = vld [vmem:[%s1825_s8 + $0x74] sm:$0xf]  ;;  %v1413_v56 = vor.u32 %v1593_v43, %v1412_v42 }
  0x1f   : > { %193 = vst [vmem:[#allocation2 + $0x30] sm:$0xf] %v161_v35  ;;  %v1276_v50 = vld [vmem:[#allocation2 + $0x8] sm:$0xf]  ;;  %v230_v51 = vld [vmem:[%s1845_s21 + $0x10] sm:$0xf]  ;;  %v1273_v58 = vor.u32 %v1556_v47, %v1270_v48 }
  0x20   : > { %880 = vmatpush.bf16.msra.mxu0 %v1606_v27  ;;  %1728 = vmatpush.bf16.msra.mxu3 %v1606_v27  ;;  %194 = vst [vmem:[#allocation2 + $0x3c] sm:$0xf] %v162_v38  ;;  %v1558_v52 = vld [vmem:[#allocation2 + $0x10] sm:$0xf0]  ;;  %v299_v54 = vld [vmem:[%s1854_s24 + $0x10] sm:$0xf] }
  0x21   : > { %969 = vmatpush.bf16.msra.mxu1 %v1903_v29  ;;  %217 = vst [vmem:[#allocation2 + $0x150] sm:$0xf] %v185_v44  ;;  %v231_v53 = vld [vmem:[%s1845_s21 + $0x14] sm:$0xf]  ;;  %v1277_v59 = vor.u32 %v1558_v52, %v1276_v50  ;;  %v163_v60 = vld [vmem:[%s1825_s8 + $0x18] sm:$0xf] }
  0x22   : > { %1058 = vmatpush.bf16.msra.mxu2 %v1908_v30  ;;  %218 = vst [vmem:[#allocation2 + $0x15c] sm:$0xf] %v186_v49  ;;  %v300_v57 = vld [vmem:[%s1854_s24 + $0x14] sm:$0xf]  ;;  %v164_v61 = vld [vmem:[%s1825_s8 + $0x1c] sm:$0xf] }
  0x23   : > { %262 = vst [vmem:[#allocation2 + $0x34] sm:$0xf] %v230_v51  ;;  %v187_v62 = vld [vmem:[%s1825_s8 + $0x78] sm:$0xf]  ;;  %v188_v63 = vld [vmem:[%s1825_s8 + $0x7c] sm:$0xf] }
  0x24   : > { %881 = vmatpush.bf16.msra.mxu0 %v1605_v34  ;;  %1729 = vmatpush.bf16.msra.mxu3 %v1605_v34  ;;  %263 = vst [vmem:[#allocation2 + $0x40] sm:$0xf] %v231_v53  ;;  %v1280_v0 = vld [vmem:[#allocation2 + $0x18] sm:$0xf]  ;;  %v1560_v3 = vld [vmem:[#allocation2 + $0x20] sm:$0xf0] }
  0x25   : > { %970 = vmatpush.bf16.msra.mxu1 %v1922_v36  ;;  %331 = vst [vmem:[#allocation2 + $0x38] sm:$0xf] %v299_v54  ;;  %v1596_v6 = vld [vmem:[#allocation2 + $0x140] sm:$0xf0]  ;;  %v232_v9 = vld [vmem:[%s1845_s21 + $0x18] sm:$0xf]  ;;  %v1281_v18 = vor.u32 %v1560_v3, %v1280_v0 }
  0x26   : > { %1059 = vmatpush.bf16.msra.mxu2 %v1927_v37  ;;  %332 = vst [vmem:[#allocation2 + $0x44] sm:$0xf] %v300_v57  ;;  %v233_v10 = vld [vmem:[%s1845_s21 + $0x1c] sm:$0xf]  ;;  %v301_v12 = vld [vmem:[%s1854_s24 + $0x18] sm:$0xf] }
  0x27   : > { %195 = vst [vmem:[#allocation2 + $0x48] sm:$0xf] %v163_v60  ;;  %v1559_v11 = vld [vmem:[#allocation2 + $0x1c] sm:$0xf]  ;;  %v1282_v13 = vld [vmem:[#allocation2 + $0x24] sm:$0xf0] }
  0x28   : > { %882 = vmatpush.bf16.msra.mxu0 %v1604_v39  ;;  %1730 = vmatpush.bf16.msra.mxu3 %v1604_v39  ;;  %196 = vst [vmem:[#allocation2 + $0x54] sm:$0xf] %v164_v61  ;;  %v302_v14 = vld [vmem:[%s1854_s24 + $0x1c] sm:$0xf]  ;;  %v1561_v17 = vld [vmem:[#allocation2 + $0x28] sm:$0xf0]  ;;  %v1285_v19 = vor.u32 %v1559_v11, %v1282_v13 }
  0x29   : > { %971 = vmatpush.bf16.msra.mxu1 %v1937_v45  ;;  %219 = vst [vmem:[#allocation2 + $0x168] sm:$0xf] %v187_v62  ;;  %v165_v23 = vld [vmem:[%s1825_s8 + $0x20] sm:$0xf]  ;;  %v166_v24 = vld [vmem:[%s1825_s8 + $0x24] sm:$0xf] }
  0x2a   : > { %1060 = vmatpush.bf16.msra.mxu2 %v1942_v46  ;;  %220 = vst [vmem:[#allocation2 + $0x174] sm:$0xf] %v188_v63  ;;  %v235_v25 = vld [vmem:[%s1845_s21 + $0x24] sm:$0xf]  ;;  %v250_v26 = vld [vmem:[%s1845_s21 + $0x60] sm:$0xf] }
  0x2b   : > { %883 = vmatmul.bf16.vlgmr.msra.gmra.mxu0 %v1269_v55  ;;  %943 = vmatmul.bf16.vlgmr.msra.gmra.mxu3 %v1413_v56  ;;  %264 = vst [vmem:[#allocation2 + $0x4c] sm:$0xf] %v232_v9  ;;  %v1292_v27 = vld [vmem:[#allocation2 + $0x30] sm:$0xf]  ;;  %v1563_v28 = vld [vmem:[#allocation2 + $0x38] sm:$0xf0] }
  0x2c   : > { %1731 = vmatpush.bf16.msrb.mxu3 %v1798_v1  ;;  %972 = vmatmul.bf16.vlgmr.msra.gmra.mxu1 %v1273_v58  ;;  %v1424_v1 = vld [vmem:[#allocation2 + $0x138] sm:$0xf]  ;;  %265 = vst [vmem:[#allocation2 + $0x58] sm:$0xf] %v233_v10  ;;  %v1436_v31 = vld [vmem:[#allocation2 + $0x150] sm:$0xf]  ;;  %v1293_v40 = vor.u32 %v1563_v28, %v1292_v27 }
  0x2d   : > { %1061 = vmatmul.bf16.vlgmr.msra.gmra.mxu2 %v1277_v59  ;;  %333 = vst [vmem:[#allocation2 + $0x50] sm:$0xf] %v301_v12  ;;  %v251_v32 = vld [vmem:[%s1845_s21 + $0x64] sm:$0xf]  ;;  %v1562_v33 = vld [vmem:[#allocation2 + $0x34] sm:$0xf] }
  0x2e   : > { %334 = vst [vmem:[#allocation2 + $0x5c] sm:$0xf] %v302_v14  ;;  %v303_v34 = vld [vmem:[%s1854_s24 + $0x20] sm:$0xf]  ;;  %v304_v38 = vld [vmem:[%s1854_s24 + $0x24] sm:$0xf] }
  0x2f   : > { %197 = vst [vmem:[#allocation2 + $0x60] sm:$0xf] %v165_v23  ;;  %v1294_v35 = vld [vmem:[#allocation2 + $0x3c] sm:$0xf0]  ;;  %v1564_v39 = vld [vmem:[#allocation2 + $0x40] sm:$0xf0] }
  0x30   : > { %1732 = vmatpush.bf16.msrb.mxu3 %v1815_v4  ;;  %v1288_v4 = vld [vmem:[#allocation2 + $0x20] sm:$0xf]  ;;  %198 = vst [vmem:[#allocation2 + $0x6c] sm:$0xf] %v166_v24  ;;  %v1297_v41 = vor.u32 %v1562_v33, %v1294_v35  ;;  %v167_v43 = vld [vmem:[%s1825_s8 + $0x28] sm:$0xf] }
  0x31   : > { %v1289_v20 = vor.u32 %v1561_v17, %v1288_v4  ;;  %267 = vst [vmem:[#allocation2 + $0x70] sm:$0xf] %v235_v25  ;;  %v168_v44 = vld [vmem:[%s1825_s8 + $0x2c] sm:$0xf]  ;;  %v252_v48 = vld [vmem:[%s1845_s21 + $0x68] sm:$0xf] }
  0x32   : > { %282 = vst [vmem:[#allocation2 + $0x124] sm:$0xf] %v250_v26  ;;  %v237_v47 = vld [vmem:[%s1845_s21 + $0x2c] sm:$0xf]  ;;  %v1566_v49 = vld [vmem:[#allocation2 + $0x50] sm:$0xf0] }
  0x33   : > { %283 = vst [vmem:[#allocation2 + $0x130] sm:$0xf] %v251_v32  ;;  %v1448_v50 = vld [vmem:[#allocation2 + $0x168] sm:$0xf]  ;;  %v1602_v51 = vld [vmem:[#allocation2 + $0x170] sm:$0xf0] }
  0x34   : > { %1733 = vmatpush.bf16.msrb.mxu3 %v1835_v7  ;;  %v1425_v7 = vor.u32 %v1596_v6, %v1424_v1  ;;  %335 = vst [vmem:[#allocation2 + $0x68] sm:$0xf] %v303_v34  ;;  %v253_v52 = vld [vmem:[%s1845_s21 + $0x6c] sm:$0xf]  ;;  %v305_v54 = vld [vmem:[%s1854_s24 + $0x28] sm:$0xf]  ;;  %v1449_v58 = vor.u32 %v1602_v51, %v1448_v50 }
  0x35   : > { %336 = vst [vmem:[#allocation2 + $0x74] sm:$0xf] %v304_v38  ;;  %v1565_v53 = vld [vmem:[#allocation2 + $0x4c] sm:$0xf]  ;;  %v1306_v55 = vld [vmem:[#allocation2 + $0x54] sm:$0xf0] }
  0x36   : > { %199 = vst [vmem:[#allocation2 + $0x78] sm:$0xf] %v167_v43  ;;  %v1312_v56 = vld [vmem:[#allocation2 + $0x50] sm:$0xf]  ;;  %v1567_v57 = vld [vmem:[#allocation2 + $0x58] sm:$0xf0]  ;;  %v1309_v59 = vor.u32 %v1565_v53, %v1306_v55 }
  0x37   : > { %200 = vst [vmem:[#allocation2 + $0x84] sm:$0xf] %v168_v44  ;;  %v1313_v60 = vor.u32 %v1567_v57, %v1312_v56  ;;  %v169_v61 = vld [vmem:[%s1825_s8 + $0x30] sm:$0xf]  ;;  %v170_v62 = vld [vmem:[%s1825_s8 + $0x34] sm:$0xf] }
  0x38   : > { %1734 = vmatpush.bf16.msrb.mxu3 %v1865_v15  ;;  %v234_v15 = vld [vmem:[%s1845_s21 + $0x20] sm:$0xf]  ;;  %269 = vst [vmem:[#allocation2 + $0x88] sm:$0xf] %v237_v47  ;;  %v239_v63 = vld [vmem:[%s1845_s21 + $0x34] sm:$0xf] }
  0x39   : > { %266 = vst [vmem:[#allocation2 + $0x64] sm:$0xf] %v234_v15  ;;  %v254_v0 = vld [vmem:[%s1845_s21 + $0x70] sm:$0xf]  ;;  %v1316_v3 = vld [vmem:[#allocation2 + $0x60] sm:$0xf] }
  0x3a   : > { %284 = vst [vmem:[#allocation2 + $0x13c] sm:$0xf] %v252_v48  ;;  %v255_v1 = vld [vmem:[%s1845_s21 + $0x74] sm:$0xf]  ;;  %v1318_v9 = vld [vmem:[#allocation2 + $0x6c] sm:$0xf0] }
  0x3b   : > { %888 = vmatmul.bf16.gmra.mxu0 %v1281_v18  ;;  %948 = vmatmul.bf16.gmra.mxu3 %v1425_v7  ;;  %285 = vst [vmem:[#allocation2 + $0x148] sm:$0xf] %v253_v52  ;;  %v1592_v10 = vld [vmem:[#allocation2 + $0x124] sm:$0xf]  ;;  %v307_v11 = vld [vmem:[%s1854_s24 + $0x30] sm:$0xf] }
  0x3c   : > { %1735 = vmatpush.bf16.msrb.mxu3 %v1881_v21  ;;  %977 = vmatmul.bf16.gmra.mxu1 %v1285_v19  ;;  %v1599_v21 = vld [vmem:[#allocation2 + $0x158] sm:$0xf0]  ;;  %337 = vst [vmem:[#allocation2 + $0x80] sm:$0xf] %v305_v54  ;;  %v1414_v12 = vld [vmem:[#allocation2 + $0x12c] sm:$0xf0] }
  0x3d   : > { %1066 = vmatmul.bf16.gmra.mxu2 %v1289_v20  ;;  %201 = vst [vmem:[#allocation2 + $0x90] sm:$0xf] %v169_v61  ;;  %v1324_v13 = vld [vmem:[#allocation2 + $0x68] sm:$0xf]  ;;  %v1570_v14 = vld [vmem:[#allocation2 + $0x70] sm:$0xf0]  ;;  %v1417_v4 = vor.u32 %v1592_v10, %v1414_v12 }
  0x3e   : > { %202 = vst [vmem:[#allocation2 + $0x9c] sm:$0xf] %v170_v62  ;;  %v1325_v18 = vor.u32 %v1570_v14, %v1324_v13  ;;  %v171_v7 = vld [vmem:[%s1825_s8 + $0x38] sm:$0xf]  ;;  %v172_v19 = vld [vmem:[%s1825_s8 + $0x3c] sm:$0xf] }
  0x3f   : > { %271 = vst [vmem:[#allocation2 + $0xa0] sm:$0xf] %v239_v63  ;;  %v241_v20 = vld [vmem:[%s1845_s21 + $0x3c] sm:$0xf]  ;;  %v256_v23 = vld [vmem:[%s1845_s21 + $0x78] sm:$0xf] }
  0x40   : > { %1736 = vmatpush.bf16.msrb.mxu3 %v1903_v29  ;;  %v1300_v29 = vld [vmem:[#allocation2 + $0x38] sm:$0xf]  ;;  %v1568_v6 = vld [vmem:[#allocation2 + $0x64] sm:$0xf]  ;;  %286 = vst [vmem:[#allocation2 + $0x154] sm:$0xf] %v254_v0 }
  0x41   : > { %v1301_v42 = vor.u32 %v1564_v39, %v1300_v29  ;;  %287 = vst [vmem:[#allocation2 + $0x160] sm:$0xf] %v255_v1  ;;  %v1321_v17 = vor.u32 %v1568_v6, %v1318_v9  ;;  %v1328_v24 = vld [vmem:[#allocation2 + $0x78] sm:$0xf]  ;;  %v1572_v15 = vld [vmem:[#allocation2 + $0x80] sm:$0xf0] }
  0x42   : > { %339 = vst [vmem:[#allocation2 + $0x98] sm:$0xf] %v307_v11  ;;  %v257_v25 = vld [vmem:[%s1845_s21 + $0x7c] sm:$0xf]  ;;  %v1330_v27 = vld [vmem:[#allocation2 + $0x84] sm:$0xf0]  ;;  %v1329_v35 = vor.u32 %v1572_v15, %v1328_v24 }
  0x43   : > { %203 = vst [vmem:[#allocation2 + $0xa8] sm:$0xf] %v171_v7  ;;  %v1595_v28 = vld [vmem:[#allocation2 + $0x13c] sm:$0xf]  ;;  %v1336_v33 = vld [vmem:[#allocation2 + $0x80] sm:$0xf] }
  0x44   : > { %1737 = vmatpush.bf16.msrb.mxu3 %v1922_v36  ;;  %v1437_v36 = vor.u32 %v1599_v21, %v1436_v31  ;;  %204 = vst [vmem:[#allocation2 + $0xb4] sm:$0xf] %v172_v19  ;;  %v309_v31 = vld [vmem:[%s1854_s24 + $0x38] sm:$0xf]  ;;  %v1426_v21 = vld [vmem:[#allocation2 + $0x144] sm:$0xf0] }
  0x45   : > { %273 = vst [vmem:[#allocation2 + $0xb8] sm:$0xf] %v241_v20  ;;  %v310_v32 = vld [vmem:[%s1854_s24 + $0x3c] sm:$0xf]  ;;  %v1429_v38 = vor.u32 %v1595_v28, %v1426_v21  ;;  %v312_v51 = vld [vmem:[%s1854_s24 + $0x44] sm:$0xf] }
  0x46   : > { %288 = vst [vmem:[#allocation2 + $0x16c] sm:$0xf] %v256_v23  ;;  %v1575_v43 = vld [vmem:[#allocation2 + $0x98] sm:$0xf0]  ;;  %v1342_v48 = vld [vmem:[#allocation2 + $0x9c] sm:$0xf0] }
  0x47   : > { %289 = vst [vmem:[#allocation2 + $0x178] sm:$0xf] %v257_v25  ;;  %v1598_v44 = vld [vmem:[#allocation2 + $0x154] sm:$0xf]  ;;  %v319_v53 = vld [vmem:[%s1854_s24 + $0x60] sm:$0xf] }
  0x48   : > { %1738 = vmatpush.bf16.msrb.mxu3 %v1937_v45  ;;  %v236_v45 = vld [vmem:[%s1845_s21 + $0x28] sm:$0xf]  ;;  %341 = vst [vmem:[#allocation2 + $0xb0] sm:$0xf] %v309_v31  ;;  %v320_v54 = vld [vmem:[%s1854_s24 + $0x64] sm:$0xf] }
  0x49   : > { %268 = vst [vmem:[#allocation2 + $0x7c] sm:$0xf] %v236_v45  ;;  %v243_v45 = vld [vmem:[%s1845_s21 + $0x44] sm:$0xf]  ;;  %v1348_v50 = vld [vmem:[#allocation2 + $0x98] sm:$0xf] }
  0x4a   : > { %342 = vst [vmem:[#allocation2 + $0xbc] sm:$0xf] %v310_v32  ;;  %v314_v6 = vld [vmem:[%s1854_s24 + $0x4c] sm:$0xf]  ;;  %v321_v10 = vld [vmem:[%s1854_s24 + $0x68] sm:$0xf] }
  0x4b   : > { %893 = vmatmul.bf16.gmra.mxu0 %v1293_v40  ;;  %953 = vmatmul.bf16.gmra.mxu3 %v1437_v36  ;;  %v173_v40 = vld [vmem:[%s1825_s8 + $0x40] sm:$0xf]  ;;  %v174_v36 = vld [vmem:[%s1825_s8 + $0x44] sm:$0xf]  ;;  %275 = vst [vmem:[#allocation2 + $0xd0] sm:$0xf] %v243_v45 }
  0x4c   : > { %1739 = vmatpush.bf16.msra.mxu3 %v1803_v2  ;;  %982 = vmatmul.bf16.gmra.mxu1 %v1297_v41  ;;  %v1304_v2 = vld [vmem:[#allocation2 + $0x48] sm:$0xf]  ;;  %v242_v41 = vld [vmem:[%s1845_s21 + $0x40] sm:$0xf]  ;;  %205 = vst [vmem:[#allocation2 + $0xc0] sm:$0xf] %v173_v40 }
  0x4d   : > { %1071 = vmatmul.bf16.gmra.mxu2 %v1301_v42  ;;  %v1340_v42 = vld [vmem:[#allocation2 + $0x90] sm:$0xf]  ;;  %206 = vst [vmem:[#allocation2 + $0xcc] sm:$0xf] %v174_v36  ;;  %v1578_v61 = vld [vmem:[#allocation2 + $0xb0] sm:$0xf0] }
  0x4e   : > { %274 = vst [vmem:[#allocation2 + $0xc4] sm:$0xf] %v242_v41  ;;  %v1341_v55 = vor.u32 %v1575_v43, %v1340_v42  ;;  %v1601_v62 = vld [vmem:[#allocation2 + $0x16c] sm:$0xf]  ;;  %v1354_v0 = vld [vmem:[#allocation2 + $0xb4] sm:$0xf0] }
  0x4f   : > { %344 = vst [vmem:[#allocation2 + $0xd4] sm:$0xf] %v312_v51  ;;  %v1360_v1 = vld [vmem:[#allocation2 + $0xb0] sm:$0xf]  ;;  %v322_v11 = vld [vmem:[%s1854_s24 + $0x6c] sm:$0xf] }
  0x50   : > { %1740 = vmatpush.bf16.msra.mxu3 %v1820_v5  ;;  %v306_v5 = vld [vmem:[%s1854_s24 + $0x2c] sm:$0xf]  ;;  %v1571_v26 = vld [vmem:[#allocation2 + $0x7c] sm:$0xf]  ;;  %351 = vst [vmem:[#allocation2 + $0x128] sm:$0xf] %v319_v53 }
  0x51   : > { %338 = vst [vmem:[#allocation2 + $0x8c] sm:$0xf] %v306_v5  ;;  %v1333_v29 = vor.u32 %v1571_v26, %v1330_v27  ;;  %v1579_v9 = vld [vmem:[#allocation2 + $0xb8] sm:$0xf0]  ;;  %v247_v19 = vld [vmem:[%s1845_s21 + $0x54] sm:$0xf] }
  0x52   : > { %352 = vst [vmem:[#allocation2 + $0x134] sm:$0xf] %v320_v54  ;;  %v1361_v14 = vor.u32 %v1579_v9, %v1360_v1  ;;  %v1366_v20 = vld [vmem:[#allocation2 + $0xcc] sm:$0xf0]  ;;  %v316_v26 = vld [vmem:[%s1854_s24 + $0x54] sm:$0xf] }
  0x53   : > { %346 = vst [vmem:[#allocation2 + $0xec] sm:$0xf] %v314_v6  ;;  %v315_v15 = vld [vmem:[%s1854_s24 + $0x50] sm:$0xf]  ;;  %v324_v31 = vld [vmem:[%s1854_s24 + $0x74] sm:$0xf] }
  0x54   : > { %1741 = vmatpush.bf16.msra.mxu3 %v1840_v8  ;;  %v1305_v8 = vor.u32 %v1566_v49, %v1304_v2  ;;  %v1438_v2 = vld [vmem:[#allocation2 + $0x15c] sm:$0xf0]  ;;  %353 = vst [vmem:[#allocation2 + $0x140] sm:$0xf] %v321_v10  ;;  %v1581_v7 = vld [vmem:[#allocation2 + $0xc8] sm:$0xf0] }
  0x55   : > { %v311_v49 = vld [vmem:[%s1854_s24 + $0x40] sm:$0xf]  ;;  %v1441_v5 = vor.u32 %v1598_v44, %v1438_v2  ;;  %354 = vst [vmem:[#allocation2 + $0x14c] sm:$0xf] %v322_v11  ;;  %v323_v28 = vld [vmem:[%s1854_s24 + $0x70] sm:$0xf] }
  0x56   : > { %343 = vst [vmem:[#allocation2 + $0xc8] sm:$0xf] %v311_v49  ;;  %v1582_v27 = vld [vmem:[#allocation2 + $0xd0] sm:$0xf0]  ;;  %v179_v43 = vld [vmem:[%s1825_s8 + $0x58] sm:$0xf] }
  0x57   : > { %v1420_v24 = vld [vmem:[#allocation2 + $0x128] sm:$0xf]  ;;  %279 = vst [vmem:[#allocation2 + $0x100] sm:$0xf] %v247_v19  ;;  %v180_v44 = vld [vmem:[%s1825_s8 + $0x5c] sm:$0xf] }
  0x58   : > { %1742 = vmatpush.bf16.msra.mxu3 %v1870_v16  ;;  %v238_v16 = vld [vmem:[%s1845_s21 + $0x30] sm:$0xf]  ;;  %v1573_v34 = vld [vmem:[#allocation2 + $0x88] sm:$0xf0]  ;;  %347 = vst [vmem:[#allocation2 + $0xf8] sm:$0xf] %v315_v15 }
  0x59   : > { %270 = vst [vmem:[#allocation2 + $0x94] sm:$0xf] %v238_v16  ;;  %v1337_v39 = vor.u32 %v1573_v34, %v1336_v33  ;;  %v245_v16 = vld [vmem:[%s1845_s21 + $0x4c] sm:$0xf]  ;;  %v1594_v25 = vld [vmem:[#allocation2 + $0x130] sm:$0xf0] }
  0x5a   : > { %277 = vst [vmem:[#allocation2 + $0xe8] sm:$0xf] %v245_v16  ;;  %v1421_v32 = vor.u32 %v1594_v25, %v1420_v24  ;;  %v248_v45 = vld [vmem:[%s1845_s21 + $0x58] sm:$0xf]  ;;  %v249_v49 = vld [vmem:[%s1845_s21 + $0x5c] sm:$0xf] }
  0x5b   : > { %898 = vmatmul.bf16.gmra.mxu0 %v1305_v8  ;;  %958 = vmatmul.bf16.gmra.mxu3 %v1449_v58  ;;  %v175_v8 = vld [vmem:[%s1825_s8 + $0x48] sm:$0xf]  ;;  %v176_v58 = vld [vmem:[%s1825_s8 + $0x4c] sm:$0xf]  ;;  %348 = vst [vmem:[#allocation2 + $0x104] sm:$0xf] %v316_v26 }
  0x5c   : > { %1743 = vmatpush.bf16.msra.mxu3 %v1886_v22  ;;  %987 = vmatmul.bf16.gmra.mxu1 %v1309_v59  ;;  %v1569_v22 = vld [vmem:[#allocation2 + $0x68] sm:$0xf0]  ;;  %v244_v59 = vld [vmem:[%s1845_s21 + $0x48] sm:$0xf]  ;;  %207 = vst [vmem:[#allocation2 + $0xd8] sm:$0xf] %v175_v8 }
  0x5d   : > { %1076 = vmatmul.bf16.gmra.mxu2 %v1313_v60  ;;  %v1352_v60 = vld [vmem:[#allocation2 + $0xa8] sm:$0xf]  ;;  %208 = vst [vmem:[#allocation2 + $0xe4] sm:$0xf] %v176_v58  ;;  %v1432_v53 = vld [vmem:[#allocation2 + $0x140] sm:$0xf] }
  0x5e   : > { %276 = vst [vmem:[#allocation2 + $0xdc] sm:$0xf] %v244_v59  ;;  %v1353_v12 = vor.u32 %v1578_v61, %v1352_v60  ;;  %v1372_v23 = vld [vmem:[#allocation2 + $0xc8] sm:$0xf]  ;;  %v317_v54 = vld [vmem:[%s1854_s24 + $0x58] sm:$0xf] }
  0x5f   : > { %355 = vst [vmem:[#allocation2 + $0x158] sm:$0xf] %v323_v28  ;;  %v325_v8 = vld [vmem:[%s1854_s24 + $0x78] sm:$0xf]  ;;  %v326_v60 = vld [vmem:[%s1854_s24 + $0x7c] sm:$0xf] }
  0x60   : > { %1744 = vmatpush.bf16.msra.mxu3 %v1908_v30  ;;  %v308_v30 = vld [vmem:[%s1854_s24 + $0x34] sm:$0xf]  ;;  %356 = vst [vmem:[#allocation2 + $0x164] sm:$0xf] %v324_v31 }
  0x61   : > { %340 = vst [vmem:[#allocation2 + $0xa4] sm:$0xf] %v308_v30  ;;  %v1574_v47 = vld [vmem:[#allocation2 + $0x94] sm:$0xf]  ;;  %v1378_v51 = vld [vmem:[#allocation2 + $0xe4] sm:$0xf0] }
  0x62   : > { %v1345_v56 = vor.u32 %v1574_v47, %v1342_v48  ;;  %211 = vst [vmem:[#allocation2 + $0x108] sm:$0xf] %v179_v43 }
  0x63   : > { %v1376_v48 = vld [vmem:[#allocation2 + $0xd8] sm:$0xf]  ;;  %212 = vst [vmem:[#allocation2 + $0x114] sm:$0xf] %v180_v44 }
  0x64   : > { %1745 = vmatpush.bf16.msra.mxu3 %v1927_v37  ;;  %v1317_v37 = vor.u32 %v1569_v22, %v1316_v3  ;;  %v1450_v3 = vld [vmem:[#allocation2 + $0x174] sm:$0xf0]  ;;  %v313_v22 = vld [vmem:[%s1854_s24 + $0x48] sm:$0xf]  ;;  %v1584_v2 = vld [vmem:[#allocation2 + $0xe0] sm:$0xf0] }
  0x65   : > { %345 = vst [vmem:[#allocation2 + $0xe0] sm:$0xf] %v313_v22  ;;  %v1453_v30 = vor.u32 %v1601_v62, %v1450_v3  ;;  %v1377_v62 = vor.u32 %v1584_v2, %v1376_v48 }
  0x66   : > { %280 = vst [vmem:[#allocation2 + $0x10c] sm:$0xf] %v248_v45 }
  0x67   : > { %281 = vst [vmem:[#allocation2 + $0x118] sm:$0xf] %v249_v49  ;;  %v1600_v19 = vld [vmem:[#allocation2 + $0x160] sm:$0xf0] }
  0x68   : > { %1746 = vmatpush.bf16.msra.mxu3 %v1942_v46  ;;  %v240_v46 = vld [vmem:[%s1845_s21 + $0x38] sm:$0xf]  ;;  %v1576_v52 = vld [vmem:[#allocation2 + $0xa0] sm:$0xf0]  ;;  %349 = vst [vmem:[#allocation2 + $0x110] sm:$0xf] %v317_v54 }
  0x69   : > { %272 = vst [vmem:[#allocation2 + $0xac] sm:$0xf] %v240_v46  ;;  %v1349_v57 = vor.u32 %v1576_v52, %v1348_v50  ;;  %v1580_v46 = vld [vmem:[#allocation2 + $0xc4] sm:$0xf]  ;;  %v1583_v50 = vld [vmem:[#allocation2 + $0xdc] sm:$0xf] }
  0x6a   : > { %v1369_v34 = vor.u32 %v1580_v46, %v1366_v20  ;;  %v1381_v22 = vor.u32 %v1583_v50, %v1378_v51  ;;  %357 = vst [vmem:[#allocation2 + $0x170] sm:$0xf] %v325_v8  ;;  %v1390_v46 = vld [vmem:[#allocation2 + $0xfc] sm:$0xf0]  ;;  %v1396_v20 = vld [vmem:[#allocation2 + $0xf8] sm:$0xf] }
  0x6b   : > { %903 = vmatmul.bf16.gmra.mxu0 %v1317_v37  ;;  %1032 = vmatmul.bf16.vlgmr.msrb.gmra.mxu3 %v1417_v4  ;;  %v177_v37 = vld [vmem:[%s1825_s8 + $0x50] sm:$0xf]  ;;  %v178_v4 = vld [vmem:[%s1825_s8 + $0x54] sm:$0xf]  ;;  %358 = vst [vmem:[#allocation2 + $0x17c] sm:$0xf] %v326_v60 }
  0x6c   : > { %992 = vmatmul.bf16.gmra.mxu1 %v1321_v17  ;;  %v246_v17 = vld [vmem:[%s1845_s21 + $0x50] sm:$0xf]  ;;  %209 = vst [vmem:[#allocation2 + $0xf0] sm:$0xf] %v177_v37  ;;  %v1384_v52 = vld [vmem:[#allocation2 + $0xe0] sm:$0xf] }
  0x6d   : > { %1081 = vmatmul.bf16.gmra.mxu2 %v1325_v18  ;;  %v1364_v18 = vld [vmem:[#allocation2 + $0xc0] sm:$0xf]  ;;  %210 = vst [vmem:[#allocation2 + $0xfc] sm:$0xf] %v178_v4  ;;  %v1400_v44 = vld [vmem:[#allocation2 + $0x108] sm:$0xf] }
  0x6e   : > { %278 = vst [vmem:[#allocation2 + $0xf4] sm:$0xf] %v246_v17  ;;  %v1365_v21 = vor.u32 %v1581_v7, %v1364_v18  ;;  %v1444_v7 = vld [vmem:[#allocation2 + $0x158] sm:$0xf]  ;;  %v1590_v45 = vld [vmem:[#allocation2 + $0x110] sm:$0xf0] }
  0x6f   : > { %v1589_v48 = vld [vmem:[#allocation2 + $0x10c] sm:$0xf]  ;;  %v1402_v50 = vld [vmem:[#allocation2 + $0x114] sm:$0xf0]  ;;  %v1408_v51 = vld [vmem:[#allocation2 + $0x110] sm:$0xf] }
  0x70   : > { %v1577_v63 = vld [vmem:[#allocation2 + $0xac] sm:$0xf]  ;;  %v1405_v60 = vor.u32 %v1589_v48, %v1402_v50 }
  0x71   : > { %v1357_v13 = vor.u32 %v1577_v63, %v1354_v0  ;;  %v1456_v2 = vld [vmem:[#allocation2 + $0x170] sm:$0xf] }
  0x72   : > { %v1603_v49 = vld [vmem:[#allocation2 + $0x178] sm:$0xf0] }
  0x73   : > { %v1388_v37 = vld [vmem:[#allocation2 + $0xf0] sm:$0xf] }
  0x74   : > { %v1587_v4 = vld [vmem:[#allocation2 + $0xf8] sm:$0xf0] }
  0x75   : > { %v1586_v18 = vld [vmem:[#allocation2 + $0xf4] sm:$0xf]  ;;  %v1389_v26 = vor.u32 %v1587_v4, %v1388_v37 }
  0x7b   : > { %908 = vmatmul.bf16.gmra.mxu0 %v1329_v35  ;;  %1037 = vmatmul.bf16.gmra.mxu3 %v1429_v38  ;;  %v1373_v35 = vor.u32 %v1582_v27, %v1372_v23  ;;  %v1588_v23 = vld [vmem:[#allocation2 + $0x100] sm:$0xf0]  ;;  %v1445_v27 = vor.u32 %v1600_v19, %v1444_v7 }
  0x7c   : > { %997 = vmatmul.bf16.gmra.mxu1 %v1333_v29  ;;  %v2038_v29 = vld [vmem:[%s2157_s2] ss:$0 sm:$0xff] }
  0x7d   : > { %1086 = vmatmul.bf16.gmra.mxu2 %v1337_v39 }
  0x8b   : > { %913 = vmatmul.bf16.gmra.mxu0 %v1341_v55  ;;  %1042 = vmatmul.bf16.gmra.mxu3 %v1441_v5  ;;  %v1597_v5 = vld [vmem:[#allocation2 + $0x148] sm:$0xf0] }
  0x8c   : > { %1002 = vmatmul.bf16.gmra.mxu1 %v1345_v56  ;;  %v318_v56 = vld [vmem:[%s1854_s24 + $0x5c] sm:$0xf]  ;;  %v1433_v16 = vor.u32 %v1597_v5, %v1432_v53  ;;  %v1401_v5 = vor.u32 %v1590_v45, %v1400_v44 }
  0x8d   : > { %1091 = vmatmul.bf16.gmra.mxu2 %v1349_v57  ;;  %v1585_v57 = vld [vmem:[#allocation2 + $0xe8] sm:$0xf0]  ;;  %350 = vst [vmem:[#allocation2 + $0x11c] sm:$0xf] %v318_v56  ;;  %v1457_v56 = vor.u32 %v1603_v49, %v1456_v2 }
  0x8e   : > { %v1385_v1 = vor.u32 %v1585_v57, %v1384_v52 }
  0x94   : > { %v1591_v52 = vld [vmem:[#allocation2 + $0x118] sm:$0xf0] }
  0x9b   : > { %918 = vmatmul.bf16.gmra.mxu0 %v1353_v12  ;;  %1047 = vmatmul.bf16.gmra.mxu3 %v1453_v30 }
  0x9c   : > { %1007 = vmatmul.bf16.gmra.mxu1 %v1357_v13 }
  0x9d   : > { %1096 = vmatmul.bf16.gmra.mxu2 %v1361_v14 }
  0xa8   : > { %v884_v33 = vpop.f32.mrf.mxu0 }
  0xa9   : > { %v973_v38 = vpop.f32.mrf.mxu1  ;;  %v885_v36 = vadd.f32 %v2038_v29, %v884_v33  ;;  %v1397_v33 = vor.u32 %v1588_v23, %v1396_v20 }
  0xab   : > { %923 = vmatmul.bf16.gmra.mxu0 %v1365_v21  ;;  %1121 = vmatmul.bf16.vlgmr.msra.gmra.mxu3 %v1421_v32  ;;  %v974_v55 = vadd.f32 %v973_v38, %v885_v36  ;;  %v1393_v32 = vor.u32 %v1586_v18, %v1390_v46 }
  0xac   : > { %1012 = vmatmul.bf16.gmra.mxu1 %v1369_v34 }
  0xad   : > { %1101 = vmatmul.bf16.gmra.mxu2 %v1373_v35 }
  0xae   : > { %v2040_v39 = vpop.f32.mrf.mxu3 }
  0xaf   : > { %v945_v18 = vadd.f32 %v2038_v29, %v2040_v39 }
  0xb0   : > { %v1062_v40 = vpop.f32.mrf.mxu2  ;;  %v886_v41 = vpop.f32.mrf.mxu0 }
  0xb1   : > { %v975_v42 = vpop.f32.mrf.mxu1  ;;  %v887_v47 = vadd.f32 %v2038_v29, %v886_v41  ;;  %v1063_v63 = vadd.f32 %v1062_v40, %v974_v55 }
  0xb3   : > { %v976_v58 = vadd.f32 %v975_v42, %v887_v47 }
  0xb6   : > { %v2053_v59 = vpop.f32.mrf.mxu3 }
  0xb8   : > { %v1064_v61 = vpop.f32.mrf.mxu2  ;;  %v889_v3 = vpop.f32.mrf.mxu0 }
  0xb9   : > { %v1065_v0 = vadd.f32 %v1064_v61, %v976_v58  ;;  %v978_v6 = vpop.f32.mrf.mxu1  ;;  %v890_v12 = vadd.f32 %v2038_v29, %v889_v3  ;;  %v1409_v61 = vor.u32 %v1591_v52, %v1408_v51 }
  0xbb   : > { %v1631_v9 = vpack.c.bf16 %v1065_v0, %v1063_v63  ;;  %928 = vmatmul.bf16.gmra.mxu0 %v1377_v62  ;;  %1126 = vmatmul.bf16.gmra.mxu3 %v1433_v16  ;;  %v979_v17 = vadd.f32 %v978_v6, %v890_v12 }
  0xbc   : > { %1017 = vmatmul.bf16.gmra.mxu1 %v1381_v22 }
  0xbd   : > { %1632 = vst [vmem:[%s2060_s10] sm:$0xff] %v1631_v9   ;;  %1106 = vmatmul.bf16.gmra.mxu2 %v1385_v1 }
  0xbe   : > { %v2063_v10 = vpop.f32.mrf.mxu3 }
  0xc0   : > { %v1067_v11 = vpop.f32.mrf.mxu2  ;;  %v891_v30 = vpop.f32.mrf.mxu0 }
  0xc1   : > { %v980_v13 = vpop.f32.mrf.mxu1  ;;  %v892_v14 = vadd.f32 %v2038_v29, %v891_v30  ;;  %v1068_v28 = vadd.f32 %v1067_v11, %v979_v17 }
  0xc3   : > { %v981_v24 = vadd.f32 %v980_v13, %v892_v14 }
  0xc6   : > { %v2067_v15 = vpop.f32.mrf.mxu3 }
  0xc8   : > { %v1069_v25 = vpop.f32.mrf.mxu2  ;;  %v894_v21 = vpop.f32.mrf.mxu0 }
  0xc9   : > { %v1070_v31 = vadd.f32 %v1069_v25, %v981_v24  ;;  %v983_v34 = vpop.f32.mrf.mxu1  ;;  %v895_v36 = vadd.f32 %v2038_v29, %v894_v21 }
  0xcb   : > { %v1636_v35 = vpack.c.bf16 %v1070_v31, %v1068_v28  ;;  %933 = vmatmul.bf16.gmra.mxu0 %v1389_v26  ;;  %1131 = vmatmul.bf16.gmra.mxu3 %v1445_v27  ;;  %v984_v47 = vadd.f32 %v983_v34, %v895_v36 }
  0xcc   : > { %1022 = vmatmul.bf16.gmra.mxu1 %v1393_v32 }
  0xcd   : > { %1708 = vst [vmem:[%s2060_s10 + $0x8] sm:$0xff] %v1636_v35   ;;  %1111 = vmatmul.bf16.gmra.mxu2 %v1397_v33  ;;  %v950_v35 = vadd.f32 %v2038_v29, %v2063_v10 }
  0xce   : > { %v2070_v38 = vpop.f32.mrf.mxu3 }
  0xd0   : > { %v1072_v40 = vpop.f32.mrf.mxu2  ;;  %v896_v41 = vpop.f32.mrf.mxu0 }
  0xd1   : > { %v985_v42 = vpop.f32.mrf.mxu1  ;;  %v897_v43 = vadd.f32 %v2038_v29, %v896_v41  ;;  %v1073_v57 = vadd.f32 %v1072_v40, %v984_v47 }
  0xd3   : > { %v986_v53 = vadd.f32 %v985_v42, %v897_v43 }
  0xd6   : > { %v2074_v54 = vpop.f32.mrf.mxu3 }
  0xd8   : > { %v1074_v55 = vpop.f32.mrf.mxu2  ;;  %v899_v58 = vpop.f32.mrf.mxu0 }
  0xd9   : > { %v1075_v8 = vadd.f32 %v1074_v55, %v986_v53  ;;  %v988_v62 = vpop.f32.mrf.mxu1  ;;  %v900_v3 = vadd.f32 %v2038_v29, %v899_v58  ;;  %v955_v55 = vadd.f32 %v2038_v29, %v2070_v38 }
  0xdb   : > { %v1641_v16 = vpack.c.bf16 %v1075_v8, %v1073_v57  ;;  %938 = vmatmul.bf16.gmra.mxu0 %v1401_v5  ;;  %1136 = vmatmul.bf16.gmra.mxu3 %v1457_v56  ;;  %v989_v9 = vadd.f32 %v988_v62, %v900_v3 }
  0xdc   : > { %1027 = vmatmul.bf16.gmra.mxu1 %v1405_v60 }
  0xdd   : > { %1709 = vst [vmem:[%s2060_s10 + $0x10] sm:$0xff] %v1641_v16   ;;  %1116 = vmatmul.bf16.gmra.mxu2 %v1409_v61 }
  0xde   : > { %v2077_v63 = vpop.f32.mrf.mxu3 }
  0xe0   : > { %v1077_v0 = vpop.f32.mrf.mxu2  ;;  %v901_v22 = vpop.f32.mrf.mxu0 }
  0xe1   : > { %v990_v1 = vpop.f32.mrf.mxu1  ;;  %v902_v6 = vadd.f32 %v2038_v29, %v901_v22  ;;  %v1078_v13 = vadd.f32 %v1077_v0, %v989_v9 }
  0xe3   : > { %v991_v11 = vadd.f32 %v990_v1, %v902_v6 }
  0xe6   : > { %v2081_v12 = vpop.f32.mrf.mxu3 }
  0xe8   : > { %v1079_v30 = vpop.f32.mrf.mxu2  ;;  %v904_v37 = vpop.f32.mrf.mxu0 }
  0xe9   : > { %v1080_v14 = vadd.f32 %v1079_v30, %v991_v11  ;;  %v993_v4 = vpop.f32.mrf.mxu1  ;;  %v905_v20 = vadd.f32 %v2038_v29, %v904_v37  ;;  %v960_v11 = vadd.f32 %v2038_v29, %v2077_v63 }
  0xeb   : > { %v1646_v17 = vpack.c.bf16 %v1080_v14, %v1078_v13  ;;  %v994_v26 = vadd.f32 %v993_v4, %v905_v20 }
  0xed   : > { %1710 = vst [vmem:[%s2060_s10 + $0x18] sm:$0xff] %v1646_v17  }
  0xee   : > { %v1033_v7 = vpop.f32.mrf.mxu3 }
  0xef   : > { %v2086_v19 = vadd.f32 %v1033_v7, %v945_v18 }
  0xf0   : > { %v1082_v46 = vpop.f32.mrf.mxu2  ;;  %v906_v23 = vpop.f32.mrf.mxu0 }
  0xf1   : > { %v995_v24 = vpop.f32.mrf.mxu1  ;;  %v907_v25 = vadd.f32 %v2038_v29, %v906_v23  ;;  %v1083_v21 = vadd.f32 %v1082_v46, %v994_v26 }
  0xf3   : > { %v996_v27 = vadd.f32 %v995_v24, %v907_v25 }
  0xf6   : > { %v2090_v28 = vpop.f32.mrf.mxu3 }
  0xf8   : > { %v1084_v31 = vpop.f32.mrf.mxu2  ;;  %v909_v33 = vpop.f32.mrf.mxu0 }
  0xf9   : > { %v1085_v32 = vadd.f32 %v1084_v31, %v996_v27  ;;  %v998_v39 = vpop.f32.mrf.mxu1  ;;  %v910_v42 = vadd.f32 %v2038_v29, %v909_v33 }
  0xfb   : > { %v1651_v34 = vpack.c.bf16 %v1085_v32, %v1083_v21  ;;  %v999_v47 = vadd.f32 %v998_v39, %v910_v42 }
  0xfd   : > { %1711 = vst [vmem:[%s2060_s10 + $0x20] sm:$0xff] %v1651_v34  }
  0xfe   : > { %v1038_v40 = vpop.f32.mrf.mxu3 }
  0xff   : > { %v2095_v36 = vadd.f32 %v1038_v40, %v950_v35  ;;  %v947_v35 = vadd.f32 %v2038_v29, %v2053_v59 }
 0x100   : > { %v1087_v41 = vpop.f32.mrf.mxu2  ;;  %v911_v43 = vpop.f32.mrf.mxu0 }
 0x101   : > { %v1000_v44 = vpop.f32.mrf.mxu1  ;;  %v912_v45 = vadd.f32 %v2038_v29, %v911_v43  ;;  %v1088_v50 = vadd.f32 %v1087_v41, %v999_v47  ;;  %v1036_v41 = vadd.f32 %v2090_v28, %v947_v35 }
 0x103   : > { %v1001_v48 = vadd.f32 %v1000_v44, %v912_v45 }
 0x106   : > { %v2099_v2 = vpop.f32.mrf.mxu3 }
 0x108   : > { %v1089_v49 = vpop.f32.mrf.mxu2  ;;  %v914_v52 = vpop.f32.mrf.mxu0 }
 0x109   : > { %v1090_v51 = vadd.f32 %v1089_v49, %v1001_v48  ;;  %v1003_v10 = vpop.f32.mrf.mxu1  ;;  %v915_v8 = vadd.f32 %v2038_v29, %v914_v52 }
 0x10b   : > { %v1656_v53 = vpack.c.bf16 %v1090_v51, %v1088_v50  ;;  %v1004_v62 = vadd.f32 %v1003_v10, %v915_v8 }
 0x10d   : > { %1712 = vst [vmem:[%s2060_s10 + $0x28] sm:$0xff] %v1656_v53  }
 0x10e   : > { %v1043_v5 = vpop.f32.mrf.mxu3 }
 0x10f   : > { %v2104_v56 = vadd.f32 %v1043_v5, %v955_v55 }
 0x110   : > { %v1092_v57 = vpop.f32.mrf.mxu2  ;;  %v916_v58 = vpop.f32.mrf.mxu0 }
 0x111   : > { %v1005_v60 = vpop.f32.mrf.mxu1  ;;  %v917_v61 = vadd.f32 %v2038_v29, %v916_v58  ;;  %v1093_v22 = vadd.f32 %v1092_v57, %v1004_v62 }
 0x113   : > { %v1006_v16 = vadd.f32 %v1005_v60, %v917_v61 }
 0x116   : > { %v2108_v0 = vpop.f32.mrf.mxu3 }
 0x118   : > { %v1094_v3 = vpop.f32.mrf.mxu2  ;;  %v919_v6 = vpop.f32.mrf.mxu0 }
 0x119   : > { %v1095_v1 = vadd.f32 %v1094_v3, %v1006_v16  ;;  %v1008_v38 = vpop.f32.mrf.mxu1  ;;  %v920_v37 = vadd.f32 %v2038_v29, %v919_v6 }
 0x11b   : > { %v1661_v9 = vpack.c.bf16 %v1095_v1, %v1093_v22  ;;  %v1009_v7 = vadd.f32 %v1008_v38, %v920_v37 }
 0x11d   : > { %1713 = vst [vmem:[%s2060_s10 + $0x30] sm:$0xff] %v1661_v9  }
 0x11e   : > { %v1048_v30 = vpop.f32.mrf.mxu3 }
 0x11f   : > { %v2113_v13 = vadd.f32 %v1048_v30, %v960_v11 }
 0x120   : > { %v1097_v14 = vpop.f32.mrf.mxu2  ;;  %v921_v4 = vpop.f32.mrf.mxu0 }
 0x121   : > { %v1010_v17 = vpop.f32.mrf.mxu1  ;;  %v922_v18 = vadd.f32 %v2038_v29, %v921_v4  ;;  %v1098_v24 = vadd.f32 %v1097_v14, %v1009_v7 }
 0x123   : > { %v1011_v46 = vadd.f32 %v1010_v17, %v922_v18 }
 0x126   : > { %v2117_v20 = vpop.f32.mrf.mxu3 }
 0x128   : > { %v1099_v23 = vpop.f32.mrf.mxu2  ;;  %v924_v26 = vpop.f32.mrf.mxu0 }
 0x129   : > { %v1100_v25 = vadd.f32 %v1099_v23, %v1011_v46  ;;  %v1013_v63 = vpop.f32.mrf.mxu1  ;;  %v925_v32 = vadd.f32 %v2038_v29, %v924_v26 }
 0x12b   : > { %v1666_v27 = vpack.c.bf16 %v1100_v25, %v1098_v24  ;;  %v1014_v40 = vadd.f32 %v1013_v63, %v925_v32 }
 0x12d   : > { %1714 = vst [vmem:[%s2060_s10 + $0x38] sm:$0xff] %v1666_v27  }
 0x12e   : > { %v1122_v31 = vpop.f32.mrf.mxu3 }
 0x12f   : > { %v1123_v44 = vadd.f32 %v1122_v31, %v2086_v19  ;;  %v952_v19 = vadd.f32 %v2038_v29, %v2067_v15 }
 0x130   : > { %v1102_v21 = vpop.f32.mrf.mxu2  ;;  %v926_v33 = vpop.f32.mrf.mxu0 }
 0x131   : > { %v1015_v39 = vpop.f32.mrf.mxu1  ;;  %v927_v34 = vadd.f32 %v2038_v29, %v926_v33  ;;  %v1103_v48 = vadd.f32 %v1102_v21, %v1014_v40  ;;  %v1041_v58 = vadd.f32 %v2099_v2, %v952_v19 }
 0x133   : > { %v1016_v42 = vadd.f32 %v1015_v39, %v927_v34 }
 0x136   : > { %v1124_v43 = vpop.f32.mrf.mxu3 }
 0x137   : > { %v1125_v47 = vadd.f32 %v1124_v43, %v1036_v41 }
 0x138   : > { %v1104_v45 = vpop.f32.mrf.mxu2  ;;  %v929_v50 = vpop.f32.mrf.mxu0 }
 0x139   : > { %v1105_v49 = vadd.f32 %v1104_v45, %v1016_v42  ;;  %v1691_v51 = vpack.c.bf16 %v1125_v47, %v1123_v44  ;;  %v1018_v52 = vpop.f32.mrf.mxu1  ;;  %v930_v59 = vadd.f32 %v2038_v29, %v929_v50 }
 0x13b   : > { %v1671_v10 = vpack.c.bf16 %v1105_v49, %v1103_v48  ;;  %1719 = vst [vmem:[%s2060_s10 + $0x60] sm:$0xff] %v1691_v51   ;;  %v1019_v8 = vadd.f32 %v1018_v52, %v930_v59 }
 0x13d   : > { %1715 = vst [vmem:[%s2060_s10 + $0x40] sm:$0xff] %v1671_v10  }
 0x13e   : > { %v1127_v53 = vpop.f32.mrf.mxu3 }
 0x13f   : > { %v1128_v62 = vadd.f32 %v1127_v53, %v2095_v36  ;;  %v957_v36 = vadd.f32 %v2038_v29, %v2074_v54 }
 0x140   : > { %v1107_v55 = vpop.f32.mrf.mxu2  ;;  %v931_v5 = vpop.f32.mrf.mxu0 }
 0x141   : > { %v1020_v28 = vpop.f32.mrf.mxu1  ;;  %v932_v57 = vadd.f32 %v2038_v29, %v931_v5  ;;  %v1108_v22 = vadd.f32 %v1107_v55, %v1019_v8  ;;  %v1046_v18 = vadd.f32 %v2108_v0, %v957_v36 }
 0x143   : > { %v1021_v60 = vadd.f32 %v1020_v28, %v932_v57 }
 0x146   : > { %v1129_v61 = vpop.f32.mrf.mxu3 }
 0x147   : > { %v1130_v3 = vadd.f32 %v1129_v61, %v1041_v58 }
 0x148   : > { %v1109_v16 = vpop.f32.mrf.mxu2  ;;  %v934_v6 = vpop.f32.mrf.mxu0 }
 0x149   : > { %v1110_v1 = vadd.f32 %v1109_v16, %v1021_v60  ;;  %v1696_v38 = vpack.c.bf16 %v1130_v3, %v1128_v62  ;;  %v1023_v9 = vpop.f32.mrf.mxu1  ;;  %v935_v15 = vadd.f32 %v2038_v29, %v934_v6 }
 0x14b   : > { %v1676_v11 = vpack.c.bf16 %v1110_v1, %v1108_v22  ;;  %1720 = vst [vmem:[%s2060_s10 + $0x68] sm:$0xff] %v1696_v38   ;;  %v1024_v17 = vadd.f32 %v1023_v9, %v935_v15 }
 0x14d   : > { %1716 = vst [vmem:[%s2060_s10 + $0x48] sm:$0xff] %v1676_v11  }
 0x14e   : > { %v1132_v30 = vpop.f32.mrf.mxu3 }
 0x14f   : > { %v1133_v23 = vadd.f32 %v1132_v30, %v2104_v56  ;;  %v962_v56 = vadd.f32 %v2038_v29, %v2081_v12 }
 0x150   : > { %v1112_v14 = vpop.f32.mrf.mxu2  ;;  %v936_v37 = vpop.f32.mrf.mxu0 }
 0x151   : > { %v1025_v2 = vpop.f32.mrf.mxu1  ;;  %v937_v4 = vadd.f32 %v2038_v29, %v936_v37  ;;  %v1113_v26 = vadd.f32 %v1112_v14, %v1024_v17  ;;  %v1051_v40 = vadd.f32 %v2117_v20, %v962_v56 }
 0x153   : > { %v1026_v7 = vadd.f32 %v1025_v2, %v937_v4 }
 0x156   : > { %v1134_v46 = vpop.f32.mrf.mxu3 }
 0x157   : > { %v1135_v25 = vadd.f32 %v1134_v46, %v1046_v18 }
 0x158   : > { %v1114_v24 = vpop.f32.mrf.mxu2  ;;  %v939_v27 = vpop.f32.mrf.mxu0 }
 0x159   : > { %v1115_v63 = vadd.f32 %v1114_v24, %v1026_v7  ;;  %v1701_v31 = vpack.c.bf16 %v1135_v25, %v1133_v23  ;;  %v1028_v32 = vpop.f32.mrf.mxu1  ;;  %v940_v54 = vadd.f32 %v2038_v29, %v939_v27 }
 0x15b   : > { %v1681_v21 = vpack.c.bf16 %v1115_v63, %v1113_v26  ;;  %1721 = vst [vmem:[%s2060_s10 + $0x70] sm:$0xff] %v1701_v31   ;;  %v1029_v35 = vadd.f32 %v1028_v32, %v940_v54 }
 0x15d   : > { %1717 = vst [vmem:[%s2060_s10 + $0x50] sm:$0xff] %v1681_v21  }
 0x15e   : > { %v1137_v33 = vpop.f32.mrf.mxu3 }
 0x15f   : > { %v1138_v44 = vadd.f32 %v1137_v33, %v2113_v13 }
 0x160   : > { %v1117_v39 = vpop.f32.mrf.mxu2  ;;  %v941_v0 = vpop.f32.mrf.mxu0 }
 0x161   : > { %v942_v34 = vadd.f32 %v2038_v29, %v941_v0  ;;  %v1030_v41 = vpop.f32.mrf.mxu1  ;;  %v1118_v48 = vadd.f32 %v1117_v39, %v1029_v35 }
 0x163   : > { %v1031_v42 = vadd.f32 %v1030_v41, %v942_v34 }
 0x166   : > { %v1139_v43 = vpop.f32.mrf.mxu3 }
 0x167   : > { %v1140_v47 = vadd.f32 %v1139_v43, %v1051_v40 }
 0x168   : > { %v1119_v45 = vpop.f32.mrf.mxu2 }
 0x169   : > { %v1120_v49 = vadd.f32 %v1119_v45, %v1031_v42  ;;  %v1706_v50 = vpack.c.bf16 %v1140_v47, %v1138_v44 }
 0x16b   : > { %v1686_v51 = vpack.c.bf16 %v1120_v49, %v1118_v48  ;;  %1722 = vst [vmem:[%s2060_s10 + $0x78] sm:$0xff] %v1706_v50  }
 0x16d   : > { %1718 = vst [vmem:[%s2060_s10 + $0x58] sm:$0xff] %v1686_v51  }
 0x16e PF: > { %s13_s12 = sadd.s32 1, %s1762_s12  }
 0x16f   : > { %p10_p4 = scmp.ge.s32.totalorder %s13_s12, 4  }
 0x171   :  { %12 = sbr.rel (!%p10_p4) target bundleno = 1 (0x1), region = 62 }

// kernel: rpn_up_forward.3
= control target key start
LH: loop header
LB: loop body
LE: loop exit
PB: predicated region body
PF: predicated region fallthrough
CT: control target
= control target key end

     0   :  { %s2984_s1 = inlined_call_operand.vmem [shape: bf16[384,512], index: 1, kind: input, shape index: {}]   ;;  %s2985_s0 = inlined_call_operand.vmem [shape: bf16[112,128], index: 0, kind: input, shape index: {}]   ;;  %s2986_s2 = inlined_call_operand.vmem [shape: f32[1,512], index: 2, kind: input, shape index: {}]   ;;  %s2987_s3 = inlined_call_operand.vmem [shape: f32[96,512], index: 3, kind: output, shape index: {}]  }
   0x1   :  { %v1543_v0 = vld [vmem:[%s2984_s1 + $0xe0] sm:$0xf]  ;;  %v1861_v1 = vld [vmem:[%s2984_s1 + $0xec] sm:$0xf0]  ;;  %v1859_v9 = vld [vmem:[%s2984_s1 + $0xe4] sm:$0xf] }
   0x2   :  { %v1671_v2 = vld [vmem:[%s2984_s1 + $0x1e0] sm:$0xf]  ;;  %v1544_v3 = vor.u32 %v1861_v1, %v1543_v0  ;;  %v1893_v4 = vld [vmem:[%s2984_s1 + $0x1ec] sm:$0xf0]  ;;  %v1545_v10 = vld [vmem:[%s2984_s1 + $0xf0] sm:$0xf0] }
   0x3   :  { %v1799_v5 = vld [vmem:[%s2984_s1 + $0x2e0] sm:$0xf]  ;;  %v1925_v6 = vld [vmem:[%s2984_s1 + $0x2ec] sm:$0xf0]  ;;  %v1672_v7 = vor.u32 %v1893_v4, %v1671_v2  ;;  %v1548_v12 = vor.u32 %v1859_v9, %v1545_v10  ;;  %v1855_v20 = vld [vmem:[%s2984_s1 + $0xc4] sm:$0xf] }
   0x4   :  { %v1800_v8 = vor.u32 %v1925_v6, %v1799_v5  ;;  %v1527_v11 = vld [vmem:[%s2984_s1 + $0xc0] sm:$0xf]  ;;  %807 = vmatpush.bf16.msra.mxu0 %v1544_v3  ;;  %v1857_v13 = vld [vmem:[%s2984_s1 + $0xcc] sm:$0xf0]  ;;  %v1529_v22 = vld [vmem:[%s2984_s1 + $0xd0] sm:$0xf0] }
   0x5   :  { %v1655_v14 = vld [vmem:[%s2984_s1 + $0x1c0] sm:$0xf]  ;;  %v1889_v15 = vld [vmem:[%s2984_s1 + $0x1cc] sm:$0xf0]  ;;  %846 = vmatpush.bf16.msra.mxu1 %v1672_v7  ;;  %v1528_v16 = vor.u32 %v1857_v13, %v1527_v11  ;;  %924 = vmatpush.bf16.msra.mxu3 %v1548_v12  ;;  %v1532_v25 = vor.u32 %v1855_v20, %v1529_v22  ;;  %v1851_v31 = vld [vmem:[%s2984_s1 + $0xa4] sm:$0xf] }
   0x6   :  { %885 = vmatpush.bf16.msra.mxu2 %v1800_v8  ;;  %v1656_v17 = vor.u32 %v1889_v15, %v1655_v14  ;;  %v1783_v18 = vld [vmem:[%s2984_s1 + $0x2c0] sm:$0xf]  ;;  %v1921_v19 = vld [vmem:[%s2984_s1 + $0x2cc] sm:$0xf0]  ;;  %v1513_v32 = vld [vmem:[%s2984_s1 + $0xb0] sm:$0xf0] }
   0x7   :  { %v1784_v21 = vor.u32 %v1921_v19, %v1783_v18  ;;  %v1511_v23 = vld [vmem:[%s2984_s1 + $0xa0] sm:$0xf]  ;;  %v1853_v24 = vld [vmem:[%s2984_s1 + $0xac] sm:$0xf0]  ;;  %v1516_v38 = vor.u32 %v1851_v31, %v1513_v32  ;;  %v1847_v42 = vld [vmem:[%s2984_s1 + $0x84] sm:$0xf] }
   0x8   :  { %v1639_v26 = vld [vmem:[%s2984_s1 + $0x1a0] sm:$0xf]  ;;  %v1885_v27 = vld [vmem:[%s2984_s1 + $0x1ac] sm:$0xf0]  ;;  %808 = vmatpush.bf16.msra.mxu0 %v1528_v16  ;;  %v1512_v29 = vor.u32 %v1853_v24, %v1511_v23  ;;  %v1497_v43 = vld [vmem:[%s2984_s1 + $0x90] sm:$0xf0] }
   0x9   :  { %v1767_v28 = vld [vmem:[%s2984_s1 + $0x2a0] sm:$0xf]  ;;  %v1917_v30 = vld [vmem:[%s2984_s1 + $0x2ac] sm:$0xf0]  ;;  %847 = vmatpush.bf16.msra.mxu1 %v1656_v17  ;;  %v1640_v33 = vor.u32 %v1885_v27, %v1639_v26  ;;  %925 = vmatpush.bf16.msra.mxu3 %v1532_v25  ;;  %v1500_v50 = vor.u32 %v1847_v42, %v1497_v43  ;;  %v1843_v54 = vld [vmem:[%s2984_s1 + $0x64] sm:$0xf] }
   0xa   :  { %886 = vmatpush.bf16.msra.mxu2 %v1784_v21  ;;  %v1768_v34 = vor.u32 %v1917_v30, %v1767_v28  ;;  %v1495_v35 = vld [vmem:[%s2984_s1 + $0x80] sm:$0xf]  ;;  %v1849_v36 = vld [vmem:[%s2984_s1 + $0x8c] sm:$0xf0]  ;;  %v1481_v55 = vld [vmem:[%s2984_s1 + $0x70] sm:$0xf0] }
   0xb   :  { %v1623_v37 = vld [vmem:[%s2984_s1 + $0x180] sm:$0xf]  ;;  %v1881_v39 = vld [vmem:[%s2984_s1 + $0x18c] sm:$0xf0]  ;;  %v1496_v44 = vor.u32 %v1849_v36, %v1495_v35  ;;  %v1484_v62 = vor.u32 %v1843_v54, %v1481_v55  ;;  %v1839_v2 = vld [vmem:[%s2984_s1 + $0x44] sm:$0xf] }
   0xc   :  { %v1751_v40 = vld [vmem:[%s2984_s1 + $0x280] sm:$0xf]  ;;  %v1913_v41 = vld [vmem:[%s2984_s1 + $0x28c] sm:$0xf0]  ;;  %809 = vmatpush.bf16.msra.mxu0 %v1512_v29  ;;  %v1624_v45 = vor.u32 %v1881_v39, %v1623_v37  ;;  %v1465_v3 = vld [vmem:[%s2984_s1 + $0x50] sm:$0xf0] }
   0xd   :  { %848 = vmatpush.bf16.msra.mxu1 %v1640_v33  ;;  %v1752_v46 = vor.u32 %v1913_v41, %v1751_v40  ;;  %v1479_v47 = vld [vmem:[%s2984_s1 + $0x60] sm:$0xf]  ;;  %v1845_v48 = vld [vmem:[%s2984_s1 + $0x6c] sm:$0xf0]  ;;  %926 = vmatpush.bf16.msra.mxu3 %v1516_v38  ;;  %v1835_v13 = vld [vmem:[%s2984_s1 + $0x24] sm:$0xf]  ;;  %v1468_v14 = vor.u32 %v1839_v2, %v1465_v3 }
   0xe   :  { %887 = vmatpush.bf16.msra.mxu2 %v1768_v34  ;;  %v1607_v49 = vld [vmem:[%s2984_s1 + $0x160] sm:$0xf]  ;;  %v1877_v51 = vld [vmem:[%s2984_s1 + $0x16c] sm:$0xf0]  ;;  %v1480_v56 = vor.u32 %v1845_v48, %v1479_v47  ;;  %v1449_v15 = vld [vmem:[%s2984_s1 + $0x30] sm:$0xf0] }
   0xf   :  { %v1735_v52 = vld [vmem:[%s2984_s1 + $0x260] sm:$0xf]  ;;  %v1909_v53 = vld [vmem:[%s2984_s1 + $0x26c] sm:$0xf0]  ;;  %v1608_v57 = vor.u32 %v1877_v51, %v1607_v49  ;;  %v20_v17 = vld [vmem:[%s2985_s0 + $0x4] sm:$0xff]   ;;  %v1452_v31 = vor.u32 %v1835_v13, %v1449_v15 }
  0x10   :  { %810 = vmatpush.bf16.msra.mxu0 %v1496_v44  ;;  %v1736_v58 = vor.u32 %v1909_v53, %v1735_v52  ;;  %v1463_v59 = vld [vmem:[%s2984_s1 + $0x40] sm:$0xf]  ;;  %v1841_v60 = vld [vmem:[%s2984_s1 + $0x4c] sm:$0xf0]  ;;  %v1345_v20 = vld [vmem:[%s2985_s0 + $0x8] sm:$0xf] }
  0x11   :  { %849 = vmatpush.bf16.msra.mxu1 %v1624_v45  ;;  %v1591_v61 = vld [vmem:[%s2984_s1 + $0x140] sm:$0xf]  ;;  %927 = vmatpush.bf16.msra.mxu3 %v1500_v50  ;;  %v1873_v63 = vld [vmem:[%s2984_s1 + $0x14c] sm:$0xf0]  ;;  %v1464_v5 = vor.u32 %v1841_v60, %v1463_v59  ;;  %v1346_v21 = vld [vmem:[%s2985_s0 + $0xc] sm:$0xf] }
  0x12   :  { %888 = vmatpush.bf16.msra.mxu2 %v1752_v46  ;;  %v1719_v0 = vld [vmem:[%s2984_s1 + $0x240] sm:$0xf]  ;;  %v1905_v1 = vld [vmem:[%s2984_s1 + $0x24c] sm:$0xf0]  ;;  %v1592_v9 = vor.u32 %v1873_v63, %v1591_v61  ;;  %32 = vst [vmem:[#allocation2 + $0xc] sm:$0xff] %v20_v17   ;;  %v21_v33 = vld [vmem:[%s2985_s0 + $0x8] sm:$0xff]  }
  0x13   :  { %v1447_v4 = vld [vmem:[%s2984_s1 + $0x20] sm:$0xf]  ;;  %v1837_v6 = vld [vmem:[%s2984_s1 + $0x2c] sm:$0xf0]  ;;  %v1720_v10 = vor.u32 %v1905_v1, %v1719_v0  ;;  %v1831_v29 = vld [vmem:[%s2984_s1 + $0x4] sm:$0xf] }
  0x14   :  { %811 = vmatpush.bf16.msra.mxu0 %v1480_v56  ;;  %v1575_v7 = vld [vmem:[%s2984_s1 + $0x120] sm:$0xf]  ;;  %v1869_v8 = vld [vmem:[%s2984_s1 + $0x12c] sm:$0xf0]  ;;  %v1448_v22 = vor.u32 %v1837_v6, %v1447_v4  ;;  %v1433_v30 = vld [vmem:[%s2984_s1 + $0x10] sm:$0xf0] }
  0x15   :  { %850 = vmatpush.bf16.msra.mxu1 %v1608_v57  ;;  %v1703_v11 = vld [vmem:[%s2984_s1 + $0x220] sm:$0xf]  ;;  %v1901_v12 = vld [vmem:[%s2984_s1 + $0x22c] sm:$0xf0]  ;;  %928 = vmatpush.bf16.msra.mxu3 %v1484_v62  ;;  %v1576_v27 = vor.u32 %v1869_v8, %v1575_v7  ;;  %89 = vst [vmem:[#allocation2 + $0x8] sm:$0xf] %v1345_v20  ;;  %v1436_v49 = vor.u32 %v1831_v29, %v1433_v30 }
  0x16   :  { %889 = vmatpush.bf16.msra.mxu2 %v1736_v58  ;;  %v19_v16 = vld [vmem:[%s2985_s0] sm:$0xff]   ;;  %v1833_v19 = vld [vmem:[%s2984_s1 + $0xc] sm:$0xf0]  ;;  %v1704_v28 = vor.u32 %v1901_v12, %v1703_v11  ;;  %90 = vst [vmem:[#allocation2 + $0x14] sm:$0xf] %v1346_v21  ;;  %v24_v0 = vld [vmem:[%s2985_s0 + $0x14] sm:$0xff]  }
  0x17   :  { %v1431_v18 = vld [vmem:[%s2984_s1] sm:$0xf]  ;;  %31 = vst [vmem:[#allocation2] sm:$0xff] %v19_v16   ;;  %v1865_v24 = vld [vmem:[%s2984_s1 + $0x10c] sm:$0xf0]  ;;  %v25_v21 = vld [vmem:[%s2985_s0 + $0x18] sm:$0xff]  }
  0x18   :  { %812 = vmatpush.bf16.msra.mxu0 %v1464_v5  ;;  %v1559_v23 = vld [vmem:[%s2984_s1 + $0x100] sm:$0xf]  ;;  %v1897_v26 = vld [vmem:[%s2984_s1 + $0x20c] sm:$0xf0]  ;;  %v1551_v32 = vld [vmem:[%s2984_s1 + $0xe8] sm:$0xf]  ;;  %v1432_v37 = vor.u32 %v1833_v19, %v1431_v18 }
  0x19   :  { %v1687_v25 = vld [vmem:[%s2984_s1 + $0x200] sm:$0xf]  ;;  %851 = vmatpush.bf16.msra.mxu1 %v1592_v9  ;;  %929 = vmatpush.bf16.msra.mxu3 %v1468_v14  ;;  %v1862_v34 = vld [vmem:[%s2984_s1 + $0xf4] sm:$0xf0]  ;;  %v1679_v35 = vld [vmem:[%s2984_s1 + $0x1e8] sm:$0xf]  ;;  %v1560_v41 = vor.u32 %v1865_v24, %v1559_v23 }
  0x1a   :  { %890 = vmatpush.bf16.msra.mxu2 %v1720_v10  ;;  %v22_v36 = vld [vmem:[%s2985_s0 + $0xc] sm:$0xff]   ;;  %v1894_v38 = vld [vmem:[%s2984_s1 + $0x1f4] sm:$0xf0]  ;;  %v1923_v39 = vld [vmem:[%s2984_s1 + $0x2e4] sm:$0xf]  ;;  %v1688_v42 = vor.u32 %v1897_v26, %v1687_v25  ;;  %33 = vst [vmem:[#allocation2 + $0x18] sm:$0xff] %v21_v33   ;;  %v1552_v52 = vor.u32 %v1862_v34, %v1551_v32 }
  0x1b   :  { %v1801_v40 = vld [vmem:[%s2984_s1 + $0x2f0] sm:$0xf0]  ;;  %v1891_v43 = vld [vmem:[%s2984_s1 + $0x1e4] sm:$0xf]  ;;  %v1535_v45 = vld [vmem:[%s2984_s1 + $0xc8] sm:$0xf]  ;;  %v1680_v56 = vor.u32 %v1894_v38, %v1679_v35 }
  0x1c   :  { %813 = vmatpush.bf16.msra.mxu0 %v1448_v22  ;;  %v1673_v44 = vld [vmem:[%s2984_s1 + $0x1f0] sm:$0xf0]  ;;  %v1858_v46 = vld [vmem:[%s2984_s1 + $0xd4] sm:$0xf0]  ;;  %v1347_v47 = vld [vmem:[%s2985_s0 + $0x10] sm:$0xf]  ;;  %v1804_v62 = vor.u32 %v1923_v39, %v1801_v40 }
  0x1d   :  { %852 = vmatpush.bf16.msra.mxu1 %v1576_v27  ;;  %v1348_v48 = vld [vmem:[%s2985_s0 + $0x14] sm:$0xf]  ;;  %930 = vmatpush.bf16.msra.mxu3 %v1452_v31  ;;  %v1663_v53 = vld [vmem:[%s2984_s1 + $0x1c8] sm:$0xf]  ;;  %34 = vst [vmem:[#allocation2 + $0x24] sm:$0xff] %v22_v36   ;;  %v1676_v2 = vor.u32 %v1891_v43, %v1673_v44  ;;  %v1536_v3 = vor.u32 %v1858_v46, %v1535_v45  ;;  %v26_v22 = vld [vmem:[%s2985_s0 + $0x1c] sm:$0xff]  }
  0x1e   :  { %891 = vmatpush.bf16.msra.mxu2 %v1704_v28  ;;  %v1359_v50 = vld [vmem:[#allocation2] sm:$0xf]  ;;  %v1813_v51 = vld [vmem:[#allocation2 + $0x4] sm:$0xf]  ;;  %v1814_v54 = vld [vmem:[#allocation2 + $0x8] sm:$0xf0] }
  0x1f   :  { %v1361_v55 = vld [vmem:[#allocation2 + $0xc] sm:$0xf0]  ;;  %91 = vst [vmem:[#allocation2 + $0x20] sm:$0xf] %v1347_v47  ;;  %v2196_v57 = vor.u32 %v1814_v54, %v1359_v50  ;;  %v1367_v59 = vld [vmem:[#allocation2 + $0x8] sm:$0xf] }
  0x20   :  { %814 = vmatpush.bf16.msra.mxu0 %v1432_v37  ;;  %v2198_v58 = vor.u32 %v1813_v51, %v1361_v55  ;;  %v1890_v60 = vld [vmem:[%s2984_s1 + $0x1d4] sm:$0xf0]  ;;  %92 = vst [vmem:[#allocation2 + $0x2c] sm:$0xf] %v1348_v48  ;;  %v1815_v61 = vld [vmem:[#allocation2 + $0x10] sm:$0xf0] }
  0x21   :  { %853 = vmatpush.bf16.msra.mxu1 %v1560_v41  ;;  %v23_v63 = vld [vmem:[%s2985_s0 + $0x10] sm:$0xff]   ;;  %931 = vmatpush.bf16.msra.mxu3 %v1436_v49  ;;  %v2209_v1 = vor.u32 %v1815_v61, %v1367_v59  ;;  %v1919_v4 = vld [vmem:[%s2984_s1 + $0x2c4] sm:$0xf]  ;;  %v1664_v7 = vor.u32 %v1890_v60, %v1663_v53  ;;  %v1519_v9 = vld [vmem:[%s2984_s1 + $0xa8] sm:$0xf]  ;;  %36 = vst [vmem:[#allocation2 + $0x3c] sm:$0xff] %v24_v0  }
  0x22   :  { %892 = vmatpush.bf16.msra.mxu2 %v1688_v42  ;;  %v1785_v5 = vld [vmem:[%s2984_s1 + $0x2d0] sm:$0xf0]  ;;  %v1887_v6 = vld [vmem:[%s2984_s1 + $0x1c4] sm:$0xf]  ;;  %v1854_v10 = vld [vmem:[%s2984_s1 + $0xb4] sm:$0xf0] }
  0x23   :  { %815 = vmatmul.bf16.vlgmr.msra.gmra.mxu0 %v2196_v57  ;;  %v1657_v8 = vld [vmem:[%s2984_s1 + $0x1d0] sm:$0xf0]  ;;  %v1647_v11 = vld [vmem:[%s2984_s1 + $0x1a8] sm:$0xf]  ;;  %v1886_v12 = vld [vmem:[%s2984_s1 + $0x1b4] sm:$0xf0]  ;;  %v1788_v13 = vor.u32 %v1919_v4, %v1785_v5  ;;  %v1520_v16 = vor.u32 %v1854_v10, %v1519_v9 }
  0x24   :  { %854 = vmatmul.bf16.vlgmr.msra.gmra.mxu1 %v2198_v58  ;;  %932 = vmatmul.bf16.vlgmr.msra.gmra.mxu3 %v2196_v57  ;;  %v1915_v14 = vld [vmem:[%s2984_s1 + $0x2a4] sm:$0xf]  ;;  %35 = vst [vmem:[#allocation2 + $0x30] sm:$0xff] %v23_v63   ;;  %v1660_v15 = vor.u32 %v1887_v6, %v1657_v8  ;;  %v1769_v17 = vld [vmem:[%s2984_s1 + $0x2b0] sm:$0xf0]  ;;  %v1648_v19 = vor.u32 %v1886_v12, %v1647_v11 }
  0x25   :  { %1080 = vmatpush.bf16.msrb.mxu3 %v1680_v56  ;;  %893 = vmatmul.bf16.vlgmr.msra.gmra.mxu2 %v2209_v1  ;;  %v1349_v18 = vld [vmem:[%s2985_s0 + $0x18] sm:$0xf]  ;;  %v1350_v20 = vld [vmem:[%s2985_s0 + $0x1c] sm:$0xf]  ;;  %v1883_v23 = vld [vmem:[%s2984_s1 + $0x1a4] sm:$0xf]  ;;  %v1772_v25 = vor.u32 %v1915_v14, %v1769_v17 }
  0x26   :  { %1041 = vmatpush.bf16.msrb.mxu2 %v1552_v52  ;;  %1002 = vmatpush.bf16.msrb.mxu1 %v1804_v62  ;;  %93 = vst [vmem:[#allocation2 + $0x38] sm:$0xf] %v1349_v18  ;;  %v1641_v24 = vld [vmem:[%s2984_s1 + $0x1b0] sm:$0xf0]  ;;  %v1503_v26 = vld [vmem:[%s2984_s1 + $0x88] sm:$0xf] }
  0x27   :  { %963 = vmatpush.bf16.msrb.mxu0 %v1676_v2  ;;  %94 = vst [vmem:[#allocation2 + $0x44] sm:$0xf] %v1350_v20  ;;  %v1850_v27 = vld [vmem:[%s2984_s1 + $0x94] sm:$0xf0]  ;;  %v1631_v28 = vld [vmem:[%s2984_s1 + $0x188] sm:$0xf]  ;;  %v1644_v30 = vor.u32 %v1883_v23, %v1641_v24 }
  0x28   :  { %v1371_v29 = vld [vmem:[#allocation2 + $0x18] sm:$0xf]  ;;  %v1504_v31 = vor.u32 %v1850_v27, %v1503_v26  ;;  %v1911_v33 = vld [vmem:[%s2984_s1 + $0x284] sm:$0xf]  ;;  %v1753_v34 = vld [vmem:[%s2984_s1 + $0x290] sm:$0xf0] }
  0x29   :  { %1081 = vmatpush.bf16.msrb.mxu3 %v1664_v7  ;;  %v1882_v32 = vld [vmem:[%s2984_s1 + $0x194] sm:$0xf0]  ;;  %v1816_v35 = vld [vmem:[#allocation2 + $0x1c] sm:$0xf]  ;;  %v1879_v37 = vld [vmem:[%s2984_s1 + $0x184] sm:$0xf]  ;;  %v1756_v43 = vor.u32 %v1911_v33, %v1753_v34 }
  0x2a   :  { %1042 = vmatpush.bf16.msrb.mxu2 %v1536_v3  ;;  %1003 = vmatpush.bf16.msrb.mxu1 %v1788_v13  ;;  %v1632_v36 = vor.u32 %v1882_v32, %v1631_v28  ;;  %v1625_v38 = vld [vmem:[%s2984_s1 + $0x190] sm:$0xf0]  ;;  %37 = vst [vmem:[#allocation2 + $0x48] sm:$0xff] %v25_v21   ;;  %v1817_v39 = vld [vmem:[#allocation2 + $0x20] sm:$0xf0]  ;;  %v29_v34 = vld [vmem:[%s2985_s0 + $0x28] sm:$0xff]  }
  0x2b   :  { %964 = vmatpush.bf16.msrb.mxu0 %v1660_v15  ;;  %v1373_v40 = vld [vmem:[#allocation2 + $0x24] sm:$0xf0]  ;;  %38 = vst [vmem:[#allocation2 + $0x54] sm:$0xff] %v26_v22   ;;  %v1379_v41 = vld [vmem:[#allocation2 + $0x20] sm:$0xf]  ;;  %v1628_v45 = vor.u32 %v1879_v37, %v1625_v38  ;;  %v2293_v47 = vor.u32 %v1817_v39, %v1371_v29 }
  0x2c   :  { %v1818_v42 = vld [vmem:[#allocation2 + $0x28] sm:$0xf0]  ;;  %v1351_v44 = vld [vmem:[%s2985_s0 + $0x20] sm:$0xf]  ;;  %v1352_v46 = vld [vmem:[%s2985_s0 + $0x24] sm:$0xf]  ;;  %v2295_v48 = vor.u32 %v1816_v35, %v1373_v40 }
  0x2d   :  { %1082 = vmatpush.bf16.msrb.mxu3 %v1648_v19  ;;  %95 = vst [vmem:[#allocation2 + $0x50] sm:$0xf] %v1351_v44  ;;  %v2297_v49 = vor.u32 %v1818_v42, %v1379_v41  ;;  %v1487_v50 = vld [vmem:[%s2984_s1 + $0x68] sm:$0xf]  ;;  %v1846_v51 = vld [vmem:[%s2984_s1 + $0x74] sm:$0xf0] }
  0x2e   :  { %1043 = vmatpush.bf16.msrb.mxu2 %v1520_v16  ;;  %1004 = vmatpush.bf16.msrb.mxu1 %v1772_v25  ;;  %96 = vst [vmem:[#allocation2 + $0x5c] sm:$0xf] %v1352_v46  ;;  %v1488_v52 = vor.u32 %v1846_v51, %v1487_v50  ;;  %v1615_v53 = vld [vmem:[%s2984_s1 + $0x168] sm:$0xf]  ;;  %v1878_v54 = vld [vmem:[%s2984_s1 + $0x174] sm:$0xf0] }
  0x2f   :  { %965 = vmatpush.bf16.msrb.mxu0 %v1644_v30  ;;  %v1616_v55 = vor.u32 %v1878_v54, %v1615_v53  ;;  %v1907_v56 = vld [vmem:[%s2984_s1 + $0x264] sm:$0xf]  ;;  %v1737_v59 = vld [vmem:[%s2984_s1 + $0x270] sm:$0xf0]  ;;  %v1471_v63 = vld [vmem:[%s2984_s1 + $0x48] sm:$0xf] }
  0x30   :  { %v1875_v60 = vld [vmem:[%s2984_s1 + $0x164] sm:$0xf]  ;;  %v1740_v61 = vor.u32 %v1907_v56, %v1737_v59  ;;  %v1609_v62 = vld [vmem:[%s2984_s1 + $0x170] sm:$0xf0]  ;;  %v1842_v0 = vld [vmem:[%s2984_s1 + $0x54] sm:$0xf0] }
  0x31   :  { %1083 = vmatpush.bf16.msrb.mxu3 %v1632_v36  ;;  %v1612_v2 = vor.u32 %v1875_v60, %v1609_v62  ;;  %v1472_v3 = vor.u32 %v1842_v0, %v1471_v63  ;;  %v1599_v4 = vld [vmem:[%s2984_s1 + $0x148] sm:$0xf]  ;;  %v1874_v5 = vld [vmem:[%s2984_s1 + $0x154] sm:$0xf0]  ;;  %v27_v6 = vld [vmem:[%s2985_s0 + $0x20] sm:$0xff]   ;;  %41 = vst [vmem:[#allocation2 + $0x78] sm:$0xff] %v29_v34  }
  0x32   :  { %1044 = vmatpush.bf16.msrb.mxu2 %v1504_v31  ;;  %1005 = vmatpush.bf16.msrb.mxu1 %v1756_v43  ;;  %v1600_v7 = vor.u32 %v1874_v5, %v1599_v4  ;;  %v28_v8 = vld [vmem:[%s2985_s0 + $0x24] sm:$0xff]   ;;  %39 = vst [vmem:[#allocation2 + $0x60] sm:$0xff] %v27_v6   ;;  %v1354_v10 = vld [vmem:[%s2985_s0 + $0x2c] sm:$0xf]  ;;  %v1383_v11 = vld [vmem:[#allocation2 + $0x30] sm:$0xf] }
  0x33   :  { %966 = vmatpush.bf16.msrb.mxu0 %v1628_v45  ;;  %v1353_v9 = vld [vmem:[%s2985_s0 + $0x28] sm:$0xf]  ;;  %v1819_v12 = vld [vmem:[#allocation2 + $0x34] sm:$0xf]  ;;  %40 = vst [vmem:[#allocation2 + $0x6c] sm:$0xff] %v28_v8   ;;  %v30_v35 = vld [vmem:[%s2985_s0 + $0x2c] sm:$0xff]  }
  0x34   :  { %820 = vmatmul.bf16.gmra.mxu0 %v2293_v47  ;;  %859 = vmatmul.bf16.gmra.mxu1 %v2295_v48  ;;  %v1820_v13 = vld [vmem:[#allocation2 + $0x38] sm:$0xf0]  ;;  %v1385_v14 = vld [vmem:[#allocation2 + $0x3c] sm:$0xf0]  ;;  %97 = vst [vmem:[#allocation2 + $0x68] sm:$0xf] %v1353_v9 }
  0x35   :  { %898 = vmatmul.bf16.gmra.mxu2 %v2297_v49  ;;  %937 = vmatmul.bf16.gmra.mxu3 %v2293_v47  ;;  %v1391_v15 = vld [vmem:[#allocation2 + $0x38] sm:$0xf]  ;;  %v1821_v16 = vld [vmem:[#allocation2 + $0x40] sm:$0xf0]  ;;  %98 = vst [vmem:[#allocation2 + $0x74] sm:$0xf] %v1354_v10  ;;  %v2351_v17 = vor.u32 %v1820_v13, %v1383_v11  ;;  %v2353_v18 = vor.u32 %v1819_v12, %v1385_v14 }
  0x36   :  { %1045 = vmatpush.bf16.msrb.mxu2 %v1488_v52  ;;  %1084 = vmatpush.bf16.msrb.mxu3 %v1616_v55  ;;  %v2355_v19 = vor.u32 %v1821_v16, %v1391_v15  ;;  %v1903_v20 = vld [vmem:[%s2984_s1 + $0x244] sm:$0xf]  ;;  %v1721_v21 = vld [vmem:[%s2984_s1 + $0x250] sm:$0xf0]  ;;  %v1455_v25 = vld [vmem:[%s2984_s1 + $0x28] sm:$0xf] }
  0x37   :  { %1006 = vmatpush.bf16.msrb.mxu1 %v1740_v61  ;;  %967 = vmatpush.bf16.msrb.mxu0 %v1612_v2  ;;  %v1871_v22 = vld [vmem:[%s2984_s1 + $0x144] sm:$0xf]  ;;  %v1724_v23 = vor.u32 %v1903_v20, %v1721_v21  ;;  %v1593_v24 = vld [vmem:[%s2984_s1 + $0x150] sm:$0xf0]  ;;  %v1838_v26 = vld [vmem:[%s2984_s1 + $0x34] sm:$0xf0] }
  0x38   :  { %v1596_v27 = vor.u32 %v1871_v22, %v1593_v24  ;;  %v1456_v28 = vor.u32 %v1838_v26, %v1455_v25  ;;  %v1583_v29 = vld [vmem:[%s2984_s1 + $0x128] sm:$0xf]  ;;  %v1870_v30 = vld [vmem:[%s2984_s1 + $0x134] sm:$0xf0]  ;;  %v1899_v31 = vld [vmem:[%s2984_s1 + $0x224] sm:$0xf] }
  0x39   :  { %v1584_v32 = vor.u32 %v1870_v30, %v1583_v29  ;;  %v1705_v33 = vld [vmem:[%s2984_s1 + $0x230] sm:$0xf0]  ;;  %42 = vst [vmem:[#allocation2 + $0x84] sm:$0xff] %v30_v35   ;;  %v1355_v37 = vld [vmem:[%s2985_s0 + $0x30] sm:$0xf] }
  0x3a   :  { %1046 = vmatpush.bf16.msrb.mxu2 %v1472_v3  ;;  %1085 = vmatpush.bf16.msrb.mxu3 %v1600_v7  ;;  %v1708_v36 = vor.u32 %v1899_v31, %v1705_v33  ;;  %v1356_v38 = vld [vmem:[%s2985_s0 + $0x34] sm:$0xf]  ;;  %v1395_v39 = vld [vmem:[#allocation2 + $0x48] sm:$0xf]  ;;  %99 = vst [vmem:[#allocation2 + $0x80] sm:$0xf] %v1355_v37 }
  0x3b   :  { %1007 = vmatpush.bf16.msrb.mxu1 %v1724_v23  ;;  %968 = vmatpush.bf16.msrb.mxu0 %v1596_v27  ;;  %v1823_v40 = vld [vmem:[#allocation2 + $0x50] sm:$0xf0]  ;;  %v1822_v41 = vld [vmem:[#allocation2 + $0x4c] sm:$0xf]  ;;  %100 = vst [vmem:[#allocation2 + $0x8c] sm:$0xf] %v1356_v38 }
  0x3c   :  { %v1397_v42 = vld [vmem:[#allocation2 + $0x54] sm:$0xf0]  ;;  %v1403_v43 = vld [vmem:[#allocation2 + $0x50] sm:$0xf]  ;;  %v1824_v44 = vld [vmem:[#allocation2 + $0x58] sm:$0xf0]  ;;  %v2403_v45 = vor.u32 %v1823_v40, %v1395_v39 }
  0x3d   :  { %v2405_v46 = vor.u32 %v1822_v41, %v1397_v42  ;;  %v2407_v50 = vor.u32 %v1824_v44, %v1403_v43  ;;  %v1867_v51 = vld [vmem:[%s2984_s1 + $0x124] sm:$0xf]  ;;  %v1577_v52 = vld [vmem:[%s2984_s1 + $0x130] sm:$0xf0]  ;;  %v1439_v53 = vld [vmem:[%s2984_s1 + $0x8] sm:$0xf] }
  0x3e   :  { %1047 = vmatpush.bf16.msrb.mxu2 %v1456_v28  ;;  %1086 = vmatpush.bf16.msrb.mxu3 %v1584_v32  ;;  %v1580_v54 = vor.u32 %v1867_v51, %v1577_v52  ;;  %v1834_v55 = vld [vmem:[%s2984_s1 + $0x14] sm:$0xf0]  ;;  %v1567_v56 = vld [vmem:[%s2984_s1 + $0x108] sm:$0xf]  ;;  %v1895_v62 = vld [vmem:[%s2984_s1 + $0x204] sm:$0xf] }
  0x3f   :  { %1008 = vmatpush.bf16.msrb.mxu1 %v1708_v36  ;;  %v1866_v59 = vld [vmem:[%s2984_s1 + $0x114] sm:$0xf0]  ;;  %v1440_v60 = vor.u32 %v1834_v55, %v1439_v53  ;;  %v1689_v63 = vld [vmem:[%s2984_s1 + $0x210] sm:$0xf0]  ;;  %v1863_v0 = vld [vmem:[%s2984_s1 + $0x104] sm:$0xf] }
  0x40   :  { %v1568_v61 = vor.u32 %v1866_v59, %v1567_v56  ;;  %969 = vmatpush.bf16.msrb.mxu0 %v1580_v54  ;;  %v1692_v2 = vor.u32 %v1895_v62, %v1689_v63  ;;  %v1561_v3 = vld [vmem:[%s2984_s1 + $0x110] sm:$0xf0]  ;;  %v1407_v5 = vld [vmem:[#allocation2 + $0x60] sm:$0xf]  ;;  %v1826_v6 = vld [vmem:[#allocation2 + $0x68] sm:$0xf0] }
  0x41   :  { %v1564_v4 = vor.u32 %v1863_v0, %v1561_v3  ;;  %v1825_v7 = vld [vmem:[#allocation2 + $0x64] sm:$0xf]  ;;  %v1409_v8 = vld [vmem:[#allocation2 + $0x6c] sm:$0xf0]  ;;  %v1415_v9 = vld [vmem:[#allocation2 + $0x68] sm:$0xf]  ;;  %v2443_v11 = vor.u32 %v1826_v6, %v1407_v5 }
  0x42   :  { %1048 = vmatpush.bf16.msrb.mxu2 %v1440_v60  ;;  %1087 = vmatpush.bf16.msrb.mxu3 %v1568_v61  ;;  %v1827_v10 = vld [vmem:[#allocation2 + $0x70] sm:$0xf0]  ;;  %v2445_v12 = vor.u32 %v1825_v7, %v1409_v8  ;;  %v1892_v14 = vld [vmem:[%s2984_s1 + $0x1ec] sm:$0xf]  ;;  %v1681_v15 = vld [vmem:[%s2984_s1 + $0x1f8] sm:$0xf0] }
  0x43   :  { %1009 = vmatpush.bf16.msrb.mxu1 %v1692_v2  ;;  %v2447_v13 = vor.u32 %v1827_v10, %v1415_v9  ;;  %v1924_v16 = vld [vmem:[%s2984_s1 + $0x2ec] sm:$0xf]  ;;  %v1684_v20 = vor.u32 %v1892_v14, %v1681_v15  ;;  %v1809_v21 = vld [vmem:[%s2984_s1 + $0x2f8] sm:$0xf0]  ;;  %v1807_v26 = vld [vmem:[%s2984_s1 + $0x2e8] sm:$0xf] }
  0x44   :  { %825 = vmatmul.bf16.gmra.mxu0 %v2351_v17  ;;  %864 = vmatmul.bf16.gmra.mxu1 %v2353_v18  ;;  %v1860_v22 = vld [vmem:[%s2984_s1 + $0xec] sm:$0xf]  ;;  %v1553_v23 = vld [vmem:[%s2984_s1 + $0xf8] sm:$0xf0]  ;;  %v1812_v24 = vor.u32 %v1924_v16, %v1809_v21  ;;  %v1926_v27 = vld [vmem:[%s2984_s1 + $0x2f4] sm:$0xf0] }
  0x45   :  { %903 = vmatmul.bf16.gmra.mxu2 %v2355_v19  ;;  %942 = vmatmul.bf16.gmra.mxu3 %v2351_v17  ;;  %v1556_v25 = vor.u32 %v1860_v22, %v1553_v23  ;;  %v1888_v28 = vld [vmem:[%s2984_s1 + $0x1cc] sm:$0xf]  ;;  %v1808_v29 = vor.u32 %v1926_v27, %v1807_v26  ;;  %v1665_v30 = vld [vmem:[%s2984_s1 + $0x1d8] sm:$0xf0]  ;;  %v1419_v35 = vld [vmem:[#allocation2 + $0x78] sm:$0xf] }
  0x46   :  { %970 = vmatpush.bf16.msrb.mxu0 %v1564_v4  ;;  %1197 = vmatpush.bf16.msra.mxu2 %v1684_v20  ;;  %v1920_v31 = vld [vmem:[%s2984_s1 + $0x2cc] sm:$0xf]  ;;  %v1793_v32 = vld [vmem:[%s2984_s1 + $0x2d8] sm:$0xf0]  ;;  %v1668_v33 = vor.u32 %v1888_v28, %v1665_v30  ;;  %v1829_v36 = vld [vmem:[#allocation2 + $0x80] sm:$0xf0] }
  0x47   :  { %1236 = vmatpush.bf16.msra.mxu3 %v1812_v24  ;;  %1158 = vmatpush.bf16.msra.mxu1 %v1556_v25  ;;  %v1796_v34 = vor.u32 %v1920_v31, %v1793_v32  ;;  %v1828_v37 = vld [vmem:[#allocation2 + $0x7c] sm:$0xf]  ;;  %v1421_v38 = vld [vmem:[#allocation2 + $0x84] sm:$0xf0]  ;;  %v1427_v39 = vld [vmem:[#allocation2 + $0x80] sm:$0xf]  ;;  %v2489_v41 = vor.u32 %v1829_v36, %v1419_v35 }
  0x48   :  { %v1830_v40 = vld [vmem:[#allocation2 + $0x88] sm:$0xf0]  ;;  %v2491_v42 = vor.u32 %v1828_v37, %v1421_v38  ;;  %v1537_v51 = vld [vmem:[%s2984_s1 + $0xd8] sm:$0xf0]  ;;  %v1791_v52 = vld [vmem:[%s2984_s1 + $0x2c8] sm:$0xf] }
  0x49   :  { %v2493_v43 = vor.u32 %v1830_v40, %v1427_v39  ;;  %v1856_v44 = vld [vmem:[%s2984_s1 + $0xcc] sm:$0xf]  ;;  %v1922_v54 = vld [vmem:[%s2984_s1 + $0x2d4] sm:$0xf0]  ;;  %v1649_v56 = vld [vmem:[%s2984_s1 + $0x1b8] sm:$0xf0] }
  0x4a   :  { %1119 = vmatpush.bf16.msra.mxu0 %v1808_v29  ;;  %1198 = vmatpush.bf16.msra.mxu2 %v1668_v33  ;;  %v1540_v53 = vor.u32 %v1856_v44, %v1537_v51  ;;  %v1884_v55 = vld [vmem:[%s2984_s1 + $0x1ac] sm:$0xf]  ;;  %v1792_v59 = vor.u32 %v1922_v54, %v1791_v52  ;;  %v1777_v62 = vld [vmem:[%s2984_s1 + $0x2b8] sm:$0xf0]  ;;  %v1775_v4 = vld [vmem:[%s2984_s1 + $0x2a8] sm:$0xf] }
  0x4b   :  { %1237 = vmatpush.bf16.msra.mxu3 %v1796_v34  ;;  %v1652_v60 = vor.u32 %v1884_v55, %v1649_v56  ;;  %v1916_v61 = vld [vmem:[%s2984_s1 + $0x2ac] sm:$0xf]  ;;  %v1521_v2 = vld [vmem:[%s2984_s1 + $0xb8] sm:$0xf0]  ;;  %v1918_v5 = vld [vmem:[%s2984_s1 + $0x2b4] sm:$0xf0] }
  0x4c   :  { %v1852_v63 = vld [vmem:[%s2984_s1 + $0xac] sm:$0xf]  ;;  %1159 = vmatpush.bf16.msra.mxu1 %v1540_v53  ;;  %v1780_v0 = vor.u32 %v1916_v61, %v1777_v62  ;;  %v1776_v6 = vor.u32 %v1918_v5, %v1775_v4  ;;  %v1633_v8 = vld [vmem:[%s2984_s1 + $0x198] sm:$0xf0]  ;;  %v1759_v22 = vld [vmem:[%s2984_s1 + $0x288] sm:$0xf] }
  0x4d   :  { %v1524_v3 = vor.u32 %v1852_v63, %v1521_v2  ;;  %v1880_v7 = vld [vmem:[%s2984_s1 + $0x18c] sm:$0xf]  ;;  %v1761_v14 = vld [vmem:[%s2984_s1 + $0x298] sm:$0xf0]  ;;  %v1914_v23 = vld [vmem:[%s2984_s1 + $0x294] sm:$0xf0] }
  0x4e   :  { %1120 = vmatpush.bf16.msra.mxu0 %v1792_v59  ;;  %1199 = vmatpush.bf16.msra.mxu2 %v1652_v60  ;;  %v1636_v9 = vor.u32 %v1880_v7, %v1633_v8  ;;  %v1912_v10 = vld [vmem:[%s2984_s1 + $0x28c] sm:$0xf]  ;;  %v1505_v20 = vld [vmem:[%s2984_s1 + $0x98] sm:$0xf0]  ;;  %v1760_v24 = vor.u32 %v1914_v23, %v1759_v22  ;;  %v2582_v31 = vld [vmem:[%s2986_s2] sm:$0xf] }
  0x4f   :  { %1238 = vmatpush.bf16.msra.mxu3 %v1780_v0  ;;  %v1848_v15 = vld [vmem:[%s2984_s1 + $0x8c] sm:$0xf]  ;;  %v1764_v16 = vor.u32 %v1912_v10, %v1761_v14  ;;  %v1617_v26 = vld [vmem:[%s2984_s1 + $0x178] sm:$0xf0]  ;;  %v1743_v35 = vld [vmem:[%s2984_s1 + $0x268] sm:$0xf] }
  0x50   :  { %1160 = vmatpush.bf16.msra.mxu1 %v1524_v3  ;;  %v1508_v21 = vor.u32 %v1848_v15, %v1505_v20  ;;  %v1876_v25 = vld [vmem:[%s2984_s1 + $0x16c] sm:$0xf]  ;;  %v1745_v29 = vld [vmem:[%s2984_s1 + $0x278] sm:$0xf0]  ;;  %v1910_v36 = vld [vmem:[%s2984_s1 + $0x274] sm:$0xf0] }
  0x51   :  { %v1908_v27 = vld [vmem:[%s2984_s1 + $0x26c] sm:$0xf]  ;;  %v1620_v28 = vor.u32 %v1876_v25, %v1617_v26  ;;  %v1489_v33 = vld [vmem:[%s2984_s1 + $0x78] sm:$0xf0]  ;;  %v1744_v37 = vor.u32 %v1910_v36, %v1743_v35  ;;  %v2597_v38 = vperm.slane %v2582_v31, 0 }
  0x52   :  { %1121 = vmatpush.bf16.msra.mxu0 %v1776_v6  ;;  %1200 = vmatpush.bf16.msra.mxu2 %v1636_v9  ;;  %v1748_v30 = vor.u32 %v1908_v27, %v1745_v29  ;;  %v1844_v32 = vld [vmem:[%s2984_s1 + $0x6c] sm:$0xf]  ;;  %v1601_v52 = vld [vmem:[%s2984_s1 + $0x158] sm:$0xf0]  ;;  %v1727_v6 = vld [vmem:[%s2984_s1 + $0x248] sm:$0xf] }
  0x53   :  { %1239 = vmatpush.bf16.msra.mxu3 %v1764_v16  ;;  %v1492_v34 = vor.u32 %v1844_v32, %v1489_v33  ;;  %v1872_v51 = vld [vmem:[%s2984_s1 + $0x14c] sm:$0xf]  ;;  %v1729_v55 = vld [vmem:[%s2984_s1 + $0x258] sm:$0xf0]  ;;  %v1906_v7 = vld [vmem:[%s2984_s1 + $0x254] sm:$0xf0] }
  0x54   :  { %830 = vmatmul.bf16.gmra.mxu0 %v2403_v45  ;;  %869 = vmatmul.bf16.gmra.mxu1 %v2405_v46  ;;  %v1604_v53 = vor.u32 %v1872_v51, %v1601_v52  ;;  %v1904_v54 = vld [vmem:[%s2984_s1 + $0x24c] sm:$0xf]  ;;  %v1473_v61 = vld [vmem:[%s2984_s1 + $0x58] sm:$0xf0]  ;;  %v1728_v8 = vor.u32 %v1906_v7, %v1727_v6  ;;  %v1711_v33 = vld [vmem:[%s2984_s1 + $0x228] sm:$0xf] }
  0x55   :  { %908 = vmatmul.bf16.gmra.mxu2 %v2407_v50  ;;  %947 = vmatmul.bf16.gmra.mxu3 %v2403_v45  ;;  %v1732_v59 = vor.u32 %v1904_v54, %v1729_v55  ;;  %v1840_v60 = vld [vmem:[%s2984_s1 + $0x4c] sm:$0xf]  ;;  %v1585_v10 = vld [vmem:[%s2984_s1 + $0x138] sm:$0xf0] }
  0x56   :  { %1161 = vmatpush.bf16.msra.mxu1 %v1508_v21  ;;  %1122 = vmatpush.bf16.msra.mxu0 %v1760_v24  ;;  %v1476_v62 = vor.u32 %v1840_v60, %v1473_v61  ;;  %v1868_v9 = vld [vmem:[%s2984_s1 + $0x12c] sm:$0xf]  ;;  %v1713_v16 = vld [vmem:[%s2984_s1 + $0x238] sm:$0xf0] }
  0x57   :  { %1201 = vmatpush.bf16.msra.mxu2 %v1620_v28  ;;  %1240 = vmatpush.bf16.msra.mxu3 %v1748_v30  ;;  %v1900_v14 = vld [vmem:[%s2984_s1 + $0x22c] sm:$0xf]  ;;  %v1588_v15 = vor.u32 %v1868_v9, %v1585_v10  ;;  %v1457_v29 = vld [vmem:[%s2984_s1 + $0x38] sm:$0xf0] }
  0x58   :  { %v1716_v20 = vor.u32 %v1900_v14, %v1713_v16  ;;  %v1836_v28 = vld [vmem:[%s2984_s1 + $0x2c] sm:$0xf]  ;;  %v1441_v61 = vld [vmem:[%s2984_s1 + $0x18] sm:$0xf0] }
  0x59   :  { %v1460_v30 = vor.u32 %v1836_v28, %v1457_v29  ;;  %v1864_v52 = vld [vmem:[%s2984_s1 + $0x10c] sm:$0xf] }
  0x5a   :  { %1162 = vmatpush.bf16.msra.mxu1 %v1492_v34  ;;  %1123 = vmatpush.bf16.msra.mxu0 %v1744_v37  ;;  %v1902_v34 = vld [vmem:[%s2984_s1 + $0x234] sm:$0xf0]  ;;  %v1896_v55 = vld [vmem:[%s2984_s1 + $0x20c] sm:$0xf] }
  0x5b   :  { %1202 = vmatpush.bf16.msra.mxu2 %v1604_v53  ;;  %1241 = vmatpush.bf16.msra.mxu3 %v1732_v59  ;;  %v1712_v35 = vor.u32 %v1902_v34, %v1711_v33  ;;  %v1569_v53 = vld [vmem:[%s2984_s1 + $0x118] sm:$0xf0]  ;;  %v1832_v59 = vld [vmem:[%s2984_s1 + $0xc] sm:$0xf] }
  0x5c   :  { %v1572_v54 = vor.u32 %v1864_v52, %v1569_v53 }
  0x5e   :  { %1163 = vmatpush.bf16.msra.mxu1 %v1476_v62  ;;  %1124 = vmatpush.bf16.msra.mxu0 %v1728_v8  ;;  %v1444_v62 = vor.u32 %v1832_v59, %v1441_v61 }
  0x5f   :  { %1203 = vmatpush.bf16.msra.mxu2 %v1588_v15  ;;  %1242 = vmatpush.bf16.msra.mxu3 %v1716_v20 }
  0x62   :  { %1164 = vmatpush.bf16.msra.mxu1 %v1460_v30  ;;  %1125 = vmatpush.bf16.msra.mxu0 %v1712_v35 }
  0x63   :  { %1204 = vmatpush.bf16.msra.mxu2 %v1572_v54 }
  0x64   :  { %835 = vmatmul.bf16.gmra.mxu0 %v2443_v11  ;;  %874 = vmatmul.bf16.gmra.mxu1 %v2445_v12 }
  0x65   :  { %913 = vmatmul.bf16.gmra.mxu2 %v2447_v13  ;;  %952 = vmatmul.bf16.gmra.mxu3 %v2443_v11 }
  0x66   :  { %1165 = vmatpush.bf16.msra.mxu1 %v1444_v62 }
  0x74   :  { %840 = vmatmul.bf16.gmra.mxu0 %v2489_v41  ;;  %879 = vmatmul.bf16.gmra.mxu1 %v2491_v42 }
  0x75   :  { %918 = vmatmul.bf16.gmra.mxu2 %v2493_v43  ;;  %957 = vmatmul.bf16.gmra.mxu3 %v2489_v41 }
  0x84   :  { %971 = vmatmul.bf16.vlgmr.msrb.gmra.mxu0 %v2198_v58  ;;  %1010 = vmatmul.bf16.vlgmr.msrb.gmra.mxu1 %v2209_v1 }
  0x85   :  { %1049 = vmatmul.bf16.vlgmr.msrb.gmra.mxu2 %v2196_v57  ;;  %1088 = vmatmul.bf16.vlgmr.msrb.gmra.mxu3 %v2198_v58 }
  0x94   :  { %976 = vmatmul.bf16.gmra.mxu0 %v2295_v48  ;;  %1015 = vmatmul.bf16.gmra.mxu1 %v2297_v49 }
  0x95   :  { %1054 = vmatmul.bf16.gmra.mxu2 %v2293_v47  ;;  %1093 = vmatmul.bf16.gmra.mxu3 %v2295_v48 }
  0xa0   :  { %v816_v39 = vpop.f32.mrf.mxu0 }
  0xa1   :  { %v817_v40 = vadd.f32 %v816_v39, %v2597_v38  ;;  %v855_v44 = vpop.f32.mrf.mxu1 }
  0xa3   :  { %v856_v56 = vadd.f32 %v855_v44, %v817_v40 }
  0xa4   :  { %981 = vmatmul.bf16.gmra.mxu0 %v2353_v18  ;;  %1020 = vmatmul.bf16.gmra.mxu1 %v2355_v19 }
  0xa5   :  { %1059 = vmatmul.bf16.gmra.mxu2 %v2351_v17  ;;  %1098 = vmatmul.bf16.gmra.mxu3 %v2353_v18 }
  0xa7   :  { %v2622_v2 = vpop.f32.mrf.mxu3 }
  0xa8   :  { %v894_v63 = vpop.f32.mrf.mxu2  ;;  %v818_v3 = vpop.f32.mrf.mxu0 }
  0xa9   :  { %v895_v0 = vadd.f32 %v894_v63, %v856_v56  ;;  %v857_v4 = vpop.f32.mrf.mxu1  ;;  %v819_v5 = vadd.f32 %v818_v3, %v2597_v38  ;;  %v1697_v56 = vld [vmem:[%s2984_s1 + $0x218] sm:$0xf0]  ;;  %v1695_v3 = vld [vmem:[%s2984_s1 + $0x208] sm:$0xf] }
  0xaa   :  { %v1700_v60 = vor.u32 %v1896_v55, %v1697_v56 }
  0xab   :  { %1275 = vst [vmem:[%s2987_s3] sm:$0xff] %v895_v0  ;;  %v858_v21 = vadd.f32 %v857_v4, %v819_v5  ;;  %v1898_v4 = vld [vmem:[%s2984_s1 + $0x214] sm:$0xf0] }
  0xac   :  { %1243 = vmatpush.bf16.msra.mxu3 %v1700_v60  ;;  %v1696_v8 = vor.u32 %v1898_v4, %v1695_v3 }
  0xae   :  { %1126 = vmatpush.bf16.msra.mxu0 %v1696_v8 }
  0xaf   :  { %v2646_v24 = vpop.f32.mrf.mxu3 }
  0xb0   :  { %v896_v22 = vpop.f32.mrf.mxu2 }
  0xb1   :  { %v897_v23 = vadd.f32 %v896_v22, %v858_v21  ;;  %v821_v25 = vpop.f32.mrf.mxu0  ;;  %v860_v27 = vpop.f32.mrf.mxu1 }
  0xb2   :  { %v822_v26 = vadd.f32 %v821_v25, %v2597_v38 }
  0xb3   :  { %1279 = vst [vmem:[%s2987_s3 + $0x20] sm:$0xff] %v897_v23 }
  0xb4   :  { %986 = vmatmul.bf16.gmra.mxu0 %v2405_v46  ;;  %v861_v32 = vadd.f32 %v860_v27, %v822_v26  ;;  %1025 = vmatmul.bf16.gmra.mxu1 %v2407_v50 }
  0xb5   :  { %1064 = vmatmul.bf16.gmra.mxu2 %v2403_v45  ;;  %1103 = vmatmul.bf16.gmra.mxu3 %v2405_v46 }
  0xb8   :  { %v899_v36 = vpop.f32.mrf.mxu2  ;;  %v2668_v39 = vpop.f32.mrf.mxu3 }
  0xb9   :  { %v900_v37 = vadd.f32 %v899_v36, %v861_v32  ;;  %v823_v40 = vpop.f32.mrf.mxu0  ;;  %v862_v44 = vpop.f32.mrf.mxu1 }
  0xba   :  { %v824_v51 = vadd.f32 %v823_v40, %v2597_v38 }
  0xbb   :  { %1283 = vst [vmem:[%s2987_s3 + $0x40] sm:$0xff] %v900_v37 }
  0xbc   :  { %v863_v63 = vadd.f32 %v862_v44, %v824_v51 }
  0xc0   :  { %v901_v0 = vpop.f32.mrf.mxu2  ;;  %v2698_v6 = vpop.f32.mrf.mxu3 }
  0xc1   :  { %v902_v5 = vadd.f32 %v901_v0, %v863_v63  ;;  %v826_v7 = vpop.f32.mrf.mxu0  ;;  %v865_v10 = vpop.f32.mrf.mxu1 }
  0xc2   :  { %v827_v9 = vadd.f32 %v826_v7, %v2597_v38 }
  0xc3   :  { %1287 = vst [vmem:[%s2987_s3 + $0x60] sm:$0xff] %v902_v5 }
  0xc4   :  { %991 = vmatmul.bf16.gmra.mxu0 %v2445_v12  ;;  %v866_v14 = vadd.f32 %v865_v10, %v827_v9  ;;  %1030 = vmatmul.bf16.gmra.mxu1 %v2447_v13 }
  0xc5   :  { %1069 = vmatmul.bf16.gmra.mxu2 %v2443_v11  ;;  %1108 = vmatmul.bf16.gmra.mxu3 %v2445_v12 }
  0xc8   :  { %v904_v15 = vpop.f32.mrf.mxu2  ;;  %v2708_v20 = vpop.f32.mrf.mxu3 }
  0xc9   :  { %v905_v16 = vadd.f32 %v904_v15, %v866_v14  ;;  %v828_v21 = vpop.f32.mrf.mxu0  ;;  %v867_v22 = vpop.f32.mrf.mxu1 }
  0xca   :  { %v829_v23 = vadd.f32 %v828_v21, %v2597_v38 }
  0xcb   :  { %1291 = vst [vmem:[%s2987_s3 + $0x80] sm:$0xff] %v905_v16 }
  0xcc   :  { %v868_v25 = vadd.f32 %v867_v22, %v829_v23 }
  0xd0   :  { %v906_v26 = vpop.f32.mrf.mxu2  ;;  %v2714_v28 = vpop.f32.mrf.mxu3 }
  0xd1   :  { %v907_v27 = vadd.f32 %v906_v26, %v868_v25  ;;  %v831_v29 = vpop.f32.mrf.mxu0  ;;  %v870_v32 = vpop.f32.mrf.mxu1  ;;  %v2763_v25 = vperm.slane %v2582_v31, 1 }
  0xd2   :  { %v832_v30 = vadd.f32 %v831_v29, %v2597_v38 }
  0xd3   :  { %1295 = vst [vmem:[%s2987_s3 + $0xa0] sm:$0xff] %v907_v27 }
  0xd4   :  { %996 = vmatmul.bf16.gmra.mxu0 %v2491_v42  ;;  %v871_v33 = vadd.f32 %v870_v32, %v832_v30  ;;  %1035 = vmatmul.bf16.gmra.mxu1 %v2493_v43 }
  0xd5   :  { %1074 = vmatmul.bf16.gmra.mxu2 %v2489_v41  ;;  %1113 = vmatmul.bf16.gmra.mxu3 %v2491_v42 }
  0xd8   :  { %v909_v34 = vpop.f32.mrf.mxu2  ;;  %v2724_v36 = vpop.f32.mrf.mxu3 }
  0xd9   :  { %v910_v35 = vadd.f32 %v909_v34, %v871_v33  ;;  %v833_v37 = vpop.f32.mrf.mxu0  ;;  %v872_v40 = vpop.f32.mrf.mxu1 }
  0xda   :  { %v834_v44 = vadd.f32 %v833_v37, %v2597_v38 }
  0xdb   :  { %1299 = vst [vmem:[%s2987_s3 + $0xc0] sm:$0xff] %v910_v35 }
  0xdc   :  { %v873_v51 = vadd.f32 %v872_v40, %v834_v44 }
  0xe0   :  { %v911_v52 = vpop.f32.mrf.mxu2  ;;  %v2730_v54 = vpop.f32.mrf.mxu3 }
  0xe1   :  { %v912_v53 = vadd.f32 %v911_v52, %v873_v51  ;;  %v836_v55 = vpop.f32.mrf.mxu0  ;;  %v875_v59 = vpop.f32.mrf.mxu1 }
  0xe2   :  { %v837_v56 = vadd.f32 %v836_v55, %v2597_v38 }
  0xe3   :  { %1303 = vst [vmem:[%s2987_s3 + $0xe0] sm:$0xff] %v912_v53 }
  0xe4   :  { %1127 = vmatmul.bf16.vlgmr.msra.gmra.mxu0 %v2209_v1  ;;  %v876_v60 = vadd.f32 %v875_v59, %v837_v56  ;;  %1166 = vmatmul.bf16.vlgmr.msra.gmra.mxu1 %v2196_v57 }
  0xe5   :  { %1205 = vmatmul.bf16.vlgmr.msra.gmra.mxu2 %v2198_v58  ;;  %1244 = vmatmul.bf16.vlgmr.msra.gmra.mxu3 %v2209_v1 }
  0xe8   :  { %v914_v61 = vpop.f32.mrf.mxu2  ;;  %v2740_v63 = vpop.f32.mrf.mxu3 }
  0xe9   :  { %v915_v62 = vadd.f32 %v914_v61, %v876_v60  ;;  %v838_v0 = vpop.f32.mrf.mxu0  ;;  %v877_v3 = vpop.f32.mrf.mxu1 }
  0xea   :  { %v839_v4 = vadd.f32 %v838_v0, %v2597_v38 }
  0xeb   :  { %1307 = vst [vmem:[%s2987_s3 + $0x100] sm:$0xff] %v915_v62 }
  0xec   :  { %v878_v5 = vadd.f32 %v877_v3, %v839_v4 }
  0xf0   :  { %v916_v7 = vpop.f32.mrf.mxu2  ;;  %v2746_v57 = vpop.f32.mrf.mxu3 }
  0xf1   :  { %v917_v8 = vadd.f32 %v916_v7, %v878_v5  ;;  %v841_v58 = vpop.f32.mrf.mxu0  ;;  %v880_v9 = vpop.f32.mrf.mxu1 }
  0xf2   :  { %v842_v1 = vadd.f32 %v841_v58, %v2597_v38 }
  0xf3   :  { %1311 = vst [vmem:[%s2987_s3 + $0x120] sm:$0xff] %v917_v8 }
  0xf4   :  { %1132 = vmatmul.bf16.gmra.mxu0 %v2297_v49  ;;  %v881_v10 = vadd.f32 %v880_v9, %v842_v1  ;;  %1171 = vmatmul.bf16.gmra.mxu1 %v2293_v47 }
  0xf5   :  { %1210 = vmatmul.bf16.gmra.mxu2 %v2295_v48  ;;  %1249 = vmatmul.bf16.gmra.mxu3 %v2297_v49  ;;  %v934_v48 = vadd.f32 %v2622_v2, %v2763_v25  ;;  %v936_v2 = vadd.f32 %v2646_v24, %v2763_v25 }
  0xf8   :  { %v919_v14 = vpop.f32.mrf.mxu2  ;;  %v2756_v16 = vpop.f32.mrf.mxu3 }
  0xf9   :  { %v920_v15 = vadd.f32 %v919_v14, %v881_v10  ;;  %v843_v21 = vpop.f32.mrf.mxu0  ;;  %v882_v22 = vpop.f32.mrf.mxu1 }
  0xfa   :  { %v844_v23 = vadd.f32 %v843_v21, %v2597_v38  ;;  %v2776_v38 = vperm.slane %v2582_v31, 2 }
  0xfb   :  { %1315 = vst [vmem:[%s2987_s3 + $0x140] sm:$0xff] %v920_v15 }
  0xfc   :  { %v883_v47 = vadd.f32 %v882_v22, %v844_v23 }
 0x100   :  { %v921_v49 = vpop.f32.mrf.mxu2  ;;  %v2767_v27 = vpop.f32.mrf.mxu3 }
 0x101   :  { %v922_v26 = vadd.f32 %v921_v49, %v883_v47  ;;  %v972_v29 = vpop.f32.mrf.mxu0  ;;  %v1011_v32 = vpop.f32.mrf.mxu1 }
 0x102   :  { %v973_v30 = vadd.f32 %v972_v29, %v934_v48 }
 0x103   :  { %1319 = vst [vmem:[%s2987_s3 + $0x160] sm:$0xff] %v922_v26 }
 0x104   :  { %v1012_v33 = vadd.f32 %v1011_v32, %v973_v30  ;;  %1137 = vmatmul.bf16.gmra.mxu0 %v2355_v19  ;;  %1176 = vmatmul.bf16.gmra.mxu1 %v2351_v17 }
 0x105   :  { %1215 = vmatmul.bf16.gmra.mxu2 %v2353_v18  ;;  %1254 = vmatmul.bf16.gmra.mxu3 %v2355_v19  ;;  %v939_v19 = vadd.f32 %v2668_v39, %v2763_v25  ;;  %v941_v39 = vadd.f32 %v2698_v6, %v2763_v25 }
 0x106   :  { %1276 = vst [vmem:[%s2987_s3 + $0x8] sm:$0xff] %v1012_v33 }
 0x108   :  { %v1050_v34 = vpop.f32.mrf.mxu2  ;;  %v1089_v37 = vpop.f32.mrf.mxu3 }
 0x109   :  { %v1051_v35 = vadd.f32 %v1050_v34, %v2776_v38  ;;  %v974_v40 = vpop.f32.mrf.mxu0  ;;  %v1013_v44 = vpop.f32.mrf.mxu1 }
 0x10a   :  { %v975_v17 = vadd.f32 %v974_v40, %v936_v2 }
 0x10b   :  { %v2785_v18 = vadd.f32 %v1089_v37, %v1051_v35 }
 0x10c   :  { %v1014_v51 = vadd.f32 %v1013_v44, %v975_v17 }
 0x10e   :  { %1280 = vst [vmem:[%s2987_s3 + $0x28] sm:$0xff] %v1014_v51 }
 0x110   :  { %v1052_v52 = vpop.f32.mrf.mxu2  ;;  %v1091_v53 = vpop.f32.mrf.mxu3 }
 0x111   :  { %v1053_v24 = vadd.f32 %v1052_v52, %v2776_v38  ;;  %v977_v55 = vpop.f32.mrf.mxu0  ;;  %v1016_v59 = vpop.f32.mrf.mxu1 }
 0x112   :  { %v978_v56 = vadd.f32 %v977_v55, %v939_v19 }
 0x113   :  { %v2793_v60 = vadd.f32 %v1091_v53, %v1053_v24 }
 0x114   :  { %v1017_v61 = vadd.f32 %v1016_v59, %v978_v56  ;;  %1142 = vmatmul.bf16.gmra.mxu0 %v2407_v50  ;;  %1181 = vmatmul.bf16.gmra.mxu1 %v2403_v45 }
 0x115   :  { %1220 = vmatmul.bf16.gmra.mxu2 %v2405_v46  ;;  %1259 = vmatmul.bf16.gmra.mxu3 %v2407_v50  ;;  %v944_v46 = vadd.f32 %v2708_v20, %v2763_v25  ;;  %v946_v20 = vadd.f32 %v2714_v28, %v2763_v25 }
 0x116   :  { %1284 = vst [vmem:[%s2987_s3 + $0x48] sm:$0xff] %v1017_v61  ;;  %v956_v61 = vadd.f32 %v2746_v57, %v2763_v25 }
 0x118   :  { %v1055_v62 = vpop.f32.mrf.mxu2  ;;  %v1094_v3 = vpop.f32.mrf.mxu3 }
 0x119   :  { %v1056_v0 = vadd.f32 %v1055_v62, %v2776_v38  ;;  %v979_v4 = vpop.f32.mrf.mxu0  ;;  %v1018_v7 = vpop.f32.mrf.mxu1 }
 0x11a   :  { %v980_v5 = vadd.f32 %v979_v4, %v941_v39 }
 0x11b   :  { %v2805_v8 = vadd.f32 %v1094_v3, %v1056_v0 }
 0x11c   :  { %v1019_v45 = vadd.f32 %v1018_v7, %v980_v5 }
 0x11e   :  { %1288 = vst [vmem:[%s2987_s3 + $0x68] sm:$0xff] %v1019_v45  ;;  %v959_v45 = vadd.f32 %v2756_v16, %v2763_v25 }
 0x120   :  { %v1057_v50 = vpop.f32.mrf.mxu2  ;;  %v1096_v58 = vpop.f32.mrf.mxu3 }
 0x121   :  { %v1058_v6 = vadd.f32 %v1057_v50, %v2776_v38  ;;  %v982_v1 = vpop.f32.mrf.mxu0  ;;  %v1021_v10 = vpop.f32.mrf.mxu1 }
 0x122   :  { %v983_v9 = vadd.f32 %v982_v1, %v944_v46 }
 0x123   :  { %v2813_v14 = vadd.f32 %v1096_v58, %v1058_v6 }
 0x124   :  { %v1022_v15 = vadd.f32 %v1021_v10, %v983_v9  ;;  %1147 = vmatmul.bf16.gmra.mxu0 %v2447_v13  ;;  %1186 = vmatmul.bf16.gmra.mxu1 %v2443_v11 }
 0x125   :  { %1225 = vmatmul.bf16.gmra.mxu2 %v2445_v12  ;;  %1264 = vmatmul.bf16.gmra.mxu3 %v2447_v13  ;;  %v949_v12 = vadd.f32 %v2724_v36, %v2763_v25  ;;  %v951_v36 = vadd.f32 %v2730_v54, %v2763_v25 }
 0x126   :  { %1292 = vst [vmem:[%s2987_s3 + $0x88] sm:$0xff] %v1022_v15  ;;  %v961_v15 = vadd.f32 %v2767_v27, %v2763_v25 }
 0x128   :  { %v1060_v21 = vpop.f32.mrf.mxu2  ;;  %v1099_v23 = vpop.f32.mrf.mxu3 }
 0x129   :  { %v1061_v22 = vadd.f32 %v1060_v21, %v2776_v38  ;;  %v984_v47 = vpop.f32.mrf.mxu0  ;;  %v1023_v49 = vpop.f32.mrf.mxu1 }
 0x12a   :  { %v985_v48 = vadd.f32 %v984_v47, %v946_v20 }
 0x12b   :  { %v2825_v26 = vadd.f32 %v1099_v23, %v1061_v22 }
 0x12c   :  { %v1024_v11 = vadd.f32 %v1023_v49, %v985_v48 }
 0x12e   :  { %1296 = vst [vmem:[%s2987_s3 + $0xa8] sm:$0xff] %v1024_v11 }
 0x130   :  { %v1062_v13 = vpop.f32.mrf.mxu2  ;;  %v1101_v29 = vpop.f32.mrf.mxu3 }
 0x131   :  { %v1063_v28 = vadd.f32 %v1062_v13, %v2776_v38  ;;  %v987_v30 = vpop.f32.mrf.mxu0  ;;  %v1026_v33 = vpop.f32.mrf.mxu1 }
 0x132   :  { %v988_v32 = vadd.f32 %v987_v30, %v949_v12 }
 0x133   :  { %v2833_v2 = vadd.f32 %v1101_v29, %v1063_v28 }
 0x134   :  { %v1027_v34 = vadd.f32 %v1026_v33, %v988_v32  ;;  %1152 = vmatmul.bf16.gmra.mxu0 %v2493_v43  ;;  %1191 = vmatmul.bf16.gmra.mxu1 %v2489_v41 }
 0x135   :  { %1230 = vmatmul.bf16.gmra.mxu2 %v2491_v42  ;;  %1269 = vmatmul.bf16.gmra.mxu3 %v2493_v43  ;;  %v954_v42 = vadd.f32 %v2740_v63, %v2763_v25  ;;  %v2884_v25 = vperm.slane %v2582_v31, 3 }
 0x136   :  { %1300 = vst [vmem:[%s2987_s3 + $0xc8] sm:$0xff] %v1027_v34 }
 0x138   :  { %v1065_v35 = vpop.f32.mrf.mxu2  ;;  %v1104_v40 = vpop.f32.mrf.mxu3 }
 0x139   :  { %v1066_v37 = vadd.f32 %v1065_v35, %v2776_v38  ;;  %v989_v17 = vpop.f32.mrf.mxu0  ;;  %v1028_v51 = vpop.f32.mrf.mxu1 }
 0x13a   :  { %v990_v44 = vadd.f32 %v989_v17, %v951_v36 }
 0x13b   :  { %v2845_v19 = vadd.f32 %v1104_v40, %v1066_v37 }
 0x13c   :  { %v1029_v41 = vadd.f32 %v1028_v51, %v990_v44 }
 0x13e   :  { %1304 = vst [vmem:[%s2987_s3 + $0xe8] sm:$0xff] %v1029_v41 }
 0x140   :  { %v1067_v43 = vpop.f32.mrf.mxu2  ;;  %v1106_v52 = vpop.f32.mrf.mxu3 }
 0x141   :  { %v1068_v54 = vadd.f32 %v1067_v43, %v2776_v38  ;;  %v992_v24 = vpop.f32.mrf.mxu0  ;;  %v1031_v55 = vpop.f32.mrf.mxu1 }
 0x142   :  { %v993_v53 = vadd.f32 %v992_v24, %v954_v42 }
 0x143   :  { %v2853_v56 = vadd.f32 %v1106_v52, %v1068_v54 }
 0x144   :  { %v1032_v59 = vadd.f32 %v1031_v55, %v993_v53 }
 0x146   :  { %1308 = vst [vmem:[%s2987_s3 + $0x108] sm:$0xff] %v1032_v59 }
 0x148   :  { %v1070_v39 = vpop.f32.mrf.mxu2  ;;  %v1109_v62 = vpop.f32.mrf.mxu3 }
 0x149   :  { %v1071_v63 = vadd.f32 %v1070_v39, %v2776_v38  ;;  %v994_v0 = vpop.f32.mrf.mxu0  ;;  %v1033_v4 = vpop.f32.mrf.mxu1 }
 0x14a   :  { %v995_v3 = vadd.f32 %v994_v0, %v956_v61 }
 0x14b   :  { %v2861_v5 = vadd.f32 %v1109_v62, %v1071_v63 }
 0x14c   :  { %v1034_v7 = vadd.f32 %v1033_v4, %v995_v3 }
 0x14e   :  { %1312 = vst [vmem:[%s2987_s3 + $0x128] sm:$0xff] %v1034_v7 }
 0x150   :  { %v1072_v46 = vpop.f32.mrf.mxu2  ;;  %v1111_v50 = vpop.f32.mrf.mxu3 }
 0x151   :  { %v1073_v57 = vadd.f32 %v1072_v46, %v2776_v38  ;;  %v997_v6 = vpop.f32.mrf.mxu0  ;;  %v1036_v1 = vpop.f32.mrf.mxu1 }
 0x152   :  { %v998_v58 = vadd.f32 %v997_v6, %v959_v45 }
 0x153   :  { %v2869_v9 = vadd.f32 %v1111_v50, %v1073_v57 }
 0x154   :  { %v1037_v10 = vadd.f32 %v1036_v1, %v998_v58 }
 0x156   :  { %1316 = vst [vmem:[%s2987_s3 + $0x148] sm:$0xff] %v1037_v10 }
 0x158   :  { %v1075_v20 = vpop.f32.mrf.mxu2  ;;  %v1114_v21 = vpop.f32.mrf.mxu3 }
 0x159   :  { %v1076_v16 = vadd.f32 %v1075_v20, %v2776_v38  ;;  %v999_v22 = vpop.f32.mrf.mxu0  ;;  %v1038_v47 = vpop.f32.mrf.mxu1 }
 0x15a   :  { %v1000_v23 = vadd.f32 %v999_v22, %v961_v15 }
 0x15b   :  { %v2877_v48 = vadd.f32 %v1114_v21, %v1076_v16 }
 0x15c   :  { %v1039_v49 = vadd.f32 %v1038_v47, %v1000_v23 }
 0x15e   :  { %1320 = vst [vmem:[%s2987_s3 + $0x168] sm:$0xff] %v1039_v49 }
 0x160   :  { %v1077_v11 = vpop.f32.mrf.mxu2  ;;  %v1116_v13 = vpop.f32.mrf.mxu3 }
 0x161   :  { %v1078_v12 = vadd.f32 %v1077_v11, %v2776_v38  ;;  %v1128_v28 = vpop.f32.mrf.mxu0  ;;  %v1167_v29 = vpop.f32.mrf.mxu1 }
 0x162   :  { %v1129_v27 = vadd.f32 %v1128_v28, %v2785_v18  ;;  %v1168_v32 = vadd.f32 %v1167_v29, %v2884_v25 }
 0x163   :  { %v2887_v30 = vadd.f32 %v1116_v13, %v1078_v12 }
 0x164   :  { %1277 = vst [vmem:[%s2987_s3 + $0x10] sm:$0xff] %v1129_v27 }
 0x168   :  { %v1206_v33 = vpop.f32.mrf.mxu2  ;;  %v1245_v36 = vpop.f32.mrf.mxu3 }
 0x169   :  { %v1207_v34 = vadd.f32 %v1206_v33, %v1168_v32  ;;  %v1130_v38 = vpop.f32.mrf.mxu0  ;;  %v1169_v37 = vpop.f32.mrf.mxu1 }
 0x16a   :  { %v1131_v35 = vadd.f32 %v1130_v38, %v2793_v60  ;;  %v1170_v18 = vadd.f32 %v1169_v37, %v2884_v25 }
 0x16b   :  { %v1246_v31 = vadd.f32 %v1245_v36, %v1207_v34 }
 0x16c   :  { %1281 = vst [vmem:[%s2987_s3 + $0x30] sm:$0xff] %v1131_v35 }
 0x16d   :  { %1278 = vst [vmem:[%s2987_s3 + $0x18] sm:$0xff] %v1246_v31 }
 0x170   :  { %v1208_v40 = vpop.f32.mrf.mxu2  ;;  %v1247_v44 = vpop.f32.mrf.mxu3 }
 0x171   :  { %v1209_v17 = vadd.f32 %v1208_v40, %v1170_v18  ;;  %v1133_v51 = vpop.f32.mrf.mxu0  ;;  %v1172_v42 = vpop.f32.mrf.mxu1 }
 0x172   :  { %v1134_v41 = vadd.f32 %v1133_v51, %v2805_v8  ;;  %v1173_v43 = vadd.f32 %v1172_v42, %v2884_v25 }
 0x173   :  { %v1248_v60 = vadd.f32 %v1247_v44, %v1209_v17 }
 0x174   :  { %1285 = vst [vmem:[%s2987_s3 + $0x50] sm:$0xff] %v1134_v41 }
 0x175   :  { %1282 = vst [vmem:[%s2987_s3 + $0x38] sm:$0xff] %v1248_v60 }
 0x178   :  { %v1211_v54 = vpop.f32.mrf.mxu2  ;;  %v1250_v24 = vpop.f32.mrf.mxu3 }
 0x179   :  { %v1212_v52 = vadd.f32 %v1211_v54, %v1173_v43  ;;  %v1135_v53 = vpop.f32.mrf.mxu0  ;;  %v1174_v59 = vpop.f32.mrf.mxu1 }
 0x17a   :  { %v1136_v55 = vadd.f32 %v1135_v53, %v2813_v14  ;;  %v1175_v61 = vadd.f32 %v1174_v59, %v2884_v25 }
 0x17b   :  { %v1251_v8 = vadd.f32 %v1250_v24, %v1212_v52 }
 0x17c   :  { %1289 = vst [vmem:[%s2987_s3 + $0x70] sm:$0xff] %v1136_v55 }
 0x17d   :  { %1286 = vst [vmem:[%s2987_s3 + $0x58] sm:$0xff] %v1251_v8 }
 0x180   :  { %v1213_v39 = vpop.f32.mrf.mxu2  ;;  %v1252_v62 = vpop.f32.mrf.mxu3 }
 0x181   :  { %v1214_v63 = vadd.f32 %v1213_v39, %v1175_v61  ;;  %v1138_v0 = vpop.f32.mrf.mxu0  ;;  %v1177_v4 = vpop.f32.mrf.mxu1 }
 0x182   :  { %v1139_v3 = vadd.f32 %v1138_v0, %v2825_v26  ;;  %v1178_v7 = vadd.f32 %v1177_v4, %v2884_v25 }
 0x183   :  { %v1253_v14 = vadd.f32 %v1252_v62, %v1214_v63 }
 0x184   :  { %1293 = vst [vmem:[%s2987_s3 + $0x90] sm:$0xff] %v1139_v3 }
 0x185   :  { %1290 = vst [vmem:[%s2987_s3 + $0x78] sm:$0xff] %v1253_v14 }
 0x188   :  { %v1216_v45 = vpop.f32.mrf.mxu2  ;;  %v1255_v57 = vpop.f32.mrf.mxu3 }
 0x189   :  { %v1217_v46 = vadd.f32 %v1216_v45, %v1178_v7  ;;  %v1140_v50 = vpop.f32.mrf.mxu0  ;;  %v1179_v58 = vpop.f32.mrf.mxu1 }
 0x18a   :  { %v1141_v6 = vadd.f32 %v1140_v50, %v2833_v2  ;;  %v1180_v1 = vadd.f32 %v1179_v58, %v2884_v25 }
 0x18b   :  { %v1256_v26 = vadd.f32 %v1255_v57, %v1217_v46 }
 0x18c   :  { %1297 = vst [vmem:[%s2987_s3 + $0xb0] sm:$0xff] %v1141_v6 }
 0x18d   :  { %1294 = vst [vmem:[%s2987_s3 + $0x98] sm:$0xff] %v1256_v26 }
 0x190   :  { %v1218_v10 = vpop.f32.mrf.mxu2  ;;  %v1257_v20 = vpop.f32.mrf.mxu3 }
 0x191   :  { %v1219_v15 = vadd.f32 %v1218_v10, %v1180_v1  ;;  %v1143_v16 = vpop.f32.mrf.mxu0  ;;  %v1182_v22 = vpop.f32.mrf.mxu1 }
 0x192   :  { %v1144_v21 = vadd.f32 %v1143_v16, %v2845_v19  ;;  %v1183_v23 = vadd.f32 %v1182_v22, %v2884_v25 }
 0x193   :  { %v1258_v2 = vadd.f32 %v1257_v20, %v1219_v15 }
 0x194   :  { %1301 = vst [vmem:[%s2987_s3 + $0xd0] sm:$0xff] %v1144_v21 }
 0x195   :  { %1298 = vst [vmem:[%s2987_s3 + $0xb8] sm:$0xff] %v1258_v2 }
 0x198   :  { %v1221_v47 = vpop.f32.mrf.mxu2  ;;  %v1260_v11 = vpop.f32.mrf.mxu3 }
 0x199   :  { %v1222_v49 = vadd.f32 %v1221_v47, %v1183_v23  ;;  %v1145_v12 = vpop.f32.mrf.mxu0  ;;  %v1184_v28 = vpop.f32.mrf.mxu1 }
 0x19a   :  { %v1146_v13 = vadd.f32 %v1145_v12, %v2853_v56  ;;  %v1185_v27 = vadd.f32 %v1184_v28, %v2884_v25 }
 0x19b   :  { %v1261_v19 = vadd.f32 %v1260_v11, %v1222_v49 }
 0x19c   :  { %1305 = vst [vmem:[%s2987_s3 + $0xf0] sm:$0xff] %v1146_v13 }
 0x19d   :  { %1302 = vst [vmem:[%s2987_s3 + $0xd8] sm:$0xff] %v1261_v19 }
 0x1a0   :  { %v1223_v29 = vpop.f32.mrf.mxu2  ;;  %v1262_v33 = vpop.f32.mrf.mxu3 }
 0x1a1   :  { %v1224_v32 = vadd.f32 %v1223_v29, %v1185_v27  ;;  %v1148_v34 = vpop.f32.mrf.mxu0  ;;  %v1187_v38 = vpop.f32.mrf.mxu1 }
 0x1a2   :  { %v1149_v36 = vadd.f32 %v1148_v34, %v2861_v5  ;;  %v1188_v35 = vadd.f32 %v1187_v38, %v2884_v25 }
 0x1a3   :  { %v1263_v56 = vadd.f32 %v1262_v33, %v1224_v32 }
 0x1a4   :  { %1309 = vst [vmem:[%s2987_s3 + $0x110] sm:$0xff] %v1149_v36 }
 0x1a5   :  { %1306 = vst [vmem:[%s2987_s3 + $0xf8] sm:$0xff] %v1263_v56 }
 0x1a8   :  { %v1226_v37 = vpop.f32.mrf.mxu2  ;;  %v1265_v18 = vpop.f32.mrf.mxu3 }
 0x1a9   :  { %v1227_v31 = vadd.f32 %v1226_v37, %v1188_v35  ;;  %v1150_v40 = vpop.f32.mrf.mxu0  ;;  %v1189_v44 = vpop.f32.mrf.mxu1 }
 0x1aa   :  { %v1151_v17 = vadd.f32 %v1150_v40, %v2869_v9  ;;  %v1190_v51 = vadd.f32 %v1189_v44, %v2884_v25 }
 0x1ab   :  { %v1266_v5 = vadd.f32 %v1265_v18, %v1227_v31 }
 0x1ac   :  { %1313 = vst [vmem:[%s2987_s3 + $0x130] sm:$0xff] %v1151_v17 }
 0x1ad   :  { %1310 = vst [vmem:[%s2987_s3 + $0x118] sm:$0xff] %v1266_v5 }
 0x1b0   :  { %v1228_v41 = vpop.f32.mrf.mxu2  ;;  %v1267_v60 = vpop.f32.mrf.mxu3 }
 0x1b1   :  { %v1229_v42 = vadd.f32 %v1228_v41, %v1190_v51  ;;  %v1153_v43 = vpop.f32.mrf.mxu0  ;;  %v1192_v52 = vpop.f32.mrf.mxu1 }
 0x1b2   :  { %v1154_v54 = vadd.f32 %v1153_v43, %v2877_v48  ;;  %v1193_v24 = vadd.f32 %v1192_v52, %v2884_v25 }
 0x1b3   :  { %v1268_v9 = vadd.f32 %v1267_v60, %v1229_v42 }
 0x1b4   :  { %1317 = vst [vmem:[%s2987_s3 + $0x150] sm:$0xff] %v1154_v54 }
 0x1b5   :  { %1314 = vst [vmem:[%s2987_s3 + $0x138] sm:$0xff] %v1268_v9 }
 0x1b8   :  { %v1231_v53 = vpop.f32.mrf.mxu2  ;;  %v1270_v59 = vpop.f32.mrf.mxu3 }
 0x1b9   :  { %v1232_v55 = vadd.f32 %v1231_v53, %v1193_v24  ;;  %v1155_v8 = vpop.f32.mrf.mxu0  ;;  %v1194_v48 = vpop.f32.mrf.mxu1 }
 0x1ba   :  { %v1156_v61 = vadd.f32 %v1155_v8, %v2887_v30  ;;  %v1195_v63 = vadd.f32 %v1194_v48, %v2884_v25 }
 0x1bb   :  { %v1271_v39 = vadd.f32 %v1270_v59, %v1232_v55 }
 0x1bc   :  { %1321 = vst [vmem:[%s2987_s3 + $0x170] sm:$0xff] %v1156_v61 }
 0x1bd   :  { %1318 = vst [vmem:[%s2987_s3 + $0x158] sm:$0xff] %v1271_v39 }
 0x1c0   :  { %v1233_v62 = vpop.f32.mrf.mxu2  ;;  %v1272_v3 = vpop.f32.mrf.mxu3 }
 0x1c1   :  { %v1234_v0 = vadd.f32 %v1233_v62, %v1195_v63 }
 0x1c3   :  { %v1273_v4 = vadd.f32 %v1272_v3, %v1234_v0 }
 0x1c5   :  { %1322 = vst [vmem:[%s2987_s3 + $0x178] sm:$0xff] %v1273_v4 }

// kernel: rpn_up_forward.5
= control target key start
LH: loop header
LB: loop body
LE: loop exit
PB: predicated region body
PF: predicated region fallthrough
CT: control target
= control target key end

     0   :  { %s2205_s12 = smov 0   ;;  %s2468_s0 = inlined_call_operand.vmem [shape: bf16[560,128], index: 0, kind: input, shape index: {}]   ;;  %s2469_s1 = inlined_call_operand.vmem [shape: bf16[2,512,128], index: 1, kind: input, shape index: {}]   ;;  %s2470_s2 = inlined_call_operand.vmem [shape: f32[1,128], index: 2, kind: input, shape index: {}]   ;;  %s2471_s3 = inlined_call_operand.vmem [shape: bf16[512,128], index: 3, kind: output, shape index: {}]  }
   0x1 LB: > { %s2211_s13 = sadd.s32 4294967295, %s2183_s12   ;;  %p1580_p0 = scmp.ge.s32.totalorder %s2183_s12, 1  ;;  %s2183_s12 = sphi %s2205_s12, %s13_s12  }
   0x2   : > { %p137_p1 = scmp.lt.s32.totalorder %s2183_s12, 3 }
   0x4   : > { %p138_p2 = pnand %p1580_p0, %p137_p1 }
   0x5   : > { %p161_p3 = scmp.lt.s32.totalorder (!%p138_p2), %s2211_s13, 1  ;;  %s1585_s14 = sshll.u32 (!%p138_p2), %s2211_s13, 8 }
   0x6   : > { %141 = sbr.rel (%p138_p2) target bundleno = 436 (0x1b4), region = 32  ;;  %s173_s15 = sshra.s32 (!%p138_p2), %s1585_s14, 3 }
   0x7   : > { %s1586_s17 = sshll.u32 (!%p138_p2), %s173_s15, 2  ;;  %s241_s25 = sadd.s32 (!%p138_p2), 16, %s1585_s14 }
   0x8   : > { %s2221_s21 = scalar_lea.vmem (!%p138_p2), %s2468_s0, %s1586_s17  ;;  %s310_s26 = sadd.s32 (!%p138_p2), 32, %s1585_s14 }
   0x9   : > { %s242_s27 = sshra.s32 (!%p138_p2), %s241_s25, 3  ;;  %s379_s28 = sadd.s32 (!%p138_p2), 48, %s1585_s14 }
   0xa   : > { %s311_s29 = sshra.s32 (!%p138_p2), %s310_s26, 3  ;;  %s380_s30 = sshra.s32 (!%p138_p2), %s379_s28, 3 }
   0xb   : > { %s162_s16 = scalar_select %p161_p3, %s2211_s13, 1  ;;  %v177_v0 = vld [vmem:[%s2221_s21] sm:$0xf]  ;;  %v178_v1 = vld [vmem:[%s2221_s21 + $0x4] sm:$0xf] }
   0xc   : > { %209 = vst [vmem:[#allocation2] sm:$0xf] %v177_v0  ;;  %s1587_s4 = sshll.u32 %s242_s27, 2  ;;  %s1588_s5 = sshll.u32 %s311_s29, 2  ;;  %v179_v28 = vld [vmem:[%s2221_s21 + $0x8] sm:$0xf] }
   0xd   : > { %s1976_s18 = sshll.u32 %s162_s16, 8  ;;  %210 = vst [vmem:[#allocation2 + $0x10] sm:$0xf] %v178_v1  ;;  %s1589_s6 = sshll.u32 %s380_s30, 2  ;;  %v180_v29 = vld [vmem:[%s2221_s21 + $0xc] sm:$0xf] }
   0xe   : > { %s2226_s24 = scalar_lea.vmem %s2469_s1, %s1976_s18  ;;  %s2245_s9 = scalar_lea.vmem %s2468_s0, %s1587_s4  ;;  %211 = vst [vmem:[#allocation2 + $0x20] sm:$0xf] %v179_v28  ;;  %v181_v44 = vld [vmem:[%s2221_s21 + $0x10] sm:$0xf]  ;;  %v182_v45 = vld [vmem:[%s2221_s21 + $0x14] sm:$0xf] }
   0xf   : > { %v2048_v2 = vld [vmem:[%s2226_s24 + $0x38] sm:$0xff]  ;;  %v2047_v6 = vld [vmem:[%s2226_s24 + $0x30] sm:$0xff]  ;;  %v2046_v10 = vld [vmem:[%s2226_s24 + $0x28] sm:$0xff]  ;;  %s2250_s14 = scalar_lea.vmem %s2468_s0, %s1588_s5  ;;  %s2258_s17 = scalar_lea.vmem %s2468_s0, %s1589_s6  ;;  %212 = vst [vmem:[#allocation2 + $0x30] sm:$0xf] %v180_v29 }
  0x10   : > { %v2056_v3 = vld [vmem:[%s2226_s24 + $0x78] sm:$0xff]  ;;  %1092 = vmatpush.bf16.msra.mxu0 %v2048_v2  ;;  %v2055_v7 = vld [vmem:[%s2226_s24 + $0x70] sm:$0xff]  ;;  %v2054_v11 = vld [vmem:[%s2226_s24 + $0x68] sm:$0xff]  ;;  %213 = vst [vmem:[#allocation2 + $0x40] sm:$0xf] %v181_v44  ;;  %s1583_s18 = sshll.u32 %s2211_s13, 5 }
  0x11   : > { %v2064_v4 = vld [vmem:[%s2226_s24 + $0xb8] sm:$0xff]  ;;  %1181 = vmatpush.bf16.msra.mxu1 %v2056_v3  ;;  %v2063_v8 = vld [vmem:[%s2226_s24 + $0xb0] sm:$0xff]  ;;  %v2062_v12 = vld [vmem:[%s2226_s24 + $0xa8] sm:$0xff]  ;;  %214 = vst [vmem:[#allocation2 + $0x50] sm:$0xf] %v182_v45  ;;  %p167_p4 = scmp.lt.s32.totalorder %s1583_s18, 63 }
  0x12   : > { %v2072_v5 = vld [vmem:[%s2226_s24 + $0xf8] sm:$0xff]  ;;  %1270 = vmatpush.bf16.msra.mxu2 %v2064_v4  ;;  %v2071_v9 = vld [vmem:[%s2226_s24 + $0xf0] sm:$0xff]  ;;  %v2070_v13 = vld [vmem:[%s2226_s24 + $0xe8] sm:$0xff] }
  0x13   : > { %1359 = vmatpush.bf16.msra.mxu3 %v2072_v5  ;;  %v2045_v14 = vld [vmem:[%s2226_s24 + $0x20] sm:$0xff]  ;;  %v2044_v23 = vld [vmem:[%s2226_s24 + $0x18] sm:$0xff]  ;;  %v248_v30 = vld [vmem:[%s2245_s9 + $0x8] sm:$0xf]  ;;  %s2473_s18 = smov (!%p167_p4, %s1583_s18), 63 }
  0x14   : > { %1093 = vmatpush.bf16.msra.mxu0 %v2047_v6  ;;  %v2053_v15 = vld [vmem:[%s2226_s24 + $0x60] sm:$0xff]  ;;  %v2052_v24 = vld [vmem:[%s2226_s24 + $0x58] sm:$0xff]  ;;  %v2043_v31 = vld [vmem:[%s2226_s24 + $0x10] sm:$0xff]  ;;  %280 = vst [vmem:[#allocation2 + $0x24] sm:$0xf] %v248_v30  ;;  %s1584_s13 = sshll.u32 %s2473_s18, 2 }
  0x15   : > { %1182 = vmatpush.bf16.msra.mxu1 %v2055_v7  ;;  %v2061_v16 = vld [vmem:[%s2226_s24 + $0xa0] sm:$0xff]  ;;  %v2060_v26 = vld [vmem:[%s2226_s24 + $0x98] sm:$0xff]  ;;  %v2051_v32 = vld [vmem:[%s2226_s24 + $0x50] sm:$0xff] }
  0x16   : > { %1271 = vmatpush.bf16.msra.mxu2 %v2063_v8  ;;  %v2069_v17 = vld [vmem:[%s2226_s24 + $0xe0] sm:$0xff]  ;;  %v2068_v27 = vld [vmem:[%s2226_s24 + $0xd8] sm:$0xff]  ;;  %v249_v33 = vld [vmem:[%s2245_s9 + $0xc] sm:$0xf] }
  0x17   : > { %1360 = vmatpush.bf16.msra.mxu3 %v2071_v9  ;;  %v246_v18 = vld [vmem:[%s2245_s9] sm:$0xf]  ;;  %v247_v19 = vld [vmem:[%s2245_s9 + $0x4] sm:$0xf]  ;;  %v2059_v34 = vld [vmem:[%s2226_s24 + $0x90] sm:$0xff] }
  0x18   : > { %1094 = vmatpush.bf16.msra.mxu0 %v2046_v10  ;;  %278 = vst [vmem:[#allocation2 + $0x4] sm:$0xf] %v246_v18  ;;  %v315_v20 = vld [vmem:[%s2250_s14] sm:$0xf]  ;;  %v316_v21 = vld [vmem:[%s2250_s14 + $0x4] sm:$0xf] }
  0x19   : > { %1183 = vmatpush.bf16.msra.mxu1 %v2054_v11  ;;  %279 = vst [vmem:[#allocation2 + $0x14] sm:$0xf] %v247_v19  ;;  %v384_v22 = vld [vmem:[%s2258_s17] sm:$0xf]  ;;  %v385_v25 = vld [vmem:[%s2258_s17 + $0x4] sm:$0xf] }
  0x1a   : > { %1272 = vmatpush.bf16.msra.mxu2 %v2062_v12  ;;  %347 = vst [vmem:[#allocation2 + $0x8] sm:$0xf] %v315_v20  ;;  %v2067_v35 = vld [vmem:[%s2226_s24 + $0xd0] sm:$0xff]  ;;  %v317_v36 = vld [vmem:[%s2250_s14 + $0x8] sm:$0xf]  ;;  %v2041_v46 = vld [vmem:[%s2226_s24] sm:$0xff] }
  0x1b   : > { %1361 = vmatpush.bf16.msra.mxu3 %v2070_v13  ;;  %348 = vst [vmem:[#allocation2 + $0x18] sm:$0xf] %v316_v21  ;;  %v318_v37 = vld [vmem:[%s2250_s14 + $0xc] sm:$0xf]  ;;  %v386_v40 = vld [vmem:[%s2258_s17 + $0x8] sm:$0xf] }
  0x1c   : > { %1095 = vmatpush.bf16.msra.mxu0 %v2045_v14  ;;  %416 = vst [vmem:[#allocation2 + $0xc] sm:$0xf] %v384_v22  ;;  %v2042_v38 = vld [vmem:[%s2226_s24 + $0x8] sm:$0xff]  ;;  %v2049_v47 = vld [vmem:[%s2226_s24 + $0x40] sm:$0xff]  ;;  %v1979_v49 = vld [vmem:[#allocation2 + $0xc] sm:$0xf0] }
  0x1d   : > { %1184 = vmatpush.bf16.msra.mxu1 %v2053_v15  ;;  %417 = vst [vmem:[#allocation2 + $0x1c] sm:$0xf] %v385_v25  ;;  %v2050_v39 = vld [vmem:[%s2226_s24 + $0x48] sm:$0xff]  ;;  %v1592_v48 = vld [vmem:[#allocation2] sm:$0xf] }
  0x1e   : > { %1273 = vmatpush.bf16.msra.mxu2 %v2061_v16  ;;  %281 = vst [vmem:[#allocation2 + $0x34] sm:$0xf] %v249_v33  ;;  %v2058_v41 = vld [vmem:[%s2226_s24 + $0x88] sm:$0xff]  ;;  %v2057_v52 = vld [vmem:[%s2226_s24 + $0x80] sm:$0xff]  ;;  %v250_v56 = vld [vmem:[%s2245_s9 + $0x10] sm:$0xf]  ;;  %v1593_v62 = vor.u32 %v1979_v49, %v1592_v48 }
  0x1f   : > { %1362 = vmatpush.bf16.msra.mxu3 %v2069_v17  ;;  %v2066_v42 = vld [vmem:[%s2226_s24 + $0xc8] sm:$0xff]  ;;  %349 = vst [vmem:[#allocation2 + $0x28] sm:$0xf] %v317_v36  ;;  %v1977_v50 = vld [vmem:[#allocation2 + $0x4] sm:$0xf] }
  0x20   : > { %1096 = vmatpush.bf16.msra.mxu0 %v2044_v23  ;;  %v387_v43 = vld [vmem:[%s2258_s17 + $0xc] sm:$0xf]  ;;  %350 = vst [vmem:[#allocation2 + $0x38] sm:$0xf] %v318_v37  ;;  %v1594_v51 = vld [vmem:[#allocation2 + $0x10] sm:$0xf0] }
  0x21   : > { %1185 = vmatpush.bf16.msra.mxu1 %v2052_v24  ;;  %418 = vst [vmem:[#allocation2 + $0x2c] sm:$0xf] %v386_v40  ;;  %v2065_v53 = vld [vmem:[%s2226_s24 + $0xc0] sm:$0xff]  ;;  %v1600_v54 = vld [vmem:[#allocation2 + $0x8] sm:$0xf]  ;;  %v1597_v63 = vor.u32 %v1977_v50, %v1594_v51  ;;  %s2385_s24 = scalar_lea.vmem %s2471_s3, %s1584_s13 }
  0x22   : > { %1274 = vmatpush.bf16.msra.mxu2 %v2060_v26  ;;  %v1980_v55 = vld [vmem:[#allocation2 + $0x14] sm:$0xf0]  ;;  %419 = vst [vmem:[#allocation2 + $0x3c] sm:$0xf] %v387_v43  ;;  %v251_v58 = vld [vmem:[%s2245_s9 + $0x14] sm:$0xf] }
  0x23   : > { %1363 = vmatpush.bf16.msra.mxu3 %v2068_v27  ;;  %v1978_v57 = vld [vmem:[#allocation2 + $0xc] sm:$0xf]  ;;  %v319_v60 = vld [vmem:[%s2250_s14 + $0x10] sm:$0xf]  ;;  %282 = vst [vmem:[#allocation2 + $0x44] sm:$0xf] %v250_v56  ;;  %v1601_v1 = vor.u32 %v1980_v55, %v1600_v54 }
  0x24   : > { %1097 = vmatpush.bf16.msra.mxu0 %v2043_v31  ;;  %v1602_v59 = vld [vmem:[#allocation2 + $0x18] sm:$0xf0]  ;;  %v320_v61 = vld [vmem:[%s2250_s14 + $0x14] sm:$0xf]  ;;  %283 = vst [vmem:[#allocation2 + $0x54] sm:$0xf] %v251_v58 }
  0x25   : > { %1186 = vmatpush.bf16.msra.mxu1 %v2051_v32  ;;  %v388_v0 = vld [vmem:[%s2258_s17 + $0x10] sm:$0xf]  ;;  %v1605_v2 = vor.u32 %v1978_v57, %v1602_v59  ;;  %351 = vst [vmem:[#allocation2 + $0x48] sm:$0xf] %v319_v60  ;;  %v389_v3 = vld [vmem:[%s2258_s17 + $0x14] sm:$0xf] }
  0x26   : > { %1275 = vmatpush.bf16.msra.mxu2 %v2059_v34  ;;  %352 = vst [vmem:[#allocation2 + $0x58] sm:$0xf] %v320_v61  ;;  %v183_v4 = vld [vmem:[%s2221_s21 + $0x18] sm:$0xf]  ;;  %v184_v5 = vld [vmem:[%s2221_s21 + $0x1c] sm:$0xf] }
  0x27   : > { %1364 = vmatpush.bf16.msra.mxu3 %v2067_v35  ;;  %420 = vst [vmem:[#allocation2 + $0x4c] sm:$0xf] %v388_v0  ;;  %v252_v6 = vld [vmem:[%s2245_s9 + $0x18] sm:$0xf]  ;;  %v253_v7 = vld [vmem:[%s2245_s9 + $0x1c] sm:$0xf] }
  0x28   : > { %1098 = vmatpush.bf16.msra.mxu0 %v2042_v38  ;;  %421 = vst [vmem:[#allocation2 + $0x5c] sm:$0xf] %v389_v3  ;;  %v1608_v8 = vld [vmem:[#allocation2 + $0x20] sm:$0xf]  ;;  %v1983_v9 = vld [vmem:[#allocation2 + $0x2c] sm:$0xf0] }
  0x29   : > { %1187 = vmatpush.bf16.msra.mxu1 %v2050_v39  ;;  %215 = vst [vmem:[#allocation2 + $0x60] sm:$0xf] %v183_v4  ;;  %v1981_v10 = vld [vmem:[#allocation2 + $0x24] sm:$0xf]  ;;  %v1610_v11 = vld [vmem:[#allocation2 + $0x30] sm:$0xf0]  ;;  %v1609_v20 = vor.u32 %v1983_v9, %v1608_v8 }
  0x2a   : > { %1276 = vmatpush.bf16.msra.mxu2 %v2058_v41  ;;  %216 = vst [vmem:[#allocation2 + $0x70] sm:$0xf] %v184_v5  ;;  %v321_v12 = vld [vmem:[%s2250_s14 + $0x18] sm:$0xf]  ;;  %v1616_v13 = vld [vmem:[#allocation2 + $0x28] sm:$0xf]  ;;  %v1613_v21 = vor.u32 %v1981_v10, %v1610_v11 }
  0x2b   : > { %1365 = vmatpush.bf16.msra.mxu3 %v2066_v42  ;;  %284 = vst [vmem:[#allocation2 + $0x64] sm:$0xf] %v252_v6  ;;  %v322_v14 = vld [vmem:[%s2250_s14 + $0x1c] sm:$0xf]  ;;  %v390_v15 = vld [vmem:[%s2258_s17 + $0x18] sm:$0xf] }
  0x2c   : > { %1099 = vmatpush.bf16.msra.mxu0 %v2041_v46  ;;  %285 = vst [vmem:[#allocation2 + $0x74] sm:$0xf] %v253_v7  ;;  %v1984_v16 = vld [vmem:[#allocation2 + $0x34] sm:$0xf0]  ;;  %v391_v17 = vld [vmem:[%s2258_s17 + $0x1c] sm:$0xf] }
  0x2d   : > { %1188 = vmatpush.bf16.msra.mxu1 %v2049_v47  ;;  %353 = vst [vmem:[#allocation2 + $0x68] sm:$0xf] %v321_v12  ;;  %v1982_v18 = vld [vmem:[#allocation2 + $0x2c] sm:$0xf]  ;;  %v1618_v19 = vld [vmem:[#allocation2 + $0x38] sm:$0xf0]  ;;  %v1617_v22 = vor.u32 %v1984_v16, %v1616_v13 }
  0x2e   : > { %1277 = vmatpush.bf16.msra.mxu2 %v2057_v52  ;;  %354 = vst [vmem:[#allocation2 + $0x78] sm:$0xf] %v322_v14  ;;  %v1621_v23 = vor.u32 %v1982_v18, %v1618_v19  ;;  %v185_v24 = vld [vmem:[%s2221_s21 + $0x20] sm:$0xf]  ;;  %v186_v25 = vld [vmem:[%s2221_s21 + $0x24] sm:$0xf] }
  0x2f   : > { %1366 = vmatpush.bf16.msra.mxu3 %v2065_v53  ;;  %1100 = vmatmul.bf16.vlgmr.msra.gmra.mxu0 %v1593_v62  ;;  %422 = vst [vmem:[#allocation2 + $0x6c] sm:$0xf] %v390_v15  ;;  %v254_v26 = vld [vmem:[%s2245_s9 + $0x20] sm:$0xf]  ;;  %v255_v27 = vld [vmem:[%s2245_s9 + $0x24] sm:$0xf] }
  0x30   : > { %1189 = vmatmul.bf16.vlgmr.msra.gmra.mxu1 %v1597_v63  ;;  %423 = vst [vmem:[#allocation2 + $0x7c] sm:$0xf] %v391_v17  ;;  %v323_v28 = vld [vmem:[%s2250_s14 + $0x20] sm:$0xf]  ;;  %v1987_v30 = vld [vmem:[#allocation2 + $0x4c] sm:$0xf0] }
  0x31   : > { %1278 = vmatmul.bf16.vlgmr.msra.gmra.mxu2 %v1601_v1  ;;  %217 = vst [vmem:[#allocation2 + $0x80] sm:$0xf] %v185_v24  ;;  %v1624_v29 = vld [vmem:[#allocation2 + $0x40] sm:$0xf]  ;;  %v1985_v31 = vld [vmem:[#allocation2 + $0x44] sm:$0xf] }
  0x32   : > { %1367 = vmatmul.bf16.vlgmr.msra.gmra.mxu3 %v1605_v2  ;;  %218 = vst [vmem:[#allocation2 + $0x90] sm:$0xf] %v186_v25  ;;  %v1626_v32 = vld [vmem:[#allocation2 + $0x50] sm:$0xf0]  ;;  %v324_v33 = vld [vmem:[%s2250_s14 + $0x24] sm:$0xf]  ;;  %v1625_v40 = vor.u32 %v1987_v30, %v1624_v29 }
  0x33   : > { %286 = vst [vmem:[#allocation2 + $0x84] sm:$0xf] %v254_v26  ;;  %v1632_v34 = vld [vmem:[#allocation2 + $0x48] sm:$0xf]  ;;  %v392_v35 = vld [vmem:[%s2258_s17 + $0x20] sm:$0xf]  ;;  %v1629_v41 = vor.u32 %v1985_v31, %v1626_v32 }
  0x34   : > { %287 = vst [vmem:[#allocation2 + $0x94] sm:$0xf] %v255_v27  ;;  %v1988_v36 = vld [vmem:[#allocation2 + $0x54] sm:$0xf0]  ;;  %v393_v37 = vld [vmem:[%s2258_s17 + $0x24] sm:$0xf] }
  0x35   : > { %355 = vst [vmem:[#allocation2 + $0x88] sm:$0xf] %v323_v28  ;;  %v1986_v38 = vld [vmem:[#allocation2 + $0x4c] sm:$0xf]  ;;  %v1634_v39 = vld [vmem:[#allocation2 + $0x58] sm:$0xf0]  ;;  %v1633_v42 = vor.u32 %v1988_v36, %v1632_v34 }
  0x36   : > { %356 = vst [vmem:[#allocation2 + $0x98] sm:$0xf] %v324_v33  ;;  %v1637_v43 = vor.u32 %v1986_v38, %v1634_v39  ;;  %v187_v44 = vld [vmem:[%s2221_s21 + $0x28] sm:$0xf]  ;;  %v188_v45 = vld [vmem:[%s2221_s21 + $0x2c] sm:$0xf] }
  0x37   : > { %424 = vst [vmem:[#allocation2 + $0x8c] sm:$0xf] %v392_v35  ;;  %v256_v46 = vld [vmem:[%s2245_s9 + $0x28] sm:$0xf]  ;;  %v257_v47 = vld [vmem:[%s2245_s9 + $0x2c] sm:$0xf] }
  0x38   : > { %425 = vst [vmem:[#allocation2 + $0x9c] sm:$0xf] %v393_v37  ;;  %v325_v48 = vld [vmem:[%s2250_s14 + $0x28] sm:$0xf]  ;;  %v1640_v49 = vld [vmem:[#allocation2 + $0x60] sm:$0xf] }
  0x39   : > { %219 = vst [vmem:[#allocation2 + $0xa0] sm:$0xf] %v187_v44  ;;  %v1991_v50 = vld [vmem:[#allocation2 + $0x6c] sm:$0xf0]  ;;  %v1989_v51 = vld [vmem:[#allocation2 + $0x64] sm:$0xf] }
  0x3a   : > { %220 = vst [vmem:[#allocation2 + $0xb0] sm:$0xf] %v188_v45  ;;  %v1642_v52 = vld [vmem:[#allocation2 + $0x70] sm:$0xf0]  ;;  %v326_v53 = vld [vmem:[%s2250_s14 + $0x2c] sm:$0xf]  ;;  %v1641_v60 = vor.u32 %v1991_v50, %v1640_v49 }
  0x3b   : > { %288 = vst [vmem:[#allocation2 + $0xa4] sm:$0xf] %v256_v46  ;;  %v1648_v54 = vld [vmem:[#allocation2 + $0x68] sm:$0xf]  ;;  %v1992_v56 = vld [vmem:[#allocation2 + $0x74] sm:$0xf0]  ;;  %v1645_v61 = vor.u32 %v1989_v51, %v1642_v52 }
  0x3c   : > { %289 = vst [vmem:[#allocation2 + $0xb4] sm:$0xf] %v257_v47  ;;  %v394_v55 = vld [vmem:[%s2258_s17 + $0x28] sm:$0xf]  ;;  %v395_v57 = vld [vmem:[%s2258_s17 + $0x2c] sm:$0xf]  ;;  %v1649_v62 = vor.u32 %v1992_v56, %v1648_v54 }
  0x3d   : > { %357 = vst [vmem:[#allocation2 + $0xa8] sm:$0xf] %v325_v48  ;;  %v1990_v58 = vld [vmem:[#allocation2 + $0x6c] sm:$0xf]  ;;  %v1650_v59 = vld [vmem:[#allocation2 + $0x78] sm:$0xf0] }
  0x3e   : > { %358 = vst [vmem:[#allocation2 + $0xb8] sm:$0xf] %v326_v53  ;;  %v1653_v63 = vor.u32 %v1990_v58, %v1650_v59  ;;  %v189_v0 = vld [vmem:[%s2221_s21 + $0x30] sm:$0xf]  ;;  %v190_v1 = vld [vmem:[%s2221_s21 + $0x34] sm:$0xf] }
  0x3f   : > { %1105 = vmatmul.bf16.gmra.mxu0 %v1609_v20  ;;  %426 = vst [vmem:[#allocation2 + $0xac] sm:$0xf] %v394_v55  ;;  %v258_v2 = vld [vmem:[%s2245_s9 + $0x30] sm:$0xf]  ;;  %v259_v3 = vld [vmem:[%s2245_s9 + $0x34] sm:$0xf] }
  0x40   : > { %1194 = vmatmul.bf16.gmra.mxu1 %v1613_v21  ;;  %427 = vst [vmem:[#allocation2 + $0xbc] sm:$0xf] %v395_v57  ;;  %v327_v4 = vld [vmem:[%s2250_s14 + $0x30] sm:$0xf]  ;;  %v1656_v5 = vld [vmem:[#allocation2 + $0x80] sm:$0xf] }
  0x41   : > { %1283 = vmatmul.bf16.gmra.mxu2 %v1617_v22  ;;  %221 = vst [vmem:[#allocation2 + $0xc0] sm:$0xf] %v189_v0  ;;  %v1995_v6 = vld [vmem:[#allocation2 + $0x8c] sm:$0xf0]  ;;  %v1993_v7 = vld [vmem:[#allocation2 + $0x84] sm:$0xf] }
  0x42   : > { %1372 = vmatmul.bf16.gmra.mxu3 %v1621_v23  ;;  %222 = vst [vmem:[#allocation2 + $0xd0] sm:$0xf] %v190_v1  ;;  %v1658_v8 = vld [vmem:[#allocation2 + $0x90] sm:$0xf0]  ;;  %v1664_v10 = vld [vmem:[#allocation2 + $0x88] sm:$0xf]  ;;  %v1657_v16 = vor.u32 %v1995_v6, %v1656_v5 }
  0x43   : > { %290 = vst [vmem:[#allocation2 + $0xc4] sm:$0xf] %v258_v2  ;;  %v328_v9 = vld [vmem:[%s2250_s14 + $0x34] sm:$0xf]  ;;  %v396_v11 = vld [vmem:[%s2258_s17 + $0x30] sm:$0xf]  ;;  %v1661_v17 = vor.u32 %v1993_v7, %v1658_v8 }
  0x44   : > { %291 = vst [vmem:[#allocation2 + $0xd4] sm:$0xf] %v259_v3  ;;  %v1996_v12 = vld [vmem:[#allocation2 + $0x94] sm:$0xf0]  ;;  %v397_v13 = vld [vmem:[%s2258_s17 + $0x34] sm:$0xf] }
  0x45   : > { %359 = vst [vmem:[#allocation2 + $0xc8] sm:$0xf] %v327_v4  ;;  %v1994_v14 = vld [vmem:[#allocation2 + $0x8c] sm:$0xf]  ;;  %v1666_v15 = vld [vmem:[#allocation2 + $0x98] sm:$0xf0]  ;;  %v1665_v18 = vor.u32 %v1996_v12, %v1664_v10 }
  0x46   : > { %360 = vst [vmem:[#allocation2 + $0xd8] sm:$0xf] %v328_v9  ;;  %v1669_v19 = vor.u32 %v1994_v14, %v1666_v15  ;;  %v191_v20 = vld [vmem:[%s2221_s21 + $0x38] sm:$0xf]  ;;  %v192_v21 = vld [vmem:[%s2221_s21 + $0x3c] sm:$0xf] }
  0x47   : > { %428 = vst [vmem:[#allocation2 + $0xcc] sm:$0xf] %v396_v11  ;;  %v260_v22 = vld [vmem:[%s2245_s9 + $0x38] sm:$0xf]  ;;  %v261_v23 = vld [vmem:[%s2245_s9 + $0x3c] sm:$0xf] }
  0x48   : > { %429 = vst [vmem:[#allocation2 + $0xdc] sm:$0xf] %v397_v13  ;;  %v329_v24 = vld [vmem:[%s2250_s14 + $0x38] sm:$0xf]  ;;  %v1672_v25 = vld [vmem:[#allocation2 + $0xa0] sm:$0xf] }
  0x49   : > { %223 = vst [vmem:[#allocation2 + $0xe0] sm:$0xf] %v191_v20  ;;  %v1999_v26 = vld [vmem:[#allocation2 + $0xac] sm:$0xf0]  ;;  %v1997_v27 = vld [vmem:[#allocation2 + $0xa4] sm:$0xf] }
  0x4a   : > { %224 = vst [vmem:[#allocation2 + $0xf0] sm:$0xf] %v192_v21  ;;  %v1674_v28 = vld [vmem:[#allocation2 + $0xb0] sm:$0xf0]  ;;  %v330_v29 = vld [vmem:[%s2250_s14 + $0x3c] sm:$0xf]  ;;  %v1673_v36 = vor.u32 %v1999_v26, %v1672_v25 }
  0x4b   : > { %292 = vst [vmem:[#allocation2 + $0xe4] sm:$0xf] %v260_v22  ;;  %v1680_v30 = vld [vmem:[#allocation2 + $0xa8] sm:$0xf]  ;;  %v398_v31 = vld [vmem:[%s2258_s17 + $0x38] sm:$0xf]  ;;  %v1677_v37 = vor.u32 %v1997_v27, %v1674_v28 }
  0x4c   : > { %293 = vst [vmem:[#allocation2 + $0xf4] sm:$0xf] %v261_v23  ;;  %v2000_v32 = vld [vmem:[#allocation2 + $0xb4] sm:$0xf0]  ;;  %v399_v33 = vld [vmem:[%s2258_s17 + $0x3c] sm:$0xf] }
  0x4d   : > { %361 = vst [vmem:[#allocation2 + $0xe8] sm:$0xf] %v329_v24  ;;  %v1998_v34 = vld [vmem:[#allocation2 + $0xac] sm:$0xf]  ;;  %v1682_v35 = vld [vmem:[#allocation2 + $0xb8] sm:$0xf0]  ;;  %v1681_v38 = vor.u32 %v2000_v32, %v1680_v30 }
  0x4e   : > { %362 = vst [vmem:[#allocation2 + $0xf8] sm:$0xf] %v330_v29  ;;  %v1685_v39 = vor.u32 %v1998_v34, %v1682_v35  ;;  %v2003_v44 = vld [vmem:[#allocation2 + $0xcc] sm:$0xf0]  ;;  %v2001_v45 = vld [vmem:[#allocation2 + $0xc4] sm:$0xf] }
  0x4f   : > { %1110 = vmatmul.bf16.gmra.mxu0 %v1625_v40  ;;  %430 = vst [vmem:[#allocation2 + $0xec] sm:$0xf] %v398_v31  ;;  %v193_v40 = vld [vmem:[%s2221_s21 + $0x40] sm:$0xf]  ;;  %v1690_v46 = vld [vmem:[#allocation2 + $0xd0] sm:$0xf0] }
  0x50   : > { %1199 = vmatmul.bf16.gmra.mxu1 %v1629_v41  ;;  %431 = vst [vmem:[#allocation2 + $0xfc] sm:$0xf] %v399_v33  ;;  %v194_v41 = vld [vmem:[%s2221_s21 + $0x44] sm:$0xf]  ;;  %v1696_v48 = vld [vmem:[#allocation2 + $0xc8] sm:$0xf]  ;;  %v1693_v57 = vor.u32 %v2001_v45, %v1690_v46 }
  0x51   : > { %1288 = vmatmul.bf16.gmra.mxu2 %v1633_v42  ;;  %v262_v42 = vld [vmem:[%s2245_s9 + $0x40] sm:$0xf]  ;;  %225 = vst [vmem:[#allocation2 + $0x100] sm:$0xf] %v193_v40  ;;  %v263_v47 = vld [vmem:[%s2245_s9 + $0x44] sm:$0xf] }
  0x52   : > { %1377 = vmatmul.bf16.gmra.mxu3 %v1637_v43  ;;  %v1688_v43 = vld [vmem:[#allocation2 + $0xc0] sm:$0xf]  ;;  %v2004_v49 = vld [vmem:[#allocation2 + $0xd4] sm:$0xf0]  ;;  %226 = vst [vmem:[#allocation2 + $0x110] sm:$0xf] %v194_v41 }
  0x53   : > { %v331_v50 = vld [vmem:[%s2250_s14 + $0x40] sm:$0xf]  ;;  %v2002_v51 = vld [vmem:[#allocation2 + $0xcc] sm:$0xf]  ;;  %294 = vst [vmem:[#allocation2 + $0x104] sm:$0xf] %v262_v42  ;;  %v1689_v56 = vor.u32 %v2003_v44, %v1688_v43  ;;  %v1697_v58 = vor.u32 %v2004_v49, %v1696_v48 }
  0x54   : > { %v332_v52 = vld [vmem:[%s2250_s14 + $0x44] sm:$0xf]  ;;  %v1698_v53 = vld [vmem:[#allocation2 + $0xd8] sm:$0xf0]  ;;  %295 = vst [vmem:[#allocation2 + $0x114] sm:$0xf] %v263_v47 }
  0x55   : > { %v400_v54 = vld [vmem:[%s2258_s17 + $0x40] sm:$0xf]  ;;  %363 = vst [vmem:[#allocation2 + $0x108] sm:$0xf] %v331_v50  ;;  %v401_v55 = vld [vmem:[%s2258_s17 + $0x44] sm:$0xf]  ;;  %v1701_v59 = vor.u32 %v2002_v51, %v1698_v53 }
  0x56   : > { %364 = vst [vmem:[#allocation2 + $0x118] sm:$0xf] %v332_v52  ;;  %v2007_v0 = vld [vmem:[#allocation2 + $0xec] sm:$0xf0]  ;;  %v2005_v1 = vld [vmem:[#allocation2 + $0xe4] sm:$0xf] }
  0x57   : > { %432 = vst [vmem:[#allocation2 + $0x10c] sm:$0xf] %v400_v54  ;;  %v1706_v2 = vld [vmem:[#allocation2 + $0xf0] sm:$0xf0]  ;;  %v265_v3 = vld [vmem:[%s2245_s9 + $0x4c] sm:$0xf] }
  0x58   : > { %433 = vst [vmem:[#allocation2 + $0x11c] sm:$0xf] %v401_v55  ;;  %v1712_v4 = vld [vmem:[#allocation2 + $0xe8] sm:$0xf]  ;;  %v2008_v5 = vld [vmem:[#allocation2 + $0xf4] sm:$0xf0]  ;;  %v1709_v13 = vor.u32 %v2005_v1, %v1706_v2 }
  0x59   : > { %v333_v6 = vld [vmem:[%s2250_s14 + $0x48] sm:$0xf]  ;;  %v2006_v7 = vld [vmem:[#allocation2 + $0xec] sm:$0xf]  ;;  %v1714_v9 = vld [vmem:[#allocation2 + $0xf8] sm:$0xf0]  ;;  %v1713_v14 = vor.u32 %v2008_v5, %v1712_v4 }
  0x5a   : > { %v334_v8 = vld [vmem:[%s2250_s14 + $0x4c] sm:$0xf]  ;;  %297 = vst [vmem:[#allocation2 + $0x134] sm:$0xf] %v265_v3  ;;  %v402_v10 = vld [vmem:[%s2258_s17 + $0x48] sm:$0xf]  ;;  %v1717_v15 = vor.u32 %v2006_v7, %v1714_v9 }
  0x5b   : > { %365 = vst [vmem:[#allocation2 + $0x128] sm:$0xf] %v333_v6  ;;  %v403_v11 = vld [vmem:[%s2258_s17 + $0x4c] sm:$0xf]  ;;  %v2011_v20 = vld [vmem:[#allocation2 + $0x10c] sm:$0xf0] }
  0x5c   : > { %366 = vst [vmem:[#allocation2 + $0x138] sm:$0xf] %v334_v8  ;;  %v2009_v21 = vld [vmem:[#allocation2 + $0x104] sm:$0xf]  ;;  %v1722_v22 = vld [vmem:[#allocation2 + $0x110] sm:$0xf0] }
  0x5d   : > { %434 = vst [vmem:[#allocation2 + $0x12c] sm:$0xf] %v402_v10  ;;  %v267_v23 = vld [vmem:[%s2245_s9 + $0x54] sm:$0xf]  ;;  %v1728_v24 = vld [vmem:[#allocation2 + $0x108] sm:$0xf]  ;;  %v1725_v33 = vor.u32 %v2009_v21, %v1722_v22 }
  0x5e   : > { %435 = vst [vmem:[#allocation2 + $0x13c] sm:$0xf] %v403_v11  ;;  %v2012_v25 = vld [vmem:[#allocation2 + $0x114] sm:$0xf0]  ;;  %v335_v26 = vld [vmem:[%s2250_s14 + $0x50] sm:$0xf] }
  0x5f   : > { %1115 = vmatmul.bf16.gmra.mxu0 %v1641_v60  ;;  %v195_v60 = vld [vmem:[%s2221_s21 + $0x48] sm:$0xf]  ;;  %v2010_v27 = vld [vmem:[#allocation2 + $0x10c] sm:$0xf]  ;;  %v336_v28 = vld [vmem:[%s2250_s14 + $0x54] sm:$0xf] }
  0x60   : > { %1204 = vmatmul.bf16.gmra.mxu1 %v1645_v61  ;;  %v196_v61 = vld [vmem:[%s2221_s21 + $0x4c] sm:$0xf]  ;;  %227 = vst [vmem:[#allocation2 + $0x120] sm:$0xf] %v195_v60  ;;  %v1730_v29 = vld [vmem:[#allocation2 + $0x118] sm:$0xf0] }
  0x61   : > { %1293 = vmatmul.bf16.gmra.mxu2 %v1649_v62  ;;  %v264_v62 = vld [vmem:[%s2245_s9 + $0x48] sm:$0xf]  ;;  %228 = vst [vmem:[#allocation2 + $0x130] sm:$0xf] %v196_v61  ;;  %v404_v30 = vld [vmem:[%s2258_s17 + $0x50] sm:$0xf] }
  0x62   : > { %1382 = vmatmul.bf16.gmra.mxu3 %v1653_v63  ;;  %v1704_v63 = vld [vmem:[#allocation2 + $0xe0] sm:$0xf]  ;;  %296 = vst [vmem:[#allocation2 + $0x124] sm:$0xf] %v264_v62  ;;  %v405_v31 = vld [vmem:[%s2258_s17 + $0x54] sm:$0xf] }
  0x63   : > { %v1705_v12 = vor.u32 %v2007_v0, %v1704_v63  ;;  %299 = vst [vmem:[#allocation2 + $0x154] sm:$0xf] %v267_v23  ;;  %v199_v44 = vld [vmem:[%s2221_s21 + $0x58] sm:$0xf]  ;;  %v200_v45 = vld [vmem:[%s2221_s21 + $0x5c] sm:$0xf] }
  0x64   : > { %367 = vst [vmem:[#allocation2 + $0x148] sm:$0xf] %v335_v26  ;;  %v268_v46 = vld [vmem:[%s2245_s9 + $0x58] sm:$0xf]  ;;  %v1738_v52 = vld [vmem:[#allocation2 + $0x130] sm:$0xf0] }
  0x65   : > { %368 = vst [vmem:[#allocation2 + $0x158] sm:$0xf] %v336_v28  ;;  %v269_v53 = vld [vmem:[%s2245_s9 + $0x5c] sm:$0xf]  ;;  %v1744_v54 = vld [vmem:[#allocation2 + $0x128] sm:$0xf] }
  0x66   : > { %436 = vst [vmem:[#allocation2 + $0x14c] sm:$0xf] %v404_v30  ;;  %v2016_v55 = vld [vmem:[#allocation2 + $0x134] sm:$0xf0]  ;;  %v407_v63 = vld [vmem:[%s2258_s17 + $0x5c] sm:$0xf] }
  0x67   : > { %437 = vst [vmem:[#allocation2 + $0x15c] sm:$0xf] %v405_v31  ;;  %v1736_v49 = vld [vmem:[#allocation2 + $0x120] sm:$0xf]  ;;  %v406_v60 = vld [vmem:[%s2258_s17 + $0x58] sm:$0xf]  ;;  %v1745_v7 = vor.u32 %v2016_v55, %v1744_v54 }
  0x68   : > { %v2015_v50 = vld [vmem:[#allocation2 + $0x12c] sm:$0xf0]  ;;  %231 = vst [vmem:[#allocation2 + $0x160] sm:$0xf] %v199_v44  ;;  %v271_v26 = vld [vmem:[%s2245_s9 + $0x64] sm:$0xf] }
  0x69   : > { %v2013_v51 = vld [vmem:[#allocation2 + $0x124] sm:$0xf]  ;;  %232 = vst [vmem:[#allocation2 + $0x170] sm:$0xf] %v200_v45  ;;  %v1737_v2 = vor.u32 %v2015_v50, %v1736_v49  ;;  %v203_v55 = vld [vmem:[%s2221_s21 + $0x68] sm:$0xf] }
  0x6a   : > { %300 = vst [vmem:[#allocation2 + $0x164] sm:$0xf] %v268_v46  ;;  %v1741_v3 = vor.u32 %v2013_v51, %v1738_v52  ;;  %v340_v31 = vld [vmem:[%s2250_s14 + $0x64] sm:$0xf] }
  0x6b   : > { %301 = vst [vmem:[#allocation2 + $0x174] sm:$0xf] %v269_v53 }
  0x6c   : > { %438 = vst [vmem:[#allocation2 + $0x16c] sm:$0xf] %v406_v60  ;;  %v2020_v28 = vld [vmem:[#allocation2 + $0x154] sm:$0xf0] }
  0x6d   : > { %439 = vst [vmem:[#allocation2 + $0x17c] sm:$0xf] %v407_v63  ;;  %v2018_v30 = vld [vmem:[#allocation2 + $0x14c] sm:$0xf] }
  0x6e   : > { %303 = vst [vmem:[#allocation2 + $0x194] sm:$0xf] %v271_v26 }
  0x6f   : > { %1120 = vmatmul.bf16.gmra.mxu0 %v1657_v16  ;;  %v197_v16 = vld [vmem:[%s2221_s21 + $0x50] sm:$0xf]  ;;  %372 = vst [vmem:[#allocation2 + $0x198] sm:$0xf] %v340_v31  ;;  %v1768_v60 = vld [vmem:[#allocation2 + $0x160] sm:$0xf] }
  0x70   : > { %1209 = vmatmul.bf16.gmra.mxu1 %v1661_v17  ;;  %v198_v17 = vld [vmem:[%s2221_s21 + $0x54] sm:$0xf]  ;;  %229 = vst [vmem:[#allocation2 + $0x140] sm:$0xf] %v197_v16 }
  0x71   : > { %1298 = vmatmul.bf16.gmra.mxu2 %v1665_v18  ;;  %v266_v18 = vld [vmem:[%s2245_s9 + $0x50] sm:$0xf]  ;;  %230 = vst [vmem:[#allocation2 + $0x150] sm:$0xf] %v198_v17  ;;  %v201_v17 = vld [vmem:[%s2221_s21 + $0x60] sm:$0xf] }
  0x72   : > { %1387 = vmatmul.bf16.gmra.mxu3 %v1669_v19  ;;  %v1720_v19 = vld [vmem:[#allocation2 + $0x100] sm:$0xf]  ;;  %298 = vst [vmem:[#allocation2 + $0x144] sm:$0xf] %v266_v18  ;;  %v202_v18 = vld [vmem:[%s2221_s21 + $0x64] sm:$0xf] }
  0x73   : > { %v1721_v32 = vor.u32 %v2011_v20, %v1720_v19  ;;  %v270_v19 = vld [vmem:[%s2245_s9 + $0x60] sm:$0xf]  ;;  %233 = vst [vmem:[#allocation2 + $0x180] sm:$0xf] %v201_v17  ;;  %v1770_v63 = vld [vmem:[#allocation2 + $0x170] sm:$0xf0] }
  0x74   : > { %234 = vst [vmem:[#allocation2 + $0x190] sm:$0xf] %v202_v18 }
  0x75   : > { %302 = vst [vmem:[#allocation2 + $0x184] sm:$0xf] %v270_v19 }
  0x76   : > { %235 = vst [vmem:[#allocation2 + $0x1a0] sm:$0xf] %v203_v55 }
  0x77   : > { %v1752_v22 = vld [vmem:[#allocation2 + $0x140] sm:$0xf] }
  0x78   : > { %v2019_v23 = vld [vmem:[#allocation2 + $0x14c] sm:$0xf0] }
  0x7f   : > { %1125 = vmatmul.bf16.gmra.mxu0 %v1673_v36  ;;  %v1729_v36 = vor.u32 %v2012_v25, %v1728_v24  ;;  %v2017_v24 = vld [vmem:[#allocation2 + $0x144] sm:$0xf]  ;;  %v1754_v25 = vld [vmem:[#allocation2 + $0x150] sm:$0xf0] }
  0x80   : > { %1214 = vmatmul.bf16.gmra.mxu1 %v1677_v37  ;;  %v1733_v37 = vor.u32 %v2010_v27, %v1730_v29  ;;  %v1760_v27 = vld [vmem:[#allocation2 + $0x148] sm:$0xf]  ;;  %v339_v29 = vld [vmem:[%s2250_s14 + $0x60] sm:$0xf] }
  0x81   : > { %1303 = vmatmul.bf16.gmra.mxu2 %v1681_v38  ;;  %v2367_v38 = vld [vmem:[%s2470_s2] ss:$0 sm:$0xff]  ;;  %371 = vst [vmem:[#allocation2 + $0x188] sm:$0xf] %v339_v29  ;;  %v1761_v45 = vor.u32 %v2020_v28, %v1760_v27  ;;  %v205_v28 = vld [vmem:[%s2221_s21 + $0x70] sm:$0xf] }
  0x82   : > { %1392 = vmatmul.bf16.gmra.mxu3 %v1685_v39  ;;  %v206_v29 = vld [vmem:[%s2221_s21 + $0x74] sm:$0xf]  ;;  %237 = vst [vmem:[#allocation2 + $0x1c0] sm:$0xf] %v205_v28 }
  0x83   : > { %238 = vst [vmem:[#allocation2 + $0x1d0] sm:$0xf] %v206_v29 }
  0x8f   : > { %1130 = vmatmul.bf16.gmra.mxu0 %v1689_v56  ;;  %v337_v56 = vld [vmem:[%s2250_s14 + $0x58] sm:$0xf] }
  0x90   : > { %1219 = vmatmul.bf16.gmra.mxu1 %v1693_v57  ;;  %v2014_v57 = vld [vmem:[#allocation2 + $0x12c] sm:$0xf]  ;;  %369 = vst [vmem:[#allocation2 + $0x168] sm:$0xf] %v337_v56 }
  0x91   : > { %1308 = vmatmul.bf16.gmra.mxu2 %v1697_v58  ;;  %v338_v58 = vld [vmem:[%s2250_s14 + $0x5c] sm:$0xf]  ;;  %v204_v56 = vld [vmem:[%s2221_s21 + $0x6c] sm:$0xf] }
  0x92   : > { %1397 = vmatmul.bf16.gmra.mxu3 %v1701_v59  ;;  %v1746_v59 = vld [vmem:[#allocation2 + $0x138] sm:$0xf0]  ;;  %370 = vst [vmem:[#allocation2 + $0x178] sm:$0xf] %v338_v58 }
  0x93   : > { %v1749_v8 = vor.u32 %v2014_v57, %v1746_v59  ;;  %v272_v57 = vld [vmem:[%s2245_s9 + $0x68] sm:$0xf]  ;;  %236 = vst [vmem:[#allocation2 + $0x1b0] sm:$0xf] %v204_v56 }
  0x94   : > { %304 = vst [vmem:[#allocation2 + $0x1a4] sm:$0xf] %v272_v57 }
  0x9f   : > { %1135 = vmatmul.bf16.gmra.mxu0 %v1705_v12 }
  0xa0   : > { %1224 = vmatmul.bf16.gmra.mxu1 %v1709_v13 }
  0xa1   : > { %1313 = vmatmul.bf16.gmra.mxu2 %v1713_v14 }
  0xa2   : > { %1402 = vmatmul.bf16.gmra.mxu3 %v1717_v15 }
  0xac   : > { %v1101_v34 = vpop.f32.mrf.mxu0 }
  0xad   : > { %v1190_v35 = vpop.f32.mrf.mxu1  ;;  %v1102_v39 = vadd.f32 %v2367_v38, %v1101_v34 }
  0xaf   : > { %1140 = vmatmul.bf16.gmra.mxu0 %v1721_v32  ;;  %v1191_v47 = vadd.f32 %v1190_v35, %v1102_v39  ;;  %v1762_v32 = vld [vmem:[#allocation2 + $0x158] sm:$0xf0] }
  0xb0   : > { %1229 = vmatmul.bf16.gmra.mxu1 %v1725_v33  ;;  %v408_v33 = vld [vmem:[%s2258_s17 + $0x60] sm:$0xf]  ;;  %v1765_v46 = vor.u32 %v2018_v30, %v1762_v32  ;;  %v274_v30 = vld [vmem:[%s2245_s9 + $0x70] sm:$0xf] }
  0xb1   : > { %1318 = vmatmul.bf16.gmra.mxu2 %v1729_v36  ;;  %v409_v36 = vld [vmem:[%s2258_s17 + $0x64] sm:$0xf]  ;;  %440 = vst [vmem:[#allocation2 + $0x18c] sm:$0xf] %v408_v33  ;;  %v1784_v33 = vld [vmem:[#allocation2 + $0x180] sm:$0xf] }
  0xb2   : > { %1407 = vmatmul.bf16.gmra.mxu3 %v1733_v37  ;;  %441 = vst [vmem:[#allocation2 + $0x19c] sm:$0xf] %v409_v36  ;;  %v1786_v36 = vld [vmem:[#allocation2 + $0x190] sm:$0xf0] }
  0xb3   : > { %306 = vst [vmem:[#allocation2 + $0x1c4] sm:$0xf] %v274_v30 }
  0xb4   : > { %v1279_v40 = vpop.f32.mrf.mxu2  ;;  %v1103_v42 = vpop.f32.mrf.mxu0 }
  0xb5   : > { %v1368_v41 = vpop.f32.mrf.mxu3  ;;  %v1192_v43 = vpop.f32.mrf.mxu1  ;;  %v1104_v48 = vadd.f32 %v2367_v38, %v1103_v42  ;;  %v1280_v61 = vadd.f32 %v1279_v40, %v1191_v47  ;;  %v1753_v40 = vor.u32 %v2019_v23, %v1752_v22 }
  0xb7   : > { %v1193_v62 = vadd.f32 %v1192_v43, %v1104_v48  ;;  %v1369_v9 = vadd.f32 %v1368_v41, %v1280_v61  ;;  %v1757_v41 = vor.u32 %v2017_v24, %v1754_v25  ;;  %v2023_v61 = vld [vmem:[#allocation2 + $0x16c] sm:$0xf0] }
  0xbc   : > { %v1281_v0 = vpop.f32.mrf.mxu2  ;;  %v1106_v5 = vpop.f32.mrf.mxu0 }
  0xbd   : > { %v1370_v1 = vpop.f32.mrf.mxu3  ;;  %v1282_v4 = vadd.f32 %v1281_v0, %v1193_v62  ;;  %v1195_v6 = vpop.f32.mrf.mxu1  ;;  %v1107_v12 = vadd.f32 %v2367_v38, %v1106_v5  ;;  %v2021_v62 = vld [vmem:[#allocation2 + $0x164] sm:$0xf]  ;;  %v273_v0 = vld [vmem:[%s2245_s9 + $0x6c] sm:$0xf] }
  0xbe   : > { %v342_v5 = vld [vmem:[%s2250_s14 + $0x6c] sm:$0xf]  ;;  %305 = vst [vmem:[#allocation2 + $0x1b4] sm:$0xf] %v273_v0 }
  0xbf   : > { %v1371_v10 = vadd.f32 %v1370_v1, %v1282_v4  ;;  %1145 = vmatmul.bf16.gmra.mxu0 %v1737_v2  ;;  %v1196_v20 = vadd.f32 %v1195_v6, %v1107_v12  ;;  %v1776_v1 = vld [vmem:[#allocation2 + $0x168] sm:$0xf]  ;;  %v2024_v2 = vld [vmem:[#allocation2 + $0x174] sm:$0xf0]  ;;  %v2022_v4 = vld [vmem:[#allocation2 + $0x16c] sm:$0xf] }
  0xc0   : > { %1234 = vmatmul.bf16.gmra.mxu1 %v1741_v3  ;;  %v341_v3 = vld [vmem:[%s2250_s14 + $0x68] sm:$0xf]  ;;  %v1778_v6 = vld [vmem:[#allocation2 + $0x178] sm:$0xf0]  ;;  %374 = vst [vmem:[#allocation2 + $0x1b8] sm:$0xf] %v342_v5  ;;  %v1777_v18 = vor.u32 %v2024_v2, %v1776_v1 }
  0xc1   : > { %v2076_v11 = vpack.c.bf16 %v1371_v10, %v1369_v9  ;;  %1323 = vmatmul.bf16.gmra.mxu2 %v1745_v7  ;;  %v410_v7 = vld [vmem:[%s2258_s17 + $0x68] sm:$0xf]  ;;  %373 = vst [vmem:[#allocation2 + $0x1a8] sm:$0xf] %v341_v3  ;;  %v411_v10 = vld [vmem:[%s2258_s17 + $0x6c] sm:$0xf]  ;;  %v1781_v19 = vor.u32 %v2022_v4, %v1778_v6 }
  0xc2   : > { %1412 = vmatmul.bf16.gmra.mxu3 %v1749_v8  ;;  %442 = vst [vmem:[#allocation2 + $0x1ac] sm:$0xf] %v410_v7  ;;  %v207_v2 = vld [vmem:[%s2221_s21 + $0x78] sm:$0xf]  ;;  %v208_v3 = vld [vmem:[%s2221_s21 + $0x7c] sm:$0xf] }
  0xc3   : > { %2077 = vst [vmem:[%s2385_s24] sm:$0xff] %v2076_v11   ;;  %v276_v4 = vld [vmem:[%s2245_s9 + $0x78] sm:$0xf]  ;;  %v1800_v7 = vld [vmem:[#allocation2 + $0x1a0] sm:$0xf] }
  0xc4   : > { %v1284_v13 = vpop.f32.mrf.mxu2  ;;  %v1108_v15 = vpop.f32.mrf.mxu0  ;;  %443 = vst [vmem:[#allocation2 + $0x1bc] sm:$0xf] %v411_v10 }
  0xc5   : > { %v1373_v14 = vpop.f32.mrf.mxu3  ;;  %v1197_v16 = vpop.f32.mrf.mxu1  ;;  %v1109_v21 = vadd.f32 %v2367_v38, %v1108_v15  ;;  %v1285_v34 = vadd.f32 %v1284_v13, %v1196_v20  ;;  %v1769_v13 = vor.u32 %v2023_v61, %v1768_v60  ;;  %v1802_v10 = vld [vmem:[#allocation2 + $0x1b0] sm:$0xf0]  ;;  %239 = vst [vmem:[#allocation2 + $0x1e0] sm:$0xf] %v207_v2 }
  0xc6   : > { %240 = vst [vmem:[#allocation2 + $0x1f0] sm:$0xf] %v208_v3 }
  0xc7   : > { %v1198_v35 = vadd.f32 %v1197_v16, %v1109_v21  ;;  %v1374_v47 = vadd.f32 %v1373_v14, %v1285_v34  ;;  %v1773_v14 = vor.u32 %v2021_v62, %v1770_v63  ;;  %v2027_v34 = vld [vmem:[#allocation2 + $0x18c] sm:$0xf0]  ;;  %308 = vst [vmem:[#allocation2 + $0x1e4] sm:$0xf] %v276_v4 }
  0xcc   : > { %v1286_v37 = vpop.f32.mrf.mxu2  ;;  %v1111_v43 = vpop.f32.mrf.mxu0 }
  0xcd   : > { %v1375_v39 = vpop.f32.mrf.mxu3  ;;  %v1287_v42 = vadd.f32 %v1286_v37, %v1198_v35  ;;  %v1200_v44 = vpop.f32.mrf.mxu1  ;;  %v1112_v50 = vadd.f32 %v2367_v38, %v1111_v43  ;;  %v2025_v35 = vld [vmem:[#allocation2 + $0x184] sm:$0xf]  ;;  %v275_v37 = vld [vmem:[%s2245_s9 + $0x74] sm:$0xf] }
  0xce   : > { %v344_v43 = vld [vmem:[%s2250_s14 + $0x74] sm:$0xf]  ;;  %307 = vst [vmem:[#allocation2 + $0x1d4] sm:$0xf] %v275_v37 }
  0xcf   : > { %v1376_v48 = vadd.f32 %v1375_v39, %v1287_v42  ;;  %1150 = vmatmul.bf16.gmra.mxu0 %v1753_v40  ;;  %v1201_v58 = vadd.f32 %v1200_v44, %v1112_v50  ;;  %v1792_v39 = vld [vmem:[#allocation2 + $0x188] sm:$0xf]  ;;  %v2028_v40 = vld [vmem:[#allocation2 + $0x194] sm:$0xf0]  ;;  %v2026_v42 = vld [vmem:[#allocation2 + $0x18c] sm:$0xf] }
  0xd0   : > { %1239 = vmatmul.bf16.gmra.mxu1 %v1757_v41  ;;  %v343_v41 = vld [vmem:[%s2250_s14 + $0x70] sm:$0xf]  ;;  %v1794_v44 = vld [vmem:[#allocation2 + $0x198] sm:$0xf0]  ;;  %376 = vst [vmem:[#allocation2 + $0x1d8] sm:$0xf] %v344_v43  ;;  %v1793_v56 = vor.u32 %v2028_v40, %v1792_v39 }
  0xd1   : > { %v2081_v49 = vpack.c.bf16 %v1376_v48, %v1374_v47  ;;  %1328 = vmatmul.bf16.gmra.mxu2 %v1761_v45  ;;  %v412_v45 = vld [vmem:[%s2258_s17 + $0x70] sm:$0xf]  ;;  %375 = vst [vmem:[#allocation2 + $0x1c8] sm:$0xf] %v343_v41  ;;  %v413_v48 = vld [vmem:[%s2258_s17 + $0x74] sm:$0xf]  ;;  %v1797_v57 = vor.u32 %v2026_v42, %v1794_v44 }
  0xd2   : > { %1417 = vmatmul.bf16.gmra.mxu3 %v1765_v46  ;;  %444 = vst [vmem:[#allocation2 + $0x1cc] sm:$0xf] %v412_v45  ;;  %v1816_v42 = vld [vmem:[#allocation2 + $0x1c0] sm:$0xf]  ;;  %v2035_v43 = vld [vmem:[#allocation2 + $0x1cc] sm:$0xf0] }
  0xd3   : > { %2153 = vst [vmem:[%s2385_s24 + $0x8] sm:$0xff] %v2081_v49   ;;  %v2033_v44 = vld [vmem:[#allocation2 + $0x1c4] sm:$0xf] }
  0xd4   : > { %v1289_v51 = vpop.f32.mrf.mxu2  ;;  %v1113_v53 = vpop.f32.mrf.mxu0  ;;  %445 = vst [vmem:[#allocation2 + $0x1dc] sm:$0xf] %v413_v48 }
  0xd5   : > { %v1378_v52 = vpop.f32.mrf.mxu3  ;;  %v1202_v54 = vpop.f32.mrf.mxu1  ;;  %v1114_v59 = vadd.f32 %v2367_v38, %v1113_v53  ;;  %v1290_v8 = vadd.f32 %v1289_v51, %v1201_v58  ;;  %v1785_v51 = vor.u32 %v2027_v34, %v1784_v33  ;;  %v1818_v45 = vld [vmem:[#allocation2 + $0x1d0] sm:$0xf0] }
  0xd7   : > { %v1203_v9 = vadd.f32 %v1202_v54, %v1114_v59  ;;  %v1379_v20 = vadd.f32 %v1378_v52, %v1290_v8  ;;  %v1789_v52 = vor.u32 %v2025_v35, %v1786_v36  ;;  %v2031_v8 = vld [vmem:[#allocation2 + $0x1ac] sm:$0xf0] }
  0xd9   : > { %v2034_v48 = vld [vmem:[#allocation2 + $0x1cc] sm:$0xf] }
  0xdc   : > { %v1291_v11 = vpop.f32.mrf.mxu2  ;;  %v1116_v16 = vpop.f32.mrf.mxu0 }
  0xdd   : > { %v1380_v12 = vpop.f32.mrf.mxu3  ;;  %v1292_v15 = vadd.f32 %v1291_v11, %v1203_v9  ;;  %v1205_v17 = vpop.f32.mrf.mxu1  ;;  %v1117_v23 = vadd.f32 %v2367_v38, %v1116_v16  ;;  %v2029_v9 = vld [vmem:[#allocation2 + $0x1a4] sm:$0xf]  ;;  %v277_v11 = vld [vmem:[%s2245_s9 + $0x7c] sm:$0xf] }
  0xde   : > { %v346_v16 = vld [vmem:[%s2250_s14 + $0x7c] sm:$0xf]  ;;  %309 = vst [vmem:[#allocation2 + $0x1f4] sm:$0xf] %v277_v11 }
  0xdf   : > { %v1381_v21 = vadd.f32 %v1380_v12, %v1292_v15  ;;  %1155 = vmatmul.bf16.gmra.mxu0 %v1769_v13  ;;  %v1206_v31 = vadd.f32 %v1205_v17, %v1117_v23  ;;  %v1808_v12 = vld [vmem:[#allocation2 + $0x1a8] sm:$0xf]  ;;  %v2032_v13 = vld [vmem:[#allocation2 + $0x1b4] sm:$0xf0]  ;;  %v2030_v15 = vld [vmem:[#allocation2 + $0x1ac] sm:$0xf] }
  0xe0   : > { %1244 = vmatmul.bf16.gmra.mxu1 %v1773_v14  ;;  %v345_v14 = vld [vmem:[%s2250_s14 + $0x78] sm:$0xf]  ;;  %v1810_v17 = vld [vmem:[#allocation2 + $0x1b8] sm:$0xf0]  ;;  %378 = vst [vmem:[#allocation2 + $0x1f8] sm:$0xf] %v346_v16  ;;  %v1809_v29 = vor.u32 %v2032_v13, %v1808_v12 }
  0xe1   : > { %v2086_v22 = vpack.c.bf16 %v1381_v21, %v1379_v20  ;;  %1333 = vmatmul.bf16.gmra.mxu2 %v1777_v18  ;;  %v414_v18 = vld [vmem:[%s2258_s17 + $0x78] sm:$0xf]  ;;  %377 = vst [vmem:[#allocation2 + $0x1e8] sm:$0xf] %v345_v14  ;;  %v415_v21 = vld [vmem:[%s2258_s17 + $0x7c] sm:$0xf]  ;;  %v1813_v30 = vor.u32 %v2030_v15, %v1810_v17 }
  0xe2   : > { %1422 = vmatmul.bf16.gmra.mxu3 %v1781_v19  ;;  %446 = vst [vmem:[#allocation2 + $0x1ec] sm:$0xf] %v414_v18 }
  0xe3   : > { %2154 = vst [vmem:[%s2385_s24 + $0x10] sm:$0xff] %v2086_v22  }
  0xe4   : > { %v1294_v24 = vpop.f32.mrf.mxu2  ;;  %v1118_v26 = vpop.f32.mrf.mxu0  ;;  %447 = vst [vmem:[#allocation2 + $0x1fc] sm:$0xf] %v415_v21 }
  0xe5   : > { %v1383_v25 = vpop.f32.mrf.mxu3  ;;  %v1207_v27 = vpop.f32.mrf.mxu1  ;;  %v1119_v32 = vadd.f32 %v2367_v38, %v1118_v26  ;;  %v1295_v46 = vadd.f32 %v1294_v24, %v1206_v31  ;;  %v1801_v24 = vor.u32 %v2031_v8, %v1800_v7  ;;  %v1832_v7 = vld [vmem:[#allocation2 + $0x1e0] sm:$0xf]  ;;  %v2039_v8 = vld [vmem:[#allocation2 + $0x1ec] sm:$0xf0] }
  0xe7   : > { %v1208_v47 = vadd.f32 %v1207_v27, %v1119_v32  ;;  %v1384_v58 = vadd.f32 %v1383_v25, %v1295_v46  ;;  %v1805_v25 = vor.u32 %v2029_v9, %v1802_v10  ;;  %v1824_v46 = vld [vmem:[#allocation2 + $0x1c8] sm:$0xf]  ;;  %v2037_v9 = vld [vmem:[#allocation2 + $0x1e4] sm:$0xf]  ;;  %v1834_v10 = vld [vmem:[#allocation2 + $0x1f0] sm:$0xf0] }
  0xe8   : > { %v1840_v11 = vld [vmem:[#allocation2 + $0x1e8] sm:$0xf]  ;;  %v2040_v12 = vld [vmem:[#allocation2 + $0x1f4] sm:$0xf0] }
  0xe9   : > { %v2038_v13 = vld [vmem:[#allocation2 + $0x1ec] sm:$0xf] }
  0xeb   : > { %v1842_v14 = vld [vmem:[#allocation2 + $0x1f8] sm:$0xf0] }
  0xec   : > { %v1296_v49 = vpop.f32.mrf.mxu2  ;;  %v1121_v54 = vpop.f32.mrf.mxu0 }
  0xed   : > { %v1385_v50 = vpop.f32.mrf.mxu3  ;;  %v1297_v53 = vadd.f32 %v1296_v49, %v1208_v47  ;;  %v1210_v55 = vpop.f32.mrf.mxu1  ;;  %v1122_v61 = vadd.f32 %v2367_v38, %v1121_v54  ;;  %v2036_v47 = vld [vmem:[#allocation2 + $0x1d4] sm:$0xf0]  ;;  %v1826_v49 = vld [vmem:[#allocation2 + $0x1d8] sm:$0xf0]  ;;  %v1817_v54 = vor.u32 %v2035_v43, %v1816_v42 }
  0xef   : > { %v1386_v59 = vadd.f32 %v1385_v50, %v1297_v53  ;;  %1160 = vmatmul.bf16.gmra.mxu0 %v1785_v51  ;;  %v1211_v5 = vadd.f32 %v1210_v55, %v1122_v61  ;;  %v1821_v55 = vor.u32 %v2033_v44, %v1818_v45 }
  0xf0   : > { %1249 = vmatmul.bf16.gmra.mxu1 %v1789_v52 }
  0xf1   : > { %v2091_v60 = vpack.c.bf16 %v1386_v59, %v1384_v58  ;;  %1338 = vmatmul.bf16.gmra.mxu2 %v1793_v56  ;;  %v1825_v59 = vor.u32 %v2036_v47, %v1824_v46 }
  0xf2   : > { %1427 = vmatmul.bf16.gmra.mxu3 %v1797_v57 }
  0xf3   : > { %2155 = vst [vmem:[%s2385_s24 + $0x18] sm:$0xff] %v2091_v60   ;;  %v1829_v60 = vor.u32 %v2034_v48, %v1826_v49 }
  0xf4   : > { %v1299_v62 = vpop.f32.mrf.mxu2  ;;  %v1123_v0 = vpop.f32.mrf.mxu0 }
  0xf5   : > { %v1388_v63 = vpop.f32.mrf.mxu3  ;;  %v1212_v1 = vpop.f32.mrf.mxu1  ;;  %v1124_v6 = vadd.f32 %v2367_v38, %v1123_v0  ;;  %v1300_v19 = vadd.f32 %v1299_v62, %v1211_v5 }
  0xf7   : > { %v1213_v20 = vadd.f32 %v1212_v1, %v1124_v6  ;;  %v1389_v31 = vadd.f32 %v1388_v63, %v1300_v19  ;;  %v1833_v19 = vor.u32 %v2039_v8, %v1832_v7 }
  0xfc   : > { %v1301_v22 = vpop.f32.mrf.mxu2  ;;  %v1126_v27 = vpop.f32.mrf.mxu0 }
  0xfd   : > { %v1390_v23 = vpop.f32.mrf.mxu3  ;;  %v1302_v26 = vadd.f32 %v1301_v22, %v1213_v20  ;;  %v1215_v28 = vpop.f32.mrf.mxu1  ;;  %v1127_v34 = vadd.f32 %v2367_v38, %v1126_v27  ;;  %v1837_v20 = vor.u32 %v2037_v9, %v1834_v10 }
  0xff   : > { %v1391_v32 = vadd.f32 %v1390_v23, %v1302_v26  ;;  %1165 = vmatmul.bf16.gmra.mxu0 %v1801_v24  ;;  %v1216_v40 = vadd.f32 %v1215_v28, %v1127_v34  ;;  %v1841_v24 = vor.u32 %v2040_v12, %v1840_v11 }
 0x100   : > { %1254 = vmatmul.bf16.gmra.mxu1 %v1805_v25  ;;  %v1845_v25 = vor.u32 %v2038_v13, %v1842_v14 }
 0x101   : > { %v2096_v33 = vpack.c.bf16 %v1391_v32, %v1389_v31  ;;  %1343 = vmatmul.bf16.gmra.mxu2 %v1809_v29 }
 0x102   : > { %1432 = vmatmul.bf16.gmra.mxu3 %v1813_v30 }
 0x103   : > { %2156 = vst [vmem:[%s2385_s24 + $0x20] sm:$0xff] %v2096_v33  }
 0x104   : > { %v1304_v35 = vpop.f32.mrf.mxu2  ;;  %v1128_v37 = vpop.f32.mrf.mxu0 }
 0x105   : > { %v1393_v36 = vpop.f32.mrf.mxu3  ;;  %v1217_v39 = vpop.f32.mrf.mxu1  ;;  %v1129_v41 = vadd.f32 %v2367_v38, %v1128_v37  ;;  %v1305_v50 = vadd.f32 %v1304_v35, %v1216_v40 }
 0x107   : > { %v1218_v51 = vadd.f32 %v1217_v39, %v1129_v41  ;;  %v1394_v61 = vadd.f32 %v1393_v36, %v1305_v50 }
 0x10c   : > { %v1306_v52 = vpop.f32.mrf.mxu2  ;;  %v1131_v57 = vpop.f32.mrf.mxu0 }
 0x10d   : > { %v1395_v53 = vpop.f32.mrf.mxu3  ;;  %v1307_v56 = vadd.f32 %v1306_v52, %v1218_v51  ;;  %v1220_v58 = vpop.f32.mrf.mxu1  ;;  %v1132_v0 = vadd.f32 %v2367_v38, %v1131_v57 }
 0x10f   : > { %v1396_v62 = vadd.f32 %v1395_v53, %v1307_v56  ;;  %1170 = vmatmul.bf16.gmra.mxu0 %v1817_v54  ;;  %v1221_v5 = vadd.f32 %v1220_v58, %v1132_v0 }
 0x110   : > { %1259 = vmatmul.bf16.gmra.mxu1 %v1821_v55 }
 0x111   : > { %v2101_v63 = vpack.c.bf16 %v1396_v62, %v1394_v61  ;;  %1348 = vmatmul.bf16.gmra.mxu2 %v1825_v59 }
 0x112   : > { %1437 = vmatmul.bf16.gmra.mxu3 %v1829_v60 }
 0x113   : > { %2157 = vst [vmem:[%s2385_s24 + $0x28] sm:$0xff] %v2101_v63  }
 0x114   : > { %v1309_v1 = vpop.f32.mrf.mxu2  ;;  %v1133_v3 = vpop.f32.mrf.mxu0 }
 0x115   : > { %v1398_v2 = vpop.f32.mrf.mxu3  ;;  %v1222_v4 = vpop.f32.mrf.mxu1  ;;  %v1134_v6 = vadd.f32 %v2367_v38, %v1133_v3  ;;  %v1310_v15 = vadd.f32 %v1309_v1, %v1221_v5 }
 0x117   : > { %v1223_v16 = vadd.f32 %v1222_v4, %v1134_v6  ;;  %v1399_v26 = vadd.f32 %v1398_v2, %v1310_v15 }
 0x11c   : > { %v1311_v17 = vpop.f32.mrf.mxu2  ;;  %v1136_v22 = vpop.f32.mrf.mxu0 }
 0x11d   : > { %v1400_v18 = vpop.f32.mrf.mxu3  ;;  %v1312_v21 = vadd.f32 %v1311_v17, %v1223_v16  ;;  %v1225_v23 = vpop.f32.mrf.mxu1  ;;  %v1137_v29 = vadd.f32 %v2367_v38, %v1136_v22 }
 0x11f   : > { %v1401_v27 = vadd.f32 %v1400_v18, %v1312_v21  ;;  %1175 = vmatmul.bf16.gmra.mxu0 %v1833_v19  ;;  %v1226_v34 = vadd.f32 %v1225_v23, %v1137_v29 }
 0x120   : > { %1264 = vmatmul.bf16.gmra.mxu1 %v1837_v20 }
 0x121   : > { %v2106_v28 = vpack.c.bf16 %v1401_v27, %v1399_v26  ;;  %1353 = vmatmul.bf16.gmra.mxu2 %v1841_v24 }
 0x122   : > { %1442 = vmatmul.bf16.gmra.mxu3 %v1845_v25 }
 0x123   : > { %2158 = vst [vmem:[%s2385_s24 + $0x30] sm:$0xff] %v2106_v28  }
 0x124   : > { %v1314_v30 = vpop.f32.mrf.mxu2  ;;  %v1138_v32 = vpop.f32.mrf.mxu0 }
 0x125   : > { %v1403_v31 = vpop.f32.mrf.mxu3  ;;  %v1227_v33 = vpop.f32.mrf.mxu1  ;;  %v1139_v35 = vadd.f32 %v2367_v38, %v1138_v32  ;;  %v1315_v36 = vadd.f32 %v1314_v30, %v1226_v34 }
 0x127   : > { %v1228_v37 = vadd.f32 %v1227_v33, %v1139_v35  ;;  %v1404_v44 = vadd.f32 %v1403_v31, %v1315_v36 }
 0x12c   : > { %v1316_v39 = vpop.f32.mrf.mxu2  ;;  %v1141_v42 = vpop.f32.mrf.mxu0 }
 0x12d   : > { %v1405_v40 = vpop.f32.mrf.mxu3  ;;  %v1317_v41 = vadd.f32 %v1316_v39, %v1228_v37  ;;  %v1230_v43 = vpop.f32.mrf.mxu1  ;;  %v1142_v47 = vadd.f32 %v2367_v38, %v1141_v42 }
 0x12f   : > { %v1406_v45 = vadd.f32 %v1405_v40, %v1317_v41  ;;  %v1231_v52 = vadd.f32 %v1230_v43, %v1142_v47 }
 0x131   : > { %v2111_v46 = vpack.c.bf16 %v1406_v45, %v1404_v44 }
 0x133   : > { %2159 = vst [vmem:[%s2385_s24 + $0x38] sm:$0xff] %v2111_v46  }
 0x134   : > { %v1319_v48 = vpop.f32.mrf.mxu2  ;;  %v1143_v50 = vpop.f32.mrf.mxu0 }
 0x135   : > { %v1408_v49 = vpop.f32.mrf.mxu3  ;;  %v1232_v51 = vpop.f32.mrf.mxu1  ;;  %v1144_v53 = vadd.f32 %v2367_v38, %v1143_v50  ;;  %v1320_v54 = vadd.f32 %v1319_v48, %v1231_v52 }
 0x137   : > { %v1233_v55 = vadd.f32 %v1232_v51, %v1144_v53  ;;  %v1409_v61 = vadd.f32 %v1408_v49, %v1320_v54 }
 0x13c   : > { %v1321_v56 = vpop.f32.mrf.mxu2  ;;  %v1146_v59 = vpop.f32.mrf.mxu0 }
 0x13d   : > { %v1410_v57 = vpop.f32.mrf.mxu3  ;;  %v1322_v58 = vadd.f32 %v1321_v56, %v1233_v55  ;;  %v1235_v60 = vpop.f32.mrf.mxu1  ;;  %v1147_v0 = vadd.f32 %v2367_v38, %v1146_v59 }
 0x13f   : > { %v1411_v62 = vadd.f32 %v1410_v57, %v1322_v58  ;;  %v1236_v5 = vadd.f32 %v1235_v60, %v1147_v0 }
 0x141   : > { %v2116_v63 = vpack.c.bf16 %v1411_v62, %v1409_v61 }
 0x143   : > { %2160 = vst [vmem:[%s2385_s24 + $0x40] sm:$0xff] %v2116_v63  }
 0x144   : > { %v1324_v1 = vpop.f32.mrf.mxu2  ;;  %v1148_v3 = vpop.f32.mrf.mxu0 }
 0x145   : > { %v1413_v2 = vpop.f32.mrf.mxu3  ;;  %v1237_v4 = vpop.f32.mrf.mxu1  ;;  %v1149_v6 = vadd.f32 %v2367_v38, %v1148_v3  ;;  %v1325_v7 = vadd.f32 %v1324_v1, %v1236_v5 }
 0x147   : > { %v1238_v8 = vadd.f32 %v1237_v4, %v1149_v6  ;;  %v1414_v14 = vadd.f32 %v1413_v2, %v1325_v7 }
 0x14c   : > { %v1326_v9 = vpop.f32.mrf.mxu2  ;;  %v1151_v12 = vpop.f32.mrf.mxu0 }
 0x14d   : > { %v1415_v10 = vpop.f32.mrf.mxu3  ;;  %v1327_v11 = vadd.f32 %v1326_v9, %v1238_v8  ;;  %v1240_v13 = vpop.f32.mrf.mxu1  ;;  %v1152_v17 = vadd.f32 %v2367_v38, %v1151_v12 }
 0x14f   : > { %v1416_v15 = vadd.f32 %v1415_v10, %v1327_v11  ;;  %v1241_v22 = vadd.f32 %v1240_v13, %v1152_v17 }
 0x151   : > { %v2121_v16 = vpack.c.bf16 %v1416_v15, %v1414_v14 }
 0x153   : > { %2161 = vst [vmem:[%s2385_s24 + $0x48] sm:$0xff] %v2121_v16  }
 0x154   : > { %v1329_v18 = vpop.f32.mrf.mxu2  ;;  %v1153_v20 = vpop.f32.mrf.mxu0 }
 0x155   : > { %v1418_v19 = vpop.f32.mrf.mxu3  ;;  %v1242_v21 = vpop.f32.mrf.mxu1  ;;  %v1154_v23 = vadd.f32 %v2367_v38, %v1153_v20  ;;  %v1330_v24 = vadd.f32 %v1329_v18, %v1241_v22 }
 0x157   : > { %v1243_v25 = vadd.f32 %v1242_v21, %v1154_v23  ;;  %v1419_v31 = vadd.f32 %v1418_v19, %v1330_v24 }
 0x15c   : > { %v1331_v26 = vpop.f32.mrf.mxu2  ;;  %v1156_v29 = vpop.f32.mrf.mxu0 }
 0x15d   : > { %v1420_v27 = vpop.f32.mrf.mxu3  ;;  %v1332_v28 = vadd.f32 %v1331_v26, %v1243_v25  ;;  %v1245_v30 = vpop.f32.mrf.mxu1  ;;  %v1157_v34 = vadd.f32 %v2367_v38, %v1156_v29 }
 0x15f   : > { %v1421_v32 = vadd.f32 %v1420_v27, %v1332_v28  ;;  %v1246_v40 = vadd.f32 %v1245_v30, %v1157_v34 }
 0x161   : > { %v2126_v33 = vpack.c.bf16 %v1421_v32, %v1419_v31 }
 0x163   : > { %2162 = vst [vmem:[%s2385_s24 + $0x50] sm:$0xff] %v2126_v33  }
 0x164   : > { %v1334_v35 = vpop.f32.mrf.mxu2  ;;  %v1158_v37 = vpop.f32.mrf.mxu0 }
 0x165   : > { %v1423_v36 = vpop.f32.mrf.mxu3  ;;  %v1247_v39 = vpop.f32.mrf.mxu1  ;;  %v1159_v41 = vadd.f32 %v2367_v38, %v1158_v37  ;;  %v1335_v42 = vadd.f32 %v1334_v35, %v1246_v40 }
 0x167   : > { %v1248_v43 = vadd.f32 %v1247_v39, %v1159_v41  ;;  %v1424_v49 = vadd.f32 %v1423_v36, %v1335_v42 }
 0x16c   : > { %v1336_v44 = vpop.f32.mrf.mxu2  ;;  %v1161_v47 = vpop.f32.mrf.mxu0 }
 0x16d   : > { %v1425_v45 = vpop.f32.mrf.mxu3  ;;  %v1337_v46 = vadd.f32 %v1336_v44, %v1248_v43  ;;  %v1250_v48 = vpop.f32.mrf.mxu1  ;;  %v1162_v52 = vadd.f32 %v2367_v38, %v1161_v47 }
 0x16f   : > { %v1426_v50 = vadd.f32 %v1425_v45, %v1337_v46  ;;  %v1251_v57 = vadd.f32 %v1250_v48, %v1162_v52 }
 0x171   : > { %v2131_v51 = vpack.c.bf16 %v1426_v50, %v1424_v49 }
 0x173   : > { %2163 = vst [vmem:[%s2385_s24 + $0x58] sm:$0xff] %v2131_v51  }
 0x174   : > { %v1339_v53 = vpop.f32.mrf.mxu2  ;;  %v1163_v55 = vpop.f32.mrf.mxu0 }
 0x175   : > { %v1428_v54 = vpop.f32.mrf.mxu3  ;;  %v1252_v56 = vpop.f32.mrf.mxu1  ;;  %v1164_v58 = vadd.f32 %v2367_v38, %v1163_v55  ;;  %v1340_v59 = vadd.f32 %v1339_v53, %v1251_v57 }
 0x177   : > { %v1253_v60 = vadd.f32 %v1252_v56, %v1164_v58  ;;  %v1429_v2 = vadd.f32 %v1428_v54, %v1340_v59 }
 0x17c   : > { %v1341_v61 = vpop.f32.mrf.mxu2  ;;  %v1166_v0 = vpop.f32.mrf.mxu0 }
 0x17d   : > { %v1430_v62 = vpop.f32.mrf.mxu3  ;;  %v1342_v63 = vadd.f32 %v1341_v61, %v1253_v60  ;;  %v1255_v1 = vpop.f32.mrf.mxu1  ;;  %v1167_v5 = vadd.f32 %v2367_v38, %v1166_v0 }
 0x17f   : > { %v1431_v3 = vadd.f32 %v1430_v62, %v1342_v63  ;;  %v1256_v10 = vadd.f32 %v1255_v1, %v1167_v5 }
 0x181   : > { %v2136_v4 = vpack.c.bf16 %v1431_v3, %v1429_v2 }
 0x183   : > { %2164 = vst [vmem:[%s2385_s24 + $0x60] sm:$0xff] %v2136_v4  }
 0x184   : > { %v1344_v6 = vpop.f32.mrf.mxu2  ;;  %v1168_v8 = vpop.f32.mrf.mxu0 }
 0x185   : > { %v1433_v7 = vpop.f32.mrf.mxu3  ;;  %v1257_v9 = vpop.f32.mrf.mxu1  ;;  %v1169_v11 = vadd.f32 %v2367_v38, %v1168_v8  ;;  %v1345_v12 = vadd.f32 %v1344_v6, %v1256_v10 }
 0x187   : > { %v1258_v13 = vadd.f32 %v1257_v9, %v1169_v11  ;;  %v1434_v19 = vadd.f32 %v1433_v7, %v1345_v12 }
 0x18c   : > { %v1346_v14 = vpop.f32.mrf.mxu2  ;;  %v1171_v17 = vpop.f32.mrf.mxu0 }
 0x18d   : > { %v1435_v15 = vpop.f32.mrf.mxu3  ;;  %v1347_v16 = vadd.f32 %v1346_v14, %v1258_v13  ;;  %v1260_v18 = vpop.f32.mrf.mxu1  ;;  %v1172_v22 = vadd.f32 %v2367_v38, %v1171_v17 }
 0x18f   : > { %v1436_v20 = vadd.f32 %v1435_v15, %v1347_v16  ;;  %v1261_v27 = vadd.f32 %v1260_v18, %v1172_v22 }
 0x191   : > { %v2141_v21 = vpack.c.bf16 %v1436_v20, %v1434_v19 }
 0x193   : > { %2165 = vst [vmem:[%s2385_s24 + $0x68] sm:$0xff] %v2141_v21  }
 0x194   : > { %v1349_v23 = vpop.f32.mrf.mxu2  ;;  %v1173_v25 = vpop.f32.mrf.mxu0 }
 0x195   : > { %v1438_v24 = vpop.f32.mrf.mxu3  ;;  %v1262_v26 = vpop.f32.mrf.mxu1  ;;  %v1174_v28 = vadd.f32 %v2367_v38, %v1173_v25  ;;  %v1350_v29 = vadd.f32 %v1349_v23, %v1261_v27 }
 0x197   : > { %v1263_v30 = vadd.f32 %v1262_v26, %v1174_v28  ;;  %v1439_v35 = vadd.f32 %v1438_v24, %v1350_v29 }
 0x19c   : > { %v1351_v31 = vpop.f32.mrf.mxu2  ;;  %v1176_v34 = vpop.f32.mrf.mxu0 }
 0x19d   : > { %v1440_v32 = vpop.f32.mrf.mxu3  ;;  %v1352_v33 = vadd.f32 %v1351_v31, %v1263_v30  ;;  %v1265_v37 = vpop.f32.mrf.mxu1  ;;  %v1177_v40 = vadd.f32 %v2367_v38, %v1176_v34 }
 0x19f   : > { %v1441_v36 = vadd.f32 %v1440_v32, %v1352_v33  ;;  %v1266_v44 = vadd.f32 %v1265_v37, %v1177_v40 }
 0x1a1   : > { %v2146_v39 = vpack.c.bf16 %v1441_v36, %v1439_v35 }
 0x1a3   : > { %2166 = vst [vmem:[%s2385_s24 + $0x70] sm:$0xff] %v2146_v39  }
 0x1a4   : > { %v1354_v41 = vpop.f32.mrf.mxu2  ;;  %v1178_v43 = vpop.f32.mrf.mxu0 }
 0x1a5   : > { %v1443_v42 = vpop.f32.mrf.mxu3  ;;  %v1179_v45 = vadd.f32 %v2367_v38, %v1178_v43  ;;  %v1267_v46 = vpop.f32.mrf.mxu1  ;;  %v1355_v47 = vadd.f32 %v1354_v41, %v1266_v44 }
 0x1a7   : > { %v1268_v48 = vadd.f32 %v1267_v46, %v1179_v45  ;;  %v1444_v52 = vadd.f32 %v1443_v42, %v1355_v47 }
 0x1ac   : > { %v1356_v49 = vpop.f32.mrf.mxu2 }
 0x1ad   : > { %v1357_v50 = vadd.f32 %v1356_v49, %v1268_v48  ;;  %v1445_v51 = vpop.f32.mrf.mxu3 }
 0x1af   : > { %v1446_v53 = vadd.f32 %v1445_v51, %v1357_v50 }
 0x1b1   : > { %v2151_v54 = vpack.c.bf16 %v1446_v53, %v1444_v52 }
 0x1b3   : > { %2167 = vst [vmem:[%s2385_s24 + $0x78] sm:$0xff] %v2151_v54  }
 0x1b4 PF: > { %s13_s12 = sadd.s32 1, %s2183_s12  }
 0x1b5   : > { %p10_p5 = scmp.ge.s32.totalorder %s13_s12, 4  }
 0x1b7   :  { %12 = sbr.rel (!%p10_p5) target bundleno = 1 (0x1), region = 66 }

</bundles_post_ra>
